<compile_context>
chip_gen: v7x
topology: tpu7x:2x2x1
jax: 0.10.0
libtpu: 0.0.40
codegen_flags: <defaults>
</compile_context>

<pallas_src>
import jax
import jax.numpy as jnp
from jax.experimental import pallas as pl
from jax.experimental.pallas import tpu as pltpu

# ---------------- sizes ----------------
B = 2           # batch
T = 8           # seq_len (epochs)
F_IN = 64       # flattened per-epoch input features (synthetic stand-in)
FEAT = 128      # ResNetFeature output dim; concat with pe -> 256 (matches nn.Linear(256, .))
H = 128         # LSTM hidden (bidirectional -> 256 readout)
C = 5           # NUM_CLASSES (sleep stages)
C_PAD = 128     # lane-dense padded class dim (sliced back to C in the wrapper)
SUB = 8         # batch rows padded to one full sublane group for the recurrence


# ---------------- fused kernel: feature proj + (+pe) + concat + bi-LSTM + FC ----------------
def iitnet_kernel(x_ref, pe_ref, wf_ref, bf_ref,
                  wih_ref, bih_ref, whh_f_ref, whh_b_ref,
                  wfc_ref, bfc_ref,
                  out_ref,
                  g16_ref, gpad_ref):
    pe = pe_ref[...]                                             # (B*T, FEAT)

    # feature(x) = relu(x @ wf + bf);  out = feature + pe;  cat = concat((out, pe), dim=2)
    feat = jnp.dot(x_ref[...], wf_ref[...], preferred_element_type=jnp.float32)
    feat = jnp.maximum(feat + bf_ref[...], 0.0)
    cat = jnp.concatenate([feat + pe, pe], axis=-1)              # (B*T, 2*FEAT), row = b*T + t

    # Hoisted input-to-hidden projection for BOTH directions in one MXU matmul.
    # cols [0, 4H) -> forward-direction gates, cols [4H, 8H) -> backward-direction gates.
    gates = jnp.dot(cat, wih_ref[...], preferred_element_type=jnp.float32) + bih_ref[...]
    g16_ref[...] = gates                                         # (B*T, 8H)

    # Repack batch-major rows (b*T + t) into time-major, 8-sublane-padded rows (t*SUB + b)
    # so every per-step gate load in the recurrence is a fully aligned (8, 512) slab.
    gpad_ref[...] = jnp.zeros_like(gpad_ref)
    for b in range(B):
        for t in range(T):
            gpad_ref[pl.ds(t * SUB + b, 1), :] = g16_ref[pl.ds(b * T + t, 1), :]

    whh_f = whh_f_ref[...]
    whh_b = whh_b_ref[...]

    def cell(gx, h, c, whh):
        g = gx + jnp.dot(h, whh, preferred_element_type=jnp.float32)
        i = jax.nn.sigmoid(g[:, 0 * H:1 * H])
        f = jax.nn.sigmoid(g[:, 1 * H:2 * H])
        gg = jnp.tanh(g[:, 2 * H:3 * H])
        o = jax.nn.sigmoid(g[:, 3 * H:4 * H])
        c_new = f * c + i * gg
        h_new = o * jnp.tanh(c_new)
        return h_new, c_new

    zeros = jnp.zeros((SUB, H), jnp.float32)
    hf, cf = zeros, zeros
    hb, cb = zeros, zeros

    # Statically unrolled T-step bidirectional recurrence: only h @ W_hh stays on the serial path.
    # Rows >= B of the state are padding and never mix into rows < B (all ops are row-wise).
    for t in range(T):
        gx_f = gpad_ref[pl.ds(t * SUB, SUB), 0:4 * H]                   # forward reads x[t]
        gx_b = gpad_ref[pl.ds((T - 1 - t) * SUB, SUB), 4 * H:8 * H]     # backward reads x[T-1-t]
        hf, cf = cell(gx_f, hf, cf, whh_f)
        hb, cb = cell(gx_b, hb, cb, whh_b)

    # readout = concat(h_fwd_final, h_bwd_final) @ wfc_pad + bfc_pad, lane-dense 128-wide store.
    readout = jnp.concatenate([hf, hb], axis=-1)                 # (SUB, 2H)
    out_ref[...] = (jnp.dot(readout, wfc_ref[...], preferred_element_type=jnp.float32)
                    + bfc_ref[...])


# ---------------- wrapper ----------------
def iitnet_forward(x, pe, packed):
    x2d = x.reshape(B * T, F_IN)        # free reshapes, batch-major rows (b*T + t)
    pe2d = pe.reshape(B * T, FEAT)
    out_pad = pl.pallas_call(
        iitnet_kernel,
        out_shape=jax.ShapeDtypeStruct((SUB, C_PAD), jnp.float32),
        in_specs=[pl.BlockSpec(memory_space=pltpu.MemorySpace.VMEM) for _ in range(10)],
        out_specs=pl.BlockSpec(memory_space=pltpu.MemorySpace.VMEM),
        scratch_shapes=[
            pltpu.VMEM((B * T, 8 * H), jnp.float32),      # batch-major x-gates
            pltpu.VMEM((T * SUB, 8 * H), jnp.float32),    # time-major, sublane-padded x-gates
        ],
    )(x2d, pe2d,
      packed["wf"], packed["bf"],
      packed["wih"], packed["bih"],
      packed["whh_f"], packed["whh_b"],
      packed["wfc_pad"], packed["bfc_pad"])
    return out_pad[:B, :C]


# ---------------- parameter init / packing ----------------
def init_params(key):
    ks = jax.random.split(key, 10)
    s = 0.1
    return {
        "wf":    s * jax.random.normal(ks[0], (F_IN, FEAT), jnp.float32),
        "bf":    s * jax.random.normal(ks[1], (1, FEAT), jnp.float32),
        "wih_f": s * jax.random.normal(ks[2], (2 * FEAT, 4 * H), jnp.float32),
        "whh_f": s * jax.random.normal(ks[3], (H, 4 * H), jnp.float32),
        "b_f":   s * jax.random.normal(ks[4], (1, 4 * H), jnp.float32),
        "wih_b": s * jax.random.normal(ks[5], (2 * FEAT, 4 * H), jnp.float32),
        "whh_b": s * jax.random.normal(ks[6], (H, 4 * H), jnp.float32),
        "b_b":   s * jax.random.normal(ks[7], (1, 4 * H), jnp.float32),
        "wfc":   s * jax.random.normal(ks[8], (2 * H, C), jnp.float32),
        "bfc":   s * jax.random.normal(ks[9], (1, C), jnp.float32),
    }


def pack_params(p):
    # Concatenate per-direction input-to-hidden weights/biases for the single hoisted matmul,
    # and zero-pad the FC to 128 output lanes for an unmasked store.
    wfc_pad = jnp.zeros((2 * H, C_PAD), jnp.float32).at[:, :C].set(p["wfc"])
    bfc_pad = jnp.zeros((1, C_PAD), jnp.float32).at[:, :C].set(p["bfc"])
    return {
        "wf": p["wf"], "bf": p["bf"],
        "wih": jnp.concatenate([p["wih_f"], p["wih_b"]], axis=1),   # (2*FEAT, 8H)
        "bih": jnp.concatenate([p["b_f"], p["b_b"]], axis=1),       # (1, 8H)
        "whh_f": p["whh_f"], "whh_b": p["whh_b"],
        "wfc_pad": wfc_pad, "bfc_pad": bfc_pad,
    }


# ---------------- pure-JAX reference (correctness check) ----------------
def iitnet_reference(x, pe, p):
    feat = jnp.maximum(jnp.einsum("btf,fd->btd", x, p["wf"]) + p["bf"], 0.0)
    out = feat + pe
    out = jnp.concatenate([out, pe], axis=2)            # (B, T, 256)

    def run_dir(seq, wih, whh, b):
        def step(carry, x_t):
            h, c = carry
            g = x_t @ wih + h @ whh + b
            i = jax.nn.sigmoid(g[:, 0 * H:1 * H])
            f = jax.nn.sigmoid(g[:, 1 * H:2 * H])
            gg = jnp.tanh(g[:, 2 * H:3 * H])
            o = jax.nn.sigmoid(g[:, 3 * H:4 * H])
            c = f * c + i * gg
            h = o * jnp.tanh(c)
            return (h, c), None
        h0 = jnp.zeros((B, H), jnp.float32)
        (h, _), _ = jax.lax.scan(step, (h0, h0), seq)
        return h

    seq_tb = out.transpose(1, 0, 2)
    h_f = run_dir(seq_tb, p["wih_f"], p["whh_f"], p["b_f"])
    h_b = run_dir(seq_tb[::-1], p["wih_b"], p["whh_b"], p["b_b"])
    readout = jnp.concatenate([h_f, h_b], axis=1)
    return readout @ p["wfc"] + p["bfc"]


if __name__ == "__main__":
    key = jax.random.PRNGKey(0)
    kx, kpe, kp = jax.random.split(key, 3)
    x = jax.random.normal(kx, (B, T, F_IN), jnp.float32)
    pe = jax.random.normal(kpe, (B, T, FEAT), jnp.float32)
    params = init_params(kp)
    packed = pack_params(params)

    out = jax.jit(iitnet_forward)(x, pe, packed)
    out = jax.block_until_ready(out)

    ref = iitnet_reference(x, pe, params)
    assert out.shape == (B, C), out.shape
    assert jnp.allclose(out, ref, atol=1e-2, rtol=1e-2), (out, ref)

    print("KERNEL_OK")
</pallas_src>

<mosaic_0001>
module attributes {stable_mosaic.version = 11 : i64} {
  func.func @iitnet_kernel(%arg0: memref<16x64xf32, #tpu.memory_space<vmem>>, %arg1: memref<16x128xf32, #tpu.memory_space<vmem>>, %arg2: memref<64x128xf32, #tpu.memory_space<vmem>>, %arg3: memref<1x128xf32, #tpu.memory_space<vmem>>, %arg4: memref<256x1024xf32, #tpu.memory_space<vmem>>, %arg5: memref<1x1024xf32, #tpu.memory_space<vmem>>, %arg6: memref<128x512xf32, #tpu.memory_space<vmem>>, %arg7: memref<128x512xf32, #tpu.memory_space<vmem>>, %arg8: memref<256x128xf32, #tpu.memory_space<vmem>>, %arg9: memref<1x128xf32, #tpu.memory_space<vmem>>, %arg10: memref<8x128xf32, #tpu.memory_space<vmem>>, %arg11: memref<16x1024xf32, #tpu.memory_space<vmem>>, %arg12: memref<64x1024xf32, #tpu.memory_space<vmem>>) attributes {dimension_semantics = [], scalar_prefetch = 0 : i64, scratch_operands = 2 : i64, tpu.core_type = #tpu.core_type<tc>} {
    %c0 = arith.constant 0 : index
    %c0_0 = arith.constant 0 : index
    %0 = vector.load %arg1[%c0, %c0_0] : memref<16x128xf32, #tpu.memory_space<vmem>>, vector<16x128xf32>
    %c0_1 = arith.constant 0 : index
    %c0_2 = arith.constant 0 : index
    %1 = vector.load %arg0[%c0_1, %c0_2] : memref<16x64xf32, #tpu.memory_space<vmem>>, vector<16x64xf32>
    %c0_3 = arith.constant 0 : index
    %c0_4 = arith.constant 0 : index
    %2 = vector.load %arg2[%c0_3, %c0_4] : memref<64x128xf32, #tpu.memory_space<vmem>>, vector<64x128xf32>
    %cst = arith.constant dense<0.000000e+00> : vector<16x128xf32>
    %3 = tpu.matmul %1, %2, %cst {dimension_numbers = #tpu.dot_dimension_numbers<[1], [0], [0], [1], [0, 0, 1, 1], [], []>} : vector<16x64xf32>, vector<64x128xf32>, vector<16x128xf32> -> vector<16x128xf32>
    %c0_5 = arith.constant 0 : index
    %c0_6 = arith.constant 0 : index
    %4 = vector.load %arg3[%c0_5, %c0_6] : memref<1x128xf32, #tpu.memory_space<vmem>>, vector<1x128xf32>
    %5 = vector.broadcast %4 : vector<1x128xf32> to vector<16x128xf32>
    %6 = arith.addf %3, %5 : vector<16x128xf32>
    %cst_7 = arith.constant 0.000000e+00 : f32
    %7 = vector.broadcast %cst_7 : f32 to vector<16x128xf32>
    %8 = arith.maximumf %6, %7 : vector<16x128xf32>
    %9 = arith.addf %8, %0 : vector<16x128xf32>
    %10 = tpu.concatenate %9, %0 in 1 : vector<16x128xf32>, vector<16x128xf32> -> vector<16x256xf32>
    %c0_8 = arith.constant 0 : index
    %c0_9 = arith.constant 0 : index
    %11 = vector.load %arg4[%c0_8, %c0_9] : memref<256x1024xf32, #tpu.memory_space<vmem>>, vector<256x1024xf32>
    %cst_10 = arith.constant dense<0.000000e+00> : vector<16x1024xf32>
    %12 = tpu.matmul %10, %11, %cst_10 {dimension_numbers = #tpu.dot_dimension_numbers<[1], [0], [0], [1], [0, 0, 1, 1], [], []>} : vector<16x256xf32>, vector<256x1024xf32>, vector<16x1024xf32> -> vector<16x1024xf32>
    %c0_11 = arith.constant 0 : index
    %c0_12 = arith.constant 0 : index
    %13 = vector.load %arg5[%c0_11, %c0_12] : memref<1x1024xf32, #tpu.memory_space<vmem>>, vector<1x1024xf32>
    %14 = vector.broadcast %13 : vector<1x1024xf32> to vector<16x1024xf32>
    %15 = arith.addf %12, %14 : vector<16x1024xf32>
    %c0_13 = arith.constant 0 : index
    %c0_14 = arith.constant 0 : index
    %16 = vector.load %arg11[%c0_13, %c0_14] : memref<16x1024xf32, #tpu.memory_space<vmem>>, vector<16x1024xf32>
    tpu.vector_store %arg11[%c0_13, %c0_14], %15 {strides = array<i32>} : memref<16x1024xf32, #tpu.memory_space<vmem>>, vector<16x1024xf32>,
    %cst_15 = arith.constant 0.000000e+00 : f32
    %17 = vector.broadcast %cst_15 : f32 to vector<64x1024xf32>
    %c0_16 = arith.constant 0 : index
    %c0_17 = arith.constant 0 : index
    %18 = vector.load %arg12[%c0_16, %c0_17] : memref<64x1024xf32, #tpu.memory_space<vmem>>, vector<64x1024xf32>
    tpu.vector_store %arg12[%c0_16, %c0_17], %17 {strides = array<i32>} : memref<64x1024xf32, #tpu.memory_space<vmem>>, vector<64x1024xf32>,
    %c0_18 = arith.constant 0 : index
    %c0_19 = arith.constant 0 : index
    %19 = vector.load %arg11[%c0_18, %c0_19] : memref<16x1024xf32, #tpu.memory_space<vmem>>, vector<1x1024xf32>
    %c0_20 = arith.constant 0 : index
    %c0_21 = arith.constant 0 : index
    %20 = vector.load %arg12[%c0_20, %c0_21] : memref<64x1024xf32, #tpu.memory_space<vmem>>, vector<1x1024xf32>
    tpu.vector_store %arg12[%c0_20, %c0_21], %19 {strides = array<i32>} : memref<64x1024xf32, #tpu.memory_space<vmem>>, vector<1x1024xf32>,
    %c1 = arith.constant 1 : index
    %c0_22 = arith.constant 0 : index
    %21 = vector.load %arg11[%c1, %c0_22] : memref<16x1024xf32, #tpu.memory_space<vmem>>, vector<1x1024xf32>
    %c8 = arith.constant 8 : index
    %c0_23 = arith.constant 0 : index
    %22 = vector.load %arg12[%c8, %c0_23] : memref<64x1024xf32, #tpu.memory_space<vmem>>, vector<1x1024xf32>
    tpu.vector_store %arg12[%c8, %c0_23], %21 {strides = array<i32>} : memref<64x1024xf32, #tpu.memory_space<vmem>>, vector<1x1024xf32>,
    %c2 = arith.constant 2 : index
    %c0_24 = arith.constant 0 : index
    %23 = vector.load %arg11[%c2, %c0_24] : memref<16x1024xf32, #tpu.memory_space<vmem>>, vector<1x1024xf32>
    %c16 = arith.constant 16 : index
    %c0_25 = arith.constant 0 : index
    %24 = vector.load %arg12[%c16, %c0_25] : memref<64x1024xf32, #tpu.memory_space<vmem>>, vector<1x1024xf32>
    tpu.vector_store %arg12[%c16, %c0_25], %23 {strides = array<i32>} : memref<64x1024xf32, #tpu.memory_space<vmem>>, vector<1x1024xf32>,
    %c3 = arith.constant 3 : index
    %c0_26 = arith.constant 0 : index
    %25 = vector.load %arg11[%c3, %c0_26] : memref<16x1024xf32, #tpu.memory_space<vmem>>, vector<1x1024xf32>
    %c24 = arith.constant 24 : index
    %c0_27 = arith.constant 0 : index
    %26 = vector.load %arg12[%c24, %c0_27] : memref<64x1024xf32, #tpu.memory_space<vmem>>, vector<1x1024xf32>
    tpu.vector_store %arg12[%c24, %c0_27], %25 {strides = array<i32>} : memref<64x1024xf32, #tpu.memory_space<vmem>>, vector<1x1024xf32>,
    %c4 = arith.constant 4 : index
    %c0_28 = arith.constant 0 : index
    %27 = vector.load %arg11[%c4, %c0_28] : memref<16x1024xf32, #tpu.memory_space<vmem>>, vector<1x1024xf32>
    %c32 = arith.constant 32 : index
    %c0_29 = arith.constant 0 : index
    %28 = vector.load %arg12[%c32, %c0_29] : memref<64x1024xf32, #tpu.memory_space<vmem>>, vector<1x1024xf32>
    tpu.vector_store %arg12[%c32, %c0_29], %27 {strides = array<i32>} : memref<64x1024xf32, #tpu.memory_space<vmem>>, vector<1x1024xf32>,
    %c5 = arith.constant 5 : index
    %c0_30 = arith.constant 0 : index
    %29 = vector.load %arg11[%c5, %c0_30] : memref<16x1024xf32, #tpu.memory_space<vmem>>, vector<1x1024xf32>
    %c40 = arith.constant 40 : index
    %c0_31 = arith.constant 0 : index
    %30 = vector.load %arg12[%c40, %c0_31] : memref<64x1024xf32, #tpu.memory_space<vmem>>, vector<1x1024xf32>
    tpu.vector_store %arg12[%c40, %c0_31], %29 {strides = array<i32>} : memref<64x1024xf32, #tpu.memory_space<vmem>>, vector<1x1024xf32>,
    %c6 = arith.constant 6 : index
    %c0_32 = arith.constant 0 : index
    %31 = vector.load %arg11[%c6, %c0_32] : memref<16x1024xf32, #tpu.memory_space<vmem>>, vector<1x1024xf32>
    %c48 = arith.constant 48 : index
    %c0_33 = arith.constant 0 : index
    %32 = vector.load %arg12[%c48, %c0_33] : memref<64x1024xf32, #tpu.memory_space<vmem>>, vector<1x1024xf32>
    tpu.vector_store %arg12[%c48, %c0_33], %31 {strides = array<i32>} : memref<64x1024xf32, #tpu.memory_space<vmem>>, vector<1x1024xf32>,
    %c7 = arith.constant 7 : index
    %c0_34 = arith.constant 0 : index
    %33 = vector.load %arg11[%c7, %c0_34] : memref<16x1024xf32, #tpu.memory_space<vmem>>, vector<1x1024xf32>
    %c56 = arith.constant 56 : index
    %c0_35 = arith.constant 0 : index
    %34 = vector.load %arg12[%c56, %c0_35] : memref<64x1024xf32, #tpu.memory_space<vmem>>, vector<1x1024xf32>
    tpu.vector_store %arg12[%c56, %c0_35], %33 {strides = array<i32>} : memref<64x1024xf32, #tpu.memory_space<vmem>>, vector<1x1024xf32>,
    %c8_36 = arith.constant 8 : index
    %c0_37 = arith.constant 0 : index
    %35 = vector.load %arg11[%c8_36, %c0_37] : memref<16x1024xf32, #tpu.memory_space<vmem>>, vector<1x1024xf32>
    %c1_38 = arith.constant 1 : index
    %c0_39 = arith.constant 0 : index
    %36 = vector.load %arg12[%c1_38, %c0_39] : memref<64x1024xf32, #tpu.memory_space<vmem>>, vector<1x1024xf32>
    tpu.vector_store %arg12[%c1_38, %c0_39], %35 {strides = array<i32>} : memref<64x1024xf32, #tpu.memory_space<vmem>>, vector<1x1024xf32>,
    %c9 = arith.constant 9 : index
    %c0_40 = arith.constant 0 : index
    %37 = vector.load %arg11[%c9, %c0_40] : memref<16x1024xf32, #tpu.memory_space<vmem>>, vector<1x1024xf32>
    %c9_41 = arith.constant 9 : index
    %c0_42 = arith.constant 0 : index
    %38 = vector.load %arg12[%c9_41, %c0_42] : memref<64x1024xf32, #tpu.memory_space<vmem>>, vector<1x1024xf32>
    tpu.vector_store %arg12[%c9_41, %c0_42], %37 {strides = array<i32>} : memref<64x1024xf32, #tpu.memory_space<vmem>>, vector<1x1024xf32>,
    %c10 = arith.constant 10 : index
    %c0_43 = arith.constant 0 : index
    %39 = vector.load %arg11[%c10, %c0_43] : memref<16x1024xf32, #tpu.memory_space<vmem>>, vector<1x1024xf32>
    %c17 = arith.constant 17 : index
    %c0_44 = arith.constant 0 : index
    %40 = vector.load %arg12[%c17, %c0_44] : memref<64x1024xf32, #tpu.memory_space<vmem>>, vector<1x1024xf32>
    tpu.vector_store %arg12[%c17, %c0_44], %39 {strides = array<i32>} : memref<64x1024xf32, #tpu.memory_space<vmem>>, vector<1x1024xf32>,
    %c11 = arith.constant 11 : index
    %c0_45 = arith.constant 0 : index
    %41 = vector.load %arg11[%c11, %c0_45] : memref<16x1024xf32, #tpu.memory_space<vmem>>, vector<1x1024xf32>
    %c25 = arith.constant 25 : index
    %c0_46 = arith.constant 0 : index
    %42 = vector.load %arg12[%c25, %c0_46] : memref<64x1024xf32, #tpu.memory_space<vmem>>, vector<1x1024xf32>
    tpu.vector_store %arg12[%c25, %c0_46], %41 {strides = array<i32>} : memref<64x1024xf32, #tpu.memory_space<vmem>>, vector<1x1024xf32>,
    %c12 = arith.constant 12 : index
    %c0_47 = arith.constant 0 : index
    %43 = vector.load %arg11[%c12, %c0_47] : memref<16x1024xf32, #tpu.memory_space<vmem>>, vector<1x1024xf32>
    %c33 = arith.constant 33 : index
    %c0_48 = arith.constant 0 : index
    %44 = vector.load %arg12[%c33, %c0_48] : memref<64x1024xf32, #tpu.memory_space<vmem>>, vector<1x1024xf32>
    tpu.vector_store %arg12[%c33, %c0_48], %43 {strides = array<i32>} : memref<64x1024xf32, #tpu.memory_space<vmem>>, vector<1x1024xf32>,
    %c13 = arith.constant 13 : index
    %c0_49 = arith.constant 0 : index
    %45 = vector.load %arg11[%c13, %c0_49] : memref<16x1024xf32, #tpu.memory_space<vmem>>, vector<1x1024xf32>
    %c41 = arith.constant 41 : index
    %c0_50 = arith.constant 0 : index
    %46 = vector.load %arg12[%c41, %c0_50] : memref<64x1024xf32, #tpu.memory_space<vmem>>, vector<1x1024xf32>
    tpu.vector_store %arg12[%c41, %c0_50], %45 {strides = array<i32>} : memref<64x1024xf32, #tpu.memory_space<vmem>>, vector<1x1024xf32>,
    %c14 = arith.constant 14 : index
    %c0_51 = arith.constant 0 : index
    %47 = vector.load %arg11[%c14, %c0_51] : memref<16x1024xf32, #tpu.memory_space<vmem>>, vector<1x1024xf32>
    %c49 = arith.constant 49 : index
    %c0_52 = arith.constant 0 : index
    %48 = vector.load %arg12[%c49, %c0_52] : memref<64x1024xf32, #tpu.memory_space<vmem>>, vector<1x1024xf32>
    tpu.vector_store %arg12[%c49, %c0_52], %47 {strides = array<i32>} : memref<64x1024xf32, #tpu.memory_space<vmem>>, vector<1x1024xf32>,
    %c15 = arith.constant 15 : index
    %c0_53 = arith.constant 0 : index
    %49 = vector.load %arg11[%c15, %c0_53] : memref<16x1024xf32, #tpu.memory_space<vmem>>, vector<1x1024xf32>
    %c57 = arith.constant 57 : index
    %c0_54 = arith.constant 0 : index
    %50 = vector.load %arg12[%c57, %c0_54] : memref<64x1024xf32, #tpu.memory_space<vmem>>, vector<1x1024xf32>
    tpu.vector_store %arg12[%c57, %c0_54], %49 {strides = array<i32>} : memref<64x1024xf32, #tpu.memory_space<vmem>>, vector<1x1024xf32>,
    %c0_55 = arith.constant 0 : index
    %c0_56 = arith.constant 0 : index
    %51 = vector.load %arg6[%c0_55, %c0_56] : memref<128x512xf32, #tpu.memory_space<vmem>>, vector<128x512xf32>
    %c0_57 = arith.constant 0 : index
    %c0_58 = arith.constant 0 : index
    %52 = vector.load %arg7[%c0_57, %c0_58] : memref<128x512xf32, #tpu.memory_space<vmem>>, vector<128x512xf32>
    %cst_59 = arith.constant 0.000000e+00 : f32
    %53 = vector.broadcast %cst_59 : f32 to vector<8x128xf32>
    %c0_60 = arith.constant 0 : index
    %c0_61 = arith.constant 0 : index
    %54 = vector.load %arg12[%c0_60, %c0_61] : memref<64x1024xf32, #tpu.memory_space<vmem>>, vector<8x512xf32>
    %c56_62 = arith.constant 56 : index
    %c512 = arith.constant 512 : index
    %55 = vector.load %arg12[%c56_62, %c512] : memref<64x1024xf32, #tpu.memory_space<vmem>>, vector<8x512xf32>
    %cst_63 = arith.constant dense<0.000000e+00> : vector<8x512xf32>
    %56 = tpu.matmul %53, %51, %cst_63 {dimension_numbers = #tpu.dot_dimension_numbers<[1], [0], [0], [1], [0, 0, 1, 1], [], []>} : vector<8x128xf32>, vector<128x512xf32>, vector<8x512xf32> -> vector<8x512xf32>
    %57 = arith.addf %54, %56 : vector<8x512xf32>
    %58 = vector.extract_strided_slice %57 {offsets = [0, 0], sizes = [8, 128], strides = [1, 1]} : vector<8x512xf32> to vector<8x128xf32>
    %59 = arith.negf %58 : vector<8x128xf32>
    %60 = math.exp %59 : vector<8x128xf32>
    %cst_64 = arith.constant 1.000000e+00 : f32
    %61 = vector.broadcast %cst_64 : f32 to vector<8x128xf32>
    %62 = arith.addf %61, %60 : vector<8x128xf32>
    %63 = arith.divf %61, %62 : vector<8x128xf32>
    %64 = vector.extract_strided_slice %57 {offsets = [0, 128], sizes = [8, 128], strides = [1, 1]} : vector<8x512xf32> to vector<8x128xf32>
    %65 = arith.negf %64 : vector<8x128xf32>
    %66 = math.exp %65 : vector<8x128xf32>
    %cst_65 = arith.constant 1.000000e+00 : f32
    %67 = vector.broadcast %cst_65 : f32 to vector<8x128xf32>
    %68 = arith.addf %67, %66 : vector<8x128xf32>
    %69 = arith.divf %67, %68 : vector<8x128xf32>
    %70 = vector.extract_strided_slice %57 {offsets = [0, 256], sizes = [8, 128], strides = [1, 1]} : vector<8x512xf32> to vector<8x128xf32>
    %71 = math.tanh %70 : vector<8x128xf32>
    %72 = vector.extract_strided_slice %57 {offsets = [0, 384], sizes = [8, 128], strides = [1, 1]} : vector<8x512xf32> to vector<8x128xf32>
    %73 = arith.negf %72 : vector<8x128xf32>
    %74 = math.exp %73 : vector<8x128xf32>
    %cst_66 = arith.constant 1.000000e+00 : f32
    %75 = vector.broadcast %cst_66 : f32 to vector<8x128xf32>
    %76 = arith.addf %75, %74 : vector<8x128xf32>
    %77 = arith.divf %75, %76 : vector<8x128xf32>
    %78 = arith.mulf %69, %53 : vector<8x128xf32>
    %79 = arith.mulf %63, %71 : vector<8x128xf32>
    %80 = arith.addf %78, %79 : vector<8x128xf32>
    %81 = math.tanh %80 : vector<8x128xf32>
    %82 = arith.mulf %77, %81 : vector<8x128xf32>
    %cst_67 = arith.constant dense<0.000000e+00> : vector<8x512xf32>
    %83 = tpu.matmul %53, %52, %cst_67 {dimension_numbers = #tpu.dot_dimension_numbers<[1], [0], [0], [1], [0, 0, 1, 1], [], []>} : vector<8x128xf32>, vector<128x512xf32>, vector<8x512xf32> -> vector<8x512xf32>
    %84 = arith.addf %55, %83 : vector<8x512xf32>
    %85 = vector.extract_strided_slice %84 {offsets = [0, 0], sizes = [8, 128], strides = [1, 1]} : vector<8x512xf32> to vector<8x128xf32>
    %86 = arith.negf %85 : vector<8x128xf32>
    %87 = math.exp %86 : vector<8x128xf32>
    %cst_68 = arith.constant 1.000000e+00 : f32
    %88 = vector.broadcast %cst_68 : f32 to vector<8x128xf32>
    %89 = arith.addf %88, %87 : vector<8x128xf32>
    %90 = arith.divf %88, %89 : vector<8x128xf32>
    %91 = vector.extract_strided_slice %84 {offsets = [0, 128], sizes = [8, 128], strides = [1, 1]} : vector<8x512xf32> to vector<8x128xf32>
    %92 = arith.negf %91 : vector<8x128xf32>
    %93 = math.exp %92 : vector<8x128xf32>
    %cst_69 = arith.constant 1.000000e+00 : f32
    %94 = vector.broadcast %cst_69 : f32 to vector<8x128xf32>
    %95 = arith.addf %94, %93 : vector<8x128xf32>
    %96 = arith.divf %94, %95 : vector<8x128xf32>
    %97 = vector.extract_strided_slice %84 {offsets = [0, 256], sizes = [8, 128], strides = [1, 1]} : vector<8x512xf32> to vector<8x128xf32>
    %98 = math.tanh %97 : vector<8x128xf32>
    %99 = vector.extract_strided_slice %84 {offsets = [0, 384], sizes = [8, 128], strides = [1, 1]} : vector<8x512xf32> to vector<8x128xf32>
    %100 = arith.negf %99 : vector<8x128xf32>
    %101 = math.exp %100 : vector<8x128xf32>
    %cst_70 = arith.constant 1.000000e+00 : f32
    %102 = vector.broadcast %cst_70 : f32 to vector<8x128xf32>
    %103 = arith.addf %102, %101 : vector<8x128xf32>
    %104 = arith.divf %102, %103 : vector<8x128xf32>
    %105 = arith.mulf %96, %53 : vector<8x128xf32>
    %106 = arith.mulf %90, %98 : vector<8x128xf32>
    %107 = arith.addf %105, %106 : vector<8x128xf32>
    %108 = math.tanh %107 : vector<8x128xf32>
    %109 = arith.mulf %104, %108 : vector<8x128xf32>
    %c8_71 = arith.constant 8 : index
    %c0_72 = arith.constant 0 : index
    %110 = vector.load %arg12[%c8_71, %c0_72] : memref<64x1024xf32, #tpu.memory_space<vmem>>, vector<8x512xf32>
    %c48_73 = arith.constant 48 : index
    %c512_74 = arith.constant 512 : index
    %111 = vector.load %arg12[%c48_73, %c512_74] : memref<64x1024xf32, #tpu.memory_space<vmem>>, vector<8x512xf32>
    %cst_75 = arith.constant dense<0.000000e+00> : vector<8x512xf32>
    %112 = tpu.matmul %82, %51, %cst_75 {dimension_numbers = #tpu.dot_dimension_numbers<[1], [0], [0], [1], [0, 0, 1, 1], [], []>} : vector<8x128xf32>, vector<128x512xf32>, vector<8x512xf32> -> vector<8x512xf32>
    %113 = arith.addf %110, %112 : vector<8x512xf32>
    %114 = vector.extract_strided_slice %113 {offsets = [0, 0], sizes = [8, 128], strides = [1, 1]} : vector<8x512xf32> to vector<8x128xf32>
    %115 = arith.negf %114 : vector<8x128xf32>
    %116 = math.exp %115 : vector<8x128xf32>
    %cst_76 = arith.constant 1.000000e+00 : f32
    %117 = vector.broadcast %cst_76 : f32 to vector<8x128xf32>
    %118 = arith.addf %117, %116 : vector<8x128xf32>
    %119 = arith.divf %117, %118 : vector<8x128xf32>
    %120 = vector.extract_strided_slice %113 {offsets = [0, 128], sizes = [8, 128], strides = [1, 1]} : vector<8x512xf32> to vector<8x128xf32>
    %121 = arith.negf %120 : vector<8x128xf32>
    %122 = math.exp %121 : vector<8x128xf32>
    %cst_77 = arith.constant 1.000000e+00 : f32
    %123 = vector.broadcast %cst_77 : f32 to vector<8x128xf32>
    %124 = arith.addf %123, %122 : vector<8x128xf32>
    %125 = arith.divf %123, %124 : vector<8x128xf32>
    %126 = vector.extract_strided_slice %113 {offsets = [0, 256], sizes = [8, 128], strides = [1, 1]} : vector<8x512xf32> to vector<8x128xf32>
    %127 = math.tanh %126 : vector<8x128xf32>
    %128 = vector.extract_strided_slice %113 {offsets = [0, 384], sizes = [8, 128], strides = [1, 1]} : vector<8x512xf32> to vector<8x128xf32>
    %129 = arith.negf %128 : vector<8x128xf32>
    %130 = math.exp %129 : vector<8x128xf32>
    %cst_78 = arith.constant 1.000000e+00 : f32
    %131 = vector.broadcast %cst_78 : f32 to vector<8x128xf32>
    %132 = arith.addf %131, %130 : vector<8x128xf32>
    %133 = arith.divf %131, %132 : vector<8x128xf32>
    %134 = arith.mulf %125, %80 : vector<8x128xf32>
    %135 = arith.mulf %119, %127 : vector<8x128xf32>
    %136 = arith.addf %134, %135 : vector<8x128xf32>
    %137 = math.tanh %136 : vector<8x128xf32>
    %138 = arith.mulf %133, %137 : vector<8x128xf32>
    %cst_79 = arith.constant dense<0.000000e+00> : vector<8x512xf32>
    %139 = tpu.matmul %109, %52, %cst_79 {dimension_numbers = #tpu.dot_dimension_numbers<[1], [0], [0], [1], [0, 0, 1, 1], [], []>} : vector<8x128xf32>, vector<128x512xf32>, vector<8x512xf32> -> vector<8x512xf32>
    %140 = arith.addf %111, %139 : vector<8x512xf32>
    %141 = vector.extract_strided_slice %140 {offsets = [0, 0], sizes = [8, 128], strides = [1, 1]} : vector<8x512xf32> to vector<8x128xf32>
    %142 = arith.negf %141 : vector<8x128xf32>
    %143 = math.exp %142 : vector<8x128xf32>
    %cst_80 = arith.constant 1.000000e+00 : f32
    %144 = vector.broadcast %cst_80 : f32 to vector<8x128xf32>
    %145 = arith.addf %144, %143 : vector<8x128xf32>
    %146 = arith.divf %144, %145 : vector<8x128xf32>
    %147 = vector.extract_strided_slice %140 {offsets = [0, 128], sizes = [8, 128], strides = [1, 1]} : vector<8x512xf32> to vector<8x128xf32>
    %148 = arith.negf %147 : vector<8x128xf32>
    %149 = math.exp %148 : vector<8x128xf32>
    %cst_81 = arith.constant 1.000000e+00 : f32
    %150 = vector.broadcast %cst_81 : f32 to vector<8x128xf32>
    %151 = arith.addf %150, %149 : vector<8x128xf32>
    %152 = arith.divf %150, %151 : vector<8x128xf32>
    %153 = vector.extract_strided_slice %140 {offsets = [0, 256], sizes = [8, 128], strides = [1, 1]} : vector<8x512xf32> to vector<8x128xf32>
    %154 = math.tanh %153 : vector<8x128xf32>
    %155 = vector.extract_strided_slice %140 {offsets = [0, 384], sizes = [8, 128], strides = [1, 1]} : vector<8x512xf32> to vector<8x128xf32>
    %156 = arith.negf %155 : vector<8x128xf32>
    %157 = math.exp %156 : vector<8x128xf32>
    %cst_82 = arith.constant 1.000000e+00 : f32
    %158 = vector.broadcast %cst_82 : f32 to vector<8x128xf32>
    %159 = arith.addf %158, %157 : vector<8x128xf32>
    %160 = arith.divf %158, %159 : vector<8x128xf32>
    %161 = arith.mulf %152, %107 : vector<8x128xf32>
    %162 = arith.mulf %146, %154 : vector<8x128xf32>
    %163 = arith.addf %161, %162 : vector<8x128xf32>
    %164 = math.tanh %163 : vector<8x128xf32>
    %165 = arith.mulf %160, %164 : vector<8x128xf32>
    %c16_83 = arith.constant 16 : index
    %c0_84 = arith.constant 0 : index
    %166 = vector.load %arg12[%c16_83, %c0_84] : memref<64x1024xf32, #tpu.memory_space<vmem>>, vector<8x512xf32>
    %c40_85 = arith.constant 40 : index
    %c512_86 = arith.constant 512 : index
    %167 = vector.load %arg12[%c40_85, %c512_86] : memref<64x1024xf32, #tpu.memory_space<vmem>>, vector<8x512xf32>
    %cst_87 = arith.constant dense<0.000000e+00> : vector<8x512xf32>
    %168 = tpu.matmul %138, %51, %cst_87 {dimension_numbers = #tpu.dot_dimension_numbers<[1], [0], [0], [1], [0, 0, 1, 1], [], []>} : vector<8x128xf32>, vector<128x512xf32>, vector<8x512xf32> -> vector<8x512xf32>
    %169 = arith.addf %166, %168 : vector<8x512xf32>
    %170 = vector.extract_strided_slice %169 {offsets = [0, 0], sizes = [8, 128], strides = [1, 1]} : vector<8x512xf32> to vector<8x128xf32>
    %171 = arith.negf %170 : vector<8x128xf32>
    %172 = math.exp %171 : vector<8x128xf32>
    %cst_88 = arith.constant 1.000000e+00 : f32
    %173 = vector.broadcast %cst_88 : f32 to vector<8x128xf32>
    %174 = arith.addf %173, %172 : vector<8x128xf32>
    %175 = arith.divf %173, %174 : vector<8x128xf32>
    %176 = vector.extract_strided_slice %169 {offsets = [0, 128], sizes = [8, 128], strides = [1, 1]} : vector<8x512xf32> to vector<8x128xf32>
    %177 = arith.negf %176 : vector<8x128xf32>
    %178 = math.exp %177 : vector<8x128xf32>
    %cst_89 = arith.constant 1.000000e+00 : f32
    %179 = vector.broadcast %cst_89 : f32 to vector<8x128xf32>
    %180 = arith.addf %179, %178 : vector<8x128xf32>
    %181 = arith.divf %179, %180 : vector<8x128xf32>
    %182 = vector.extract_strided_slice %169 {offsets = [0, 256], sizes = [8, 128], strides = [1, 1]} : vector<8x512xf32> to vector<8x128xf32>
    %183 = math.tanh %182 : vector<8x128xf32>
    %184 = vector.extract_strided_slice %169 {offsets = [0, 384], sizes = [8, 128], strides = [1, 1]} : vector<8x512xf32> to vector<8x128xf32>
    %185 = arith.negf %184 : vector<8x128xf32>
    %186 = math.exp %185 : vector<8x128xf32>
    %cst_90 = arith.constant 1.000000e+00 : f32
    %187 = vector.broadcast %cst_90 : f32 to vector<8x128xf32>
    %188 = arith.addf %187, %186 : vector<8x128xf32>
    %189 = arith.divf %187, %188 : vector<8x128xf32>
    %190 = arith.mulf %181, %136 : vector<8x128xf32>
    %191 = arith.mulf %175, %183 : vector<8x128xf32>
    %192 = arith.addf %190, %191 : vector<8x128xf32>
    %193 = math.tanh %192 : vector<8x128xf32>
    %194 = arith.mulf %189, %193 : vector<8x128xf32>
    %cst_91 = arith.constant dense<0.000000e+00> : vector<8x512xf32>
    %195 = tpu.matmul %165, %52, %cst_91 {dimension_numbers = #tpu.dot_dimension_numbers<[1], [0], [0], [1], [0, 0, 1, 1], [], []>} : vector<8x128xf32>, vector<128x512xf32>, vector<8x512xf32> -> vector<8x512xf32>
    %196 = arith.addf %167, %195 : vector<8x512xf32>
    %197 = vector.extract_strided_slice %196 {offsets = [0, 0], sizes = [8, 128], strides = [1, 1]} : vector<8x512xf32> to vector<8x128xf32>
    %198 = arith.negf %197 : vector<8x128xf32>
    %199 = math.exp %198 : vector<8x128xf32>
    %cst_92 = arith.constant 1.000000e+00 : f32
    %200 = vector.broadcast %cst_92 : f32 to vector<8x128xf32>
    %201 = arith.addf %200, %199 : vector<8x128xf32>
    %202 = arith.divf %200, %201 : vector<8x128xf32>
    %203 = vector.extract_strided_slice %196 {offsets = [0, 128], sizes = [8, 128], strides = [1, 1]} : vector<8x512xf32> to vector<8x128xf32>
    %204 = arith.negf %203 : vector<8x128xf32>
    %205 = math.exp %204 : vector<8x128xf32>
    %cst_93 = arith.constant 1.000000e+00 : f32
    %206 = vector.broadcast %cst_93 : f32 to vector<8x128xf32>
    %207 = arith.addf %206, %205 : vector<8x128xf32>
    %208 = arith.divf %206, %207 : vector<8x128xf32>
    %209 = vector.extract_strided_slice %196 {offsets = [0, 256], sizes = [8, 128], strides = [1, 1]} : vector<8x512xf32> to vector<8x128xf32>
    %210 = math.tanh %209 : vector<8x128xf32>
    %211 = vector.extract_strided_slice %196 {offsets = [0, 384], sizes = [8, 128], strides = [1, 1]} : vector<8x512xf32> to vector<8x128xf32>
    %212 = arith.negf %211 : vector<8x128xf32>
    %213 = math.exp %212 : vector<8x128xf32>
    %cst_94 = arith.constant 1.000000e+00 : f32
    %214 = vector.broadcast %cst_94 : f32 to vector<8x128xf32>
    %215 = arith.addf %214, %213 : vector<8x128xf32>
    %216 = arith.divf %214, %215 : vector<8x128xf32>
    %217 = arith.mulf %208, %163 : vector<8x128xf32>
    %218 = arith.mulf %202, %210 : vector<8x128xf32>
    %219 = arith.addf %217, %218 : vector<8x128xf32>
    %220 = math.tanh %219 : vector<8x128xf32>
    %221 = arith.mulf %216, %220 : vector<8x128xf32>
    %c24_95 = arith.constant 24 : index
    %c0_96 = arith.constant 0 : index
    %222 = vector.load %arg12[%c24_95, %c0_96] : memref<64x1024xf32, #tpu.memory_space<vmem>>, vector<8x512xf32>
    %c32_97 = arith.constant 32 : index
    %c512_98 = arith.constant 512 : index
    %223 = vector.load %arg12[%c32_97, %c512_98] : memref<64x1024xf32, #tpu.memory_space<vmem>>, vector<8x512xf32>
    %cst_99 = arith.constant dense<0.000000e+00> : vector<8x512xf32>
    %224 = tpu.matmul %194, %51, %cst_99 {dimension_numbers = #tpu.dot_dimension_numbers<[1], [0], [0], [1], [0, 0, 1, 1], [], []>} : vector<8x128xf32>, vector<128x512xf32>, vector<8x512xf32> -> vector<8x512xf32>
    %225 = arith.addf %222, %224 : vector<8x512xf32>
    %226 = vector.extract_strided_slice %225 {offsets = [0, 0], sizes = [8, 128], strides = [1, 1]} : vector<8x512xf32> to vector<8x128xf32>
    %227 = arith.negf %226 : vector<8x128xf32>
    %228 = math.exp %227 : vector<8x128xf32>
    %cst_100 = arith.constant 1.000000e+00 : f32
    %229 = vector.broadcast %cst_100 : f32 to vector<8x128xf32>
    %230 = arith.addf %229, %228 : vector<8x128xf32>
    %231 = arith.divf %229, %230 : vector<8x128xf32>
    %232 = vector.extract_strided_slice %225 {offsets = [0, 128], sizes = [8, 128], strides = [1, 1]} : vector<8x512xf32> to vector<8x128xf32>
    %233 = arith.negf %232 : vector<8x128xf32>
    %234 = math.exp %233 : vector<8x128xf32>
    %cst_101 = arith.constant 1.000000e+00 : f32
    %235 = vector.broadcast %cst_101 : f32 to vector<8x128xf32>
    %236 = arith.addf %235, %234 : vector<8x128xf32>
    %237 = arith.divf %235, %236 : vector<8x128xf32>
    %238 = vector.extract_strided_slice %225 {offsets = [0, 256], sizes = [8, 128], strides = [1, 1]} : vector<8x512xf32> to vector<8x128xf32>
    %239 = math.tanh %238 : vector<8x128xf32>
    %240 = vector.extract_strided_slice %225 {offsets = [0, 384], sizes = [8, 128], strides = [1, 1]} : vector<8x512xf32> to vector<8x128xf32>
    %241 = arith.negf %240 : vector<8x128xf32>
    %242 = math.exp %241 : vector<8x128xf32>
    %cst_102 = arith.constant 1.000000e+00 : f32
    %243 = vector.broadcast %cst_102 : f32 to vector<8x128xf32>
    %244 = arith.addf %243, %242 : vector<8x128xf32>
    %245 = arith.divf %243, %244 : vector<8x128xf32>
    %246 = arith.mulf %237, %192 : vector<8x128xf32>
    %247 = arith.mulf %231, %239 : vector<8x128xf32>
    %248 = arith.addf %246, %247 : vector<8x128xf32>
    %249 = math.tanh %248 : vector<8x128xf32>
    %250 = arith.mulf %245, %249 : vector<8x128xf32>
    %cst_103 = arith.constant dense<0.000000e+00> : vector<8x512xf32>
    %251 = tpu.matmul %221, %52, %cst_103 {dimension_numbers = #tpu.dot_dimension_numbers<[1], [0], [0], [1], [0, 0, 1, 1], [], []>} : vector<8x128xf32>, vector<128x512xf32>, vector<8x512xf32> -> vector<8x512xf32>
    %252 = arith.addf %223, %251 : vector<8x512xf32>
    %253 = vector.extract_strided_slice %252 {offsets = [0, 0], sizes = [8, 128], strides = [1, 1]} : vector<8x512xf32> to vector<8x128xf32>
    %254 = arith.negf %253 : vector<8x128xf32>
    %255 = math.exp %254 : vector<8x128xf32>
    %cst_104 = arith.constant 1.000000e+00 : f32
    %256 = vector.broadcast %cst_104 : f32 to vector<8x128xf32>
    %257 = arith.addf %256, %255 : vector<8x128xf32>
    %258 = arith.divf %256, %257 : vector<8x128xf32>
    %259 = vector.extract_strided_slice %252 {offsets = [0, 128], sizes = [8, 128], strides = [1, 1]} : vector<8x512xf32> to vector<8x128xf32>
    %260 = arith.negf %259 : vector<8x128xf32>
    %261 = math.exp %260 : vector<8x128xf32>
    %cst_105 = arith.constant 1.000000e+00 : f32
    %262 = vector.broadcast %cst_105 : f32 to vector<8x128xf32>
    %263 = arith.addf %262, %261 : vector<8x128xf32>
    %264 = arith.divf %262, %263 : vector<8x128xf32>
    %265 = vector.extract_strided_slice %252 {offsets = [0, 256], sizes = [8, 128], strides = [1, 1]} : vector<8x512xf32> to vector<8x128xf32>
    %266 = math.tanh %265 : vector<8x128xf32>
    %267 = vector.extract_strided_slice %252 {offsets = [0, 384], sizes = [8, 128], strides = [1, 1]} : vector<8x512xf32> to vector<8x128xf32>
    %268 = arith.negf %267 : vector<8x128xf32>
    %269 = math.exp %268 : vector<8x128xf32>
    %cst_106 = arith.constant 1.000000e+00 : f32
    %270 = vector.broadcast %cst_106 : f32 to vector<8x128xf32>
    %271 = arith.addf %270, %269 : vector<8x128xf32>
    %272 = arith.divf %270, %271 : vector<8x128xf32>
    %273 = arith.mulf %264, %219 : vector<8x128xf32>
    %274 = arith.mulf %258, %266 : vector<8x128xf32>
    %275 = arith.addf %273, %274 : vector<8x128xf32>
    %276 = math.tanh %275 : vector<8x128xf32>
    %277 = arith.mulf %272, %276 : vector<8x128xf32>
    %c32_107 = arith.constant 32 : index
    %c0_108 = arith.constant 0 : index
    %278 = vector.load %arg12[%c32_107, %c0_108] : memref<64x1024xf32, #tpu.memory_space<vmem>>, vector<8x512xf32>
    %c24_109 = arith.constant 24 : index
    %c512_110 = arith.constant 512 : index
    %279 = vector.load %arg12[%c24_109, %c512_110] : memref<64x1024xf32, #tpu.memory_space<vmem>>, vector<8x512xf32>
    %cst_111 = arith.constant dense<0.000000e+00> : vector<8x512xf32>
    %280 = tpu.matmul %250, %51, %cst_111 {dimension_numbers = #tpu.dot_dimension_numbers<[1], [0], [0], [1], [0, 0, 1, 1], [], []>} : vector<8x128xf32>, vector<128x512xf32>, vector<8x512xf32> -> vector<8x512xf32>
    %281 = arith.addf %278, %280 : vector<8x512xf32>
    %282 = vector.extract_strided_slice %281 {offsets = [0, 0], sizes = [8, 128], strides = [1, 1]} : vector<8x512xf32> to vector<8x128xf32>
    %283 = arith.negf %282 : vector<8x128xf32>
    %284 = math.exp %283 : vector<8x128xf32>
    %cst_112 = arith.constant 1.000000e+00 : f32
    %285 = vector.broadcast %cst_112 : f32 to vector<8x128xf32>
    %286 = arith.addf %285, %284 : vector<8x128xf32>
    %287 = arith.divf %285, %286 : vector<8x128xf32>
    %288 = vector.extract_strided_slice %281 {offsets = [0, 128], sizes = [8, 128], strides = [1, 1]} : vector<8x512xf32> to vector<8x128xf32>
    %289 = arith.negf %288 : vector<8x128xf32>
    %290 = math.exp %289 : vector<8x128xf32>
    %cst_113 = arith.constant 1.000000e+00 : f32
    %291 = vector.broadcast %cst_113 : f32 to vector<8x128xf32>
    %292 = arith.addf %291, %290 : vector<8x128xf32>
    %293 = arith.divf %291, %292 : vector<8x128xf32>
    %294 = vector.extract_strided_slice %281 {offsets = [0, 256], sizes = [8, 128], strides = [1, 1]} : vector<8x512xf32> to vector<8x128xf32>
    %295 = math.tanh %294 : vector<8x128xf32>
    %296 = vector.extract_strided_slice %281 {offsets = [0, 384], sizes = [8, 128], strides = [1, 1]} : vector<8x512xf32> to vector<8x128xf32>
    %297 = arith.negf %296 : vector<8x128xf32>
    %298 = math.exp %297 : vector<8x128xf32>
    %cst_114 = arith.constant 1.000000e+00 : f32
    %299 = vector.broadcast %cst_114 : f32 to vector<8x128xf32>
    %300 = arith.addf %299, %298 : vector<8x128xf32>
    %301 = arith.divf %299, %300 : vector<8x128xf32>
    %302 = arith.mulf %293, %248 : vector<8x128xf32>
    %303 = arith.mulf %287, %295 : vector<8x128xf32>
    %304 = arith.addf %302, %303 : vector<8x128xf32>
    %305 = math.tanh %304 : vector<8x128xf32>
    %306 = arith.mulf %301, %305 : vector<8x128xf32>
    %cst_115 = arith.constant dense<0.000000e+00> : vector<8x512xf32>
    %307 = tpu.matmul %277, %52, %cst_115 {dimension_numbers = #tpu.dot_dimension_numbers<[1], [0], [0], [1], [0, 0, 1, 1], [], []>} : vector<8x128xf32>, vector<128x512xf32>, vector<8x512xf32> -> vector<8x512xf32>
    %308 = arith.addf %279, %307 : vector<8x512xf32>
    %309 = vector.extract_strided_slice %308 {offsets = [0, 0], sizes = [8, 128], strides = [1, 1]} : vector<8x512xf32> to vector<8x128xf32>
    %310 = arith.negf %309 : vector<8x128xf32>
    %311 = math.exp %310 : vector<8x128xf32>
    %cst_116 = arith.constant 1.000000e+00 : f32
    %312 = vector.broadcast %cst_116 : f32 to vector<8x128xf32>
    %313 = arith.addf %312, %311 : vector<8x128xf32>
    %314 = arith.divf %312, %313 : vector<8x128xf32>
    %315 = vector.extract_strided_slice %308 {offsets = [0, 128], sizes = [8, 128], strides = [1, 1]} : vector<8x512xf32> to vector<8x128xf32>
    %316 = arith.negf %315 : vector<8x128xf32>
    %317 = math.exp %316 : vector<8x128xf32>
    %cst_117 = arith.constant 1.000000e+00 : f32
    %318 = vector.broadcast %cst_117 : f32 to vector<8x128xf32>
    %319 = arith.addf %318, %317 : vector<8x128xf32>
    %320 = arith.divf %318, %319 : vector<8x128xf32>
    %321 = vector.extract_strided_slice %308 {offsets = [0, 256], sizes = [8, 128], strides = [1, 1]} : vector<8x512xf32> to vector<8x128xf32>
    %322 = math.tanh %321 : vector<8x128xf32>
    %323 = vector.extract_strided_slice %308 {offsets = [0, 384], sizes = [8, 128], strides = [1, 1]} : vector<8x512xf32> to vector<8x128xf32>
    %324 = arith.negf %323 : vector<8x128xf32>
    %325 = math.exp %324 : vector<8x128xf32>
    %cst_118 = arith.constant 1.000000e+00 : f32
    %326 = vector.broadcast %cst_118 : f32 to vector<8x128xf32>
    %327 = arith.addf %326, %325 : vector<8x128xf32>
    %328 = arith.divf %326, %327 : vector<8x128xf32>
    %329 = arith.mulf %320, %275 : vector<8x128xf32>
    %330 = arith.mulf %314, %322 : vector<8x128xf32>
    %331 = arith.addf %329, %330 : vector<8x128xf32>
    %332 = math.tanh %331 : vector<8x128xf32>
    %333 = arith.mulf %328, %332 : vector<8x128xf32>
    %c40_119 = arith.constant 40 : index
    %c0_120 = arith.constant 0 : index
    %334 = vector.load %arg12[%c40_119, %c0_120] : memref<64x1024xf32, #tpu.memory_space<vmem>>, vector<8x512xf32>
    %c16_121 = arith.constant 16 : index
    %c512_122 = arith.constant 512 : index
    %335 = vector.load %arg12[%c16_121, %c512_122] : memref<64x1024xf32, #tpu.memory_space<vmem>>, vector<8x512xf32>
    %cst_123 = arith.constant dense<0.000000e+00> : vector<8x512xf32>
    %336 = tpu.matmul %306, %51, %cst_123 {dimension_numbers = #tpu.dot_dimension_numbers<[1], [0], [0], [1], [0, 0, 1, 1], [], []>} : vector<8x128xf32>, vector<128x512xf32>, vector<8x512xf32> -> vector<8x512xf32>
    %337 = arith.addf %334, %336 : vector<8x512xf32>
    %338 = vector.extract_strided_slice %337 {offsets = [0, 0], sizes = [8, 128], strides = [1, 1]} : vector<8x512xf32> to vector<8x128xf32>
    %339 = arith.negf %338 : vector<8x128xf32>
    %340 = math.exp %339 : vector<8x128xf32>
    %cst_124 = arith.constant 1.000000e+00 : f32
    %341 = vector.broadcast %cst_124 : f32 to vector<8x128xf32>
    %342 = arith.addf %341, %340 : vector<8x128xf32>
    %343 = arith.divf %341, %342 : vector<8x128xf32>
    %344 = vector.extract_strided_slice %337 {offsets = [0, 128], sizes = [8, 128], strides = [1, 1]} : vector<8x512xf32> to vector<8x128xf32>
    %345 = arith.negf %344 : vector<8x128xf32>
    %346 = math.exp %345 : vector<8x128xf32>
    %cst_125 = arith.constant 1.000000e+00 : f32
    %347 = vector.broadcast %cst_125 : f32 to vector<8x128xf32>
    %348 = arith.addf %347, %346 : vector<8x128xf32>
    %349 = arith.divf %347, %348 : vector<8x128xf32>
    %350 = vector.extract_strided_slice %337 {offsets = [0, 256], sizes = [8, 128], strides = [1, 1]} : vector<8x512xf32> to vector<8x128xf32>
    %351 = math.tanh %350 : vector<8x128xf32>
    %352 = vector.extract_strided_slice %337 {offsets = [0, 384], sizes = [8, 128], strides = [1, 1]} : vector<8x512xf32> to vector<8x128xf32>
    %353 = arith.negf %352 : vector<8x128xf32>
    %354 = math.exp %353 : vector<8x128xf32>
    %cst_126 = arith.constant 1.000000e+00 : f32
    %355 = vector.broadcast %cst_126 : f32 to vector<8x128xf32>
    %356 = arith.addf %355, %354 : vector<8x128xf32>
    %357 = arith.divf %355, %356 : vector<8x128xf32>
    %358 = arith.mulf %349, %304 : vector<8x128xf32>
    %359 = arith.mulf %343, %351 : vector<8x128xf32>
    %360 = arith.addf %358, %359 : vector<8x128xf32>
    %361 = math.tanh %360 : vector<8x128xf32>
    %362 = arith.mulf %357, %361 : vector<8x128xf32>
    %cst_127 = arith.constant dense<0.000000e+00> : vector<8x512xf32>
    %363 = tpu.matmul %333, %52, %cst_127 {dimension_numbers = #tpu.dot_dimension_numbers<[1], [0], [0], [1], [0, 0, 1, 1], [], []>} : vector<8x128xf32>, vector<128x512xf32>, vector<8x512xf32> -> vector<8x512xf32>
    %364 = arith.addf %335, %363 : vector<8x512xf32>
    %365 = vector.extract_strided_slice %364 {offsets = [0, 0], sizes = [8, 128], strides = [1, 1]} : vector<8x512xf32> to vector<8x128xf32>
    %366 = arith.negf %365 : vector<8x128xf32>
    %367 = math.exp %366 : vector<8x128xf32>
    %cst_128 = arith.constant 1.000000e+00 : f32
    %368 = vector.broadcast %cst_128 : f32 to vector<8x128xf32>
    %369 = arith.addf %368, %367 : vector<8x128xf32>
    %370 = arith.divf %368, %369 : vector<8x128xf32>
    %371 = vector.extract_strided_slice %364 {offsets = [0, 128], sizes = [8, 128], strides = [1, 1]} : vector<8x512xf32> to vector<8x128xf32>
    %372 = arith.negf %371 : vector<8x128xf32>
    %373 = math.exp %372 : vector<8x128xf32>
    %cst_129 = arith.constant 1.000000e+00 : f32
    %374 = vector.broadcast %cst_129 : f32 to vector<8x128xf32>
    %375 = arith.addf %374, %373 : vector<8x128xf32>
    %376 = arith.divf %374, %375 : vector<8x128xf32>
    %377 = vector.extract_strided_slice %364 {offsets = [0, 256], sizes = [8, 128], strides = [1, 1]} : vector<8x512xf32> to vector<8x128xf32>
    %378 = math.tanh %377 : vector<8x128xf32>
    %379 = vector.extract_strided_slice %364 {offsets = [0, 384], sizes = [8, 128], strides = [1, 1]} : vector<8x512xf32> to vector<8x128xf32>
    %380 = arith.negf %379 : vector<8x128xf32>
    %381 = math.exp %380 : vector<8x128xf32>
    %cst_130 = arith.constant 1.000000e+00 : f32
    %382 = vector.broadcast %cst_130 : f32 to vector<8x128xf32>
    %383 = arith.addf %382, %381 : vector<8x128xf32>
    %384 = arith.divf %382, %383 : vector<8x128xf32>
    %385 = arith.mulf %376, %331 : vector<8x128xf32>
    %386 = arith.mulf %370, %378 : vector<8x128xf32>
    %387 = arith.addf %385, %386 : vector<8x128xf32>
    %388 = math.tanh %387 : vector<8x128xf32>
    %389 = arith.mulf %384, %388 : vector<8x128xf32>
    %c48_131 = arith.constant 48 : index
    %c0_132 = arith.constant 0 : index
    %390 = vector.load %arg12[%c48_131, %c0_132] : memref<64x1024xf32, #tpu.memory_space<vmem>>, vector<8x512xf32>
    %c8_133 = arith.constant 8 : index
    %c512_134 = arith.constant 512 : index
    %391 = vector.load %arg12[%c8_133, %c512_134] : memref<64x1024xf32, #tpu.memory_space<vmem>>, vector<8x512xf32>
    %cst_135 = arith.constant dense<0.000000e+00> : vector<8x512xf32>
    %392 = tpu.matmul %362, %51, %cst_135 {dimension_numbers = #tpu.dot_dimension_numbers<[1], [0], [0], [1], [0, 0, 1, 1], [], []>} : vector<8x128xf32>, vector<128x512xf32>, vector<8x512xf32> -> vector<8x512xf32>
    %393 = arith.addf %390, %392 : vector<8x512xf32>
    %394 = vector.extract_strided_slice %393 {offsets = [0, 0], sizes = [8, 128], strides = [1, 1]} : vector<8x512xf32> to vector<8x128xf32>
    %395 = arith.negf %394 : vector<8x128xf32>
    %396 = math.exp %395 : vector<8x128xf32>
    %cst_136 = arith.constant 1.000000e+00 : f32
    %397 = vector.broadcast %cst_136 : f32 to vector<8x128xf32>
    %398 = arith.addf %397, %396 : vector<8x128xf32>
    %399 = arith.divf %397, %398 : vector<8x128xf32>
    %400 = vector.extract_strided_slice %393 {offsets = [0, 128], sizes = [8, 128], strides = [1, 1]} : vector<8x512xf32> to vector<8x128xf32>
    %401 = arith.negf %400 : vector<8x128xf32>
    %402 = math.exp %401 : vector<8x128xf32>
    %cst_137 = arith.constant 1.000000e+00 : f32
    %403 = vector.broadcast %cst_137 : f32 to vector<8x128xf32>
    %404 = arith.addf %403, %402 : vector<8x128xf32>
    %405 = arith.divf %403, %404 : vector<8x128xf32>
    %406 = vector.extract_strided_slice %393 {offsets = [0, 256], sizes = [8, 128], strides = [1, 1]} : vector<8x512xf32> to vector<8x128xf32>
    %407 = math.tanh %406 : vector<8x128xf32>
    %408 = vector.extract_strided_slice %393 {offsets = [0, 384], sizes = [8, 128], strides = [1, 1]} : vector<8x512xf32> to vector<8x128xf32>
    %409 = arith.negf %408 : vector<8x128xf32>
    %410 = math.exp %409 : vector<8x128xf32>
    %cst_138 = arith.constant 1.000000e+00 : f32
    %411 = vector.broadcast %cst_138 : f32 to vector<8x128xf32>
    %412 = arith.addf %411, %410 : vector<8x128xf32>
    %413 = arith.divf %411, %412 : vector<8x128xf32>
    %414 = arith.mulf %405, %360 : vector<8x128xf32>
    %415 = arith.mulf %399, %407 : vector<8x128xf32>
    %416 = arith.addf %414, %415 : vector<8x128xf32>
    %417 = math.tanh %416 : vector<8x128xf32>
    %418 = arith.mulf %413, %417 : vector<8x128xf32>
    %cst_139 = arith.constant dense<0.000000e+00> : vector<8x512xf32>
    %419 = tpu.matmul %389, %52, %cst_139 {dimension_numbers = #tpu.dot_dimension_numbers<[1], [0], [0], [1], [0, 0, 1, 1], [], []>} : vector<8x128xf32>, vector<128x512xf32>, vector<8x512xf32> -> vector<8x512xf32>
    %420 = arith.addf %391, %419 : vector<8x512xf32>
    %421 = vector.extract_strided_slice %420 {offsets = [0, 0], sizes = [8, 128], strides = [1, 1]} : vector<8x512xf32> to vector<8x128xf32>
    %422 = arith.negf %421 : vector<8x128xf32>
    %423 = math.exp %422 : vector<8x128xf32>
    %cst_140 = arith.constant 1.000000e+00 : f32
    %424 = vector.broadcast %cst_140 : f32 to vector<8x128xf32>
    %425 = arith.addf %424, %423 : vector<8x128xf32>
    %426 = arith.divf %424, %425 : vector<8x128xf32>
    %427 = vector.extract_strided_slice %420 {offsets = [0, 128], sizes = [8, 128], strides = [1, 1]} : vector<8x512xf32> to vector<8x128xf32>
    %428 = arith.negf %427 : vector<8x128xf32>
    %429 = math.exp %428 : vector<8x128xf32>
    %cst_141 = arith.constant 1.000000e+00 : f32
    %430 = vector.broadcast %cst_141 : f32 to vector<8x128xf32>
    %431 = arith.addf %430, %429 : vector<8x128xf32>
    %432 = arith.divf %430, %431 : vector<8x128xf32>
    %433 = vector.extract_strided_slice %420 {offsets = [0, 256], sizes = [8, 128], strides = [1, 1]} : vector<8x512xf32> to vector<8x128xf32>
    %434 = math.tanh %433 : vector<8x128xf32>
    %435 = vector.extract_strided_slice %420 {offsets = [0, 384], sizes = [8, 128], strides = [1, 1]} : vector<8x512xf32> to vector<8x128xf32>
    %436 = arith.negf %435 : vector<8x128xf32>
    %437 = math.exp %436 : vector<8x128xf32>
    %cst_142 = arith.constant 1.000000e+00 : f32
    %438 = vector.broadcast %cst_142 : f32 to vector<8x128xf32>
    %439 = arith.addf %438, %437 : vector<8x128xf32>
    %440 = arith.divf %438, %439 : vector<8x128xf32>
    %441 = arith.mulf %432, %387 : vector<8x128xf32>
    %442 = arith.mulf %426, %434 : vector<8x128xf32>
    %443 = arith.addf %441, %442 : vector<8x128xf32>
    %444 = math.tanh %443 : vector<8x128xf32>
    %445 = arith.mulf %440, %444 : vector<8x128xf32>
    %c56_143 = arith.constant 56 : index
    %c0_144 = arith.constant 0 : index
    %446 = vector.load %arg12[%c56_143, %c0_144] : memref<64x1024xf32, #tpu.memory_space<vmem>>, vector<8x512xf32>
    %c0_145 = arith.constant 0 : index
    %c512_146 = arith.constant 512 : index
    %447 = vector.load %arg12[%c0_145, %c512_146] : memref<64x1024xf32, #tpu.memory_space<vmem>>, vector<8x512xf32>
    %cst_147 = arith.constant dense<0.000000e+00> : vector<8x512xf32>
    %448 = tpu.matmul %418, %51, %cst_147 {dimension_numbers = #tpu.dot_dimension_numbers<[1], [0], [0], [1], [0, 0, 1, 1], [], []>} : vector<8x128xf32>, vector<128x512xf32>, vector<8x512xf32> -> vector<8x512xf32>
    %449 = arith.addf %446, %448 : vector<8x512xf32>
    %450 = vector.extract_strided_slice %449 {offsets = [0, 0], sizes = [8, 128], strides = [1, 1]} : vector<8x512xf32> to vector<8x128xf32>
    %451 = arith.negf %450 : vector<8x128xf32>
    %452 = math.exp %451 : vector<8x128xf32>
    %cst_148 = arith.constant 1.000000e+00 : f32
    %453 = vector.broadcast %cst_148 : f32 to vector<8x128xf32>
    %454 = arith.addf %453, %452 : vector<8x128xf32>
    %455 = arith.divf %453, %454 : vector<8x128xf32>
    %456 = vector.extract_strided_slice %449 {offsets = [0, 128], sizes = [8, 128], strides = [1, 1]} : vector<8x512xf32> to vector<8x128xf32>
    %457 = arith.negf %456 : vector<8x128xf32>
    %458 = math.exp %457 : vector<8x128xf32>
    %cst_149 = arith.constant 1.000000e+00 : f32
    %459 = vector.broadcast %cst_149 : f32 to vector<8x128xf32>
    %460 = arith.addf %459, %458 : vector<8x128xf32>
    %461 = arith.divf %459, %460 : vector<8x128xf32>
    %462 = vector.extract_strided_slice %449 {offsets = [0, 256], sizes = [8, 128], strides = [1, 1]} : vector<8x512xf32> to vector<8x128xf32>
    %463 = math.tanh %462 : vector<8x128xf32>
    %464 = vector.extract_strided_slice %449 {offsets = [0, 384], sizes = [8, 128], strides = [1, 1]} : vector<8x512xf32> to vector<8x128xf32>
    %465 = arith.negf %464 : vector<8x128xf32>
    %466 = math.exp %465 : vector<8x128xf32>
    %cst_150 = arith.constant 1.000000e+00 : f32
    %467 = vector.broadcast %cst_150 : f32 to vector<8x128xf32>
    %468 = arith.addf %467, %466 : vector<8x128xf32>
    %469 = arith.divf %467, %468 : vector<8x128xf32>
    %470 = arith.mulf %461, %416 : vector<8x128xf32>
    %471 = arith.mulf %455, %463 : vector<8x128xf32>
    %472 = arith.addf %470, %471 : vector<8x128xf32>
    %473 = math.tanh %472 : vector<8x128xf32>
    %474 = arith.mulf %469, %473 : vector<8x128xf32>
    %cst_151 = arith.constant dense<0.000000e+00> : vector<8x512xf32>
    %475 = tpu.matmul %445, %52, %cst_151 {dimension_numbers = #tpu.dot_dimension_numbers<[1], [0], [0], [1], [0, 0, 1, 1], [], []>} : vector<8x128xf32>, vector<128x512xf32>, vector<8x512xf32> -> vector<8x512xf32>
    %476 = arith.addf %447, %475 : vector<8x512xf32>
    %477 = vector.extract_strided_slice %476 {offsets = [0, 0], sizes = [8, 128], strides = [1, 1]} : vector<8x512xf32> to vector<8x128xf32>
    %478 = arith.negf %477 : vector<8x128xf32>
    %479 = math.exp %478 : vector<8x128xf32>
    %cst_152 = arith.constant 1.000000e+00 : f32
    %480 = vector.broadcast %cst_152 : f32 to vector<8x128xf32>
    %481 = arith.addf %480, %479 : vector<8x128xf32>
    %482 = arith.divf %480, %481 : vector<8x128xf32>
    %483 = vector.extract_strided_slice %476 {offsets = [0, 128], sizes = [8, 128], strides = [1, 1]} : vector<8x512xf32> to vector<8x128xf32>
    %484 = arith.negf %483 : vector<8x128xf32>
    %485 = math.exp %484 : vector<8x128xf32>
    %cst_153 = arith.constant 1.000000e+00 : f32
    %486 = vector.broadcast %cst_153 : f32 to vector<8x128xf32>
    %487 = arith.addf %486, %485 : vector<8x128xf32>
    %488 = arith.divf %486, %487 : vector<8x128xf32>
    %489 = vector.extract_strided_slice %476 {offsets = [0, 256], sizes = [8, 128], strides = [1, 1]} : vector<8x512xf32> to vector<8x128xf32>
    %490 = math.tanh %489 : vector<8x128xf32>
    %491 = vector.extract_strided_slice %476 {offsets = [0, 384], sizes = [8, 128], strides = [1, 1]} : vector<8x512xf32> to vector<8x128xf32>
    %492 = arith.negf %491 : vector<8x128xf32>
    %493 = math.exp %492 : vector<8x128xf32>
    %cst_154 = arith.constant 1.000000e+00 : f32
    %494 = vector.broadcast %cst_154 : f32 to vector<8x128xf32>
    %495 = arith.addf %494, %493 : vector<8x128xf32>
    %496 = arith.divf %494, %495 : vector<8x128xf32>
    %497 = arith.mulf %488, %443 : vector<8x128xf32>
    %498 = arith.mulf %482, %490 : vector<8x128xf32>
    %499 = arith.addf %497, %498 : vector<8x128xf32>
    %500 = math.tanh %499 : vector<8x128xf32>
    %501 = arith.mulf %496, %500 : vector<8x128xf32>
    %502 = tpu.concatenate %474, %501 in 1 : vector<8x128xf32>, vector<8x128xf32> -> vector<8x256xf32>
    %c0_155 = arith.constant 0 : index
    %c0_156 = arith.constant 0 : index
    %503 = vector.load %arg8[%c0_155, %c0_156] : memref<256x128xf32, #tpu.memory_space<vmem>>, vector<256x128xf32>
    %cst_157 = arith.constant dense<0.000000e+00> : vector<8x128xf32>
    %504 = tpu.matmul %502, %503, %cst_157 {dimension_numbers = #tpu.dot_dimension_numbers<[1], [0], [0], [1], [0, 0, 1, 1], [], []>} : vector<8x256xf32>, vector<256x128xf32>, vector<8x128xf32> -> vector<8x128xf32>
    %c0_158 = arith.constant 0 : index
    %c0_159 = arith.constant 0 : index
    %505 = vector.load %arg9[%c0_158, %c0_159] : memref<1x128xf32, #tpu.memory_space<vmem>>, vector<1x128xf32>
    %506 = vector.broadcast %505 : vector<1x128xf32> to vector<8x128xf32>
    %507 = arith.addf %504, %506 : vector<8x128xf32>
    %c0_160 = arith.constant 0 : index
    %c0_161 = arith.constant 0 : index
    %508 = vector.load %arg10[%c0_160, %c0_161] : memref<8x128xf32, #tpu.memory_space<vmem>>, vector<8x128xf32>
    tpu.vector_store %arg10[%c0_160, %c0_161], %507 {strides = array<i32>} : memref<8x128xf32, #tpu.memory_space<vmem>>, vector<8x128xf32>,
    return
  }
}

</mosaic_0001>

<bundles_post_ra>
// kernel: iitnet_forward.1
= control target key start
LH: loop header
LB: loop body
LE: loop exit
PB: predicated region body
PF: predicated region fallthrough
CT: control target
= control target key end

     0   :  { %15 = vsyncpa [#allocation5], 0  ;;  %s6968_s0 = inlined_call_operand.hbm [shape: f32[16,64], index: 0, kind: input, shape index: {}]   ;;  %s6969_s1 = inlined_call_operand.hbm [shape: f32[16,128], index: 1, kind: input, shape index: {}]   ;;  %s6970_s2 = inlined_call_operand.hbm [shape: f32[64,128], index: 2, kind: input, shape index: {}]   ;;  %s6971_s3 = inlined_call_operand.vmem [shape: f32[1,128], index: 3, kind: input, shape index: {}]   ;;  %s6972_s4 = inlined_call_operand.hbm [shape: f32[256,1024], index: 4, kind: input, shape index: {}]   ;;  %s6973_s5 = inlined_call_operand.vmem [shape: f32[1,1024], index: 5, kind: input, shape index: {}]   ;;  %s6974_s6 = inlined_call_operand.hbm [shape: f32[128,512], index: 6, kind: input, shape index: {}]   ;;  %s6975_s7 = inlined_call_operand.hbm [shape: f32[128,512], index: 7, kind: input, shape index: {}]   ;;  %s6976_s8 = inlined_call_operand.hbm [shape: f32[256,128], index: 8, kind: input, shape index: {}]   ;;  %s6977_s9 = inlined_call_operand.vmem [shape: f32[1,128], index: 9, kind: input, shape index: {}]   ;;  %s6978_s10 = inlined_call_operand.vmem [shape: f32[8,128], index: 10, kind: output, shape index: {}]  }
   0x1   :  { %16 = vsyncpa [#allocation7], 0 }
   0x2   :  { %17 = vsyncpa [#allocation10], 0 }
   0x3   :  { %18 = vsyncpa [#allocation13], 0  ;;  %s5938_s13 = smov [#allocation6]   ;;  %s5939_s15 = smov [#allocation9]  }
   0x4   :  { %s36_s14 = sshll.u32 %s5938_s13, 4  ;;  %s62_s16 = sshll.u32 %s5939_s15, 4  ;;  %s37_s14 = int_to_ptr.vmem [resolvable:$true] %s36_s14  ;;  %s6007_s16 = int_to_ptr.vmem [resolvable:$true] %s62_s16 }
   0x5   :  { %s5776_s19 = scalar_lea.hbm %s6969_s1, 256 }
   0x6   :  { %p5777_p0 = scmp.ne.s32.totalorder %s6969_s1, %s5776_s19  ;;  %p5780_p1 = scmp.lt.u32.totalorder %s5776_s19, %s6969_s1 }
   0x8   :  { %p5782_p2 = pnand %p5780_p1, %p5777_p0 }
   0xa   :  { %5785 = shalt.err (!%p5782_p2)
}
   0xb   :  { %s5786_s24 = scalar_lea.vmem %s37_s14, 256  ;;  %p5791_p4 = scmp.lt.s32.totalorder %s37_s14, %s37_s14 }
   0xc   :  { %p5787_p3 = scmp.ne.s32.totalorder %s37_s14, %s5786_s24  ;;  %p5792_p5 = scmp.lt.s32.totalorder %s5786_s24, %s5786_s24 }
   0xe   :  { %p5793_p6 = por %p5792_p5, %p5791_p4 }
  0x10   :  { %p5794_p7 = pnand %p5793_p6, %p5787_p3 }
  0x12   :  { %5797 = shalt.err (!%p5794_p7)
}
  0x13   :  { %s5940_s25 = smov 128   ;;  %s5941_s26 = smov 8  }
  0x14   :  { %42 = dma.hbm_to_vmem [thread:$0]  %s6969_s1, 256, %s37_s14, [#allocation7], %s5940_s25, %s5940_s25, %s5941_s26  }
  0x15   :  { %s5798_s11 = scalar_lea.hbm %s6972_s4, 32768 }
  0x16   :  { %p5799_p8 = scmp.ne.s32.totalorder %s6972_s4, %s5798_s11  ;;  %p5802_p9 = scmp.lt.u32.totalorder %s5798_s11, %s6972_s4 }
  0x18   :  { %p5804_p10 = pnand %p5802_p9, %p5799_p8 }
  0x1a   :  { %5807 = shalt.err (!%p5804_p10)
}
  0x1b   :  { %s5808_s18 = scalar_lea.vmem %s6007_s16, 32768  ;;  %p5813_p12 = scmp.lt.s32.totalorder %s6007_s16, %s6007_s16 }
  0x1c   :  { %p5809_p11 = scmp.ne.s32.totalorder %s6007_s16, %s5808_s18  ;;  %p5814_p13 = scmp.lt.s32.totalorder %s5808_s18, %s5808_s18 }
  0x1e   :  { %p5815_p0 = por %p5814_p13, %p5813_p12 }
  0x20   :  { %p5816_p1 = pnand %p5815_p0, %p5809_p11 }
  0x22   :  { %5819 = shalt.err (!%p5816_p1)
}
  0x23   :  { %s5942_s1 = smov 1024   ;;  %s5943_s14 = smov 64  }
  0x24   :  { %68 = dma.hbm_to_vmem [thread:$0]  %s6972_s4, 32768, %s6007_s16, [#allocation10], %s5942_s1, %s5942_s1, %s5943_s14  }
  0x25   :  { %s5944_s21 = smov [#allocation12]   ;;  %s5945_s23 = smov [#allocation4]  }
  0x26   :  { %s88_s22 = sshll.u32 %s5944_s21, 4  ;;  %s24_s24 = sshll.u32 %s5945_s23, 4  ;;  %s89_s22 = int_to_ptr.vmem [resolvable:$true] %s88_s22  ;;  %s6041_s24 = int_to_ptr.vmem [resolvable:$true] %s24_s24 }
  0x27   :  { %s5820_s29 = scalar_lea.hbm %s6975_s7, 8192 }
  0x28   :  { %p5821_p2 = scmp.ne.s32.totalorder %s6975_s7, %s5820_s29  ;;  %p5824_p3 = scmp.lt.u32.totalorder %s5820_s29, %s6975_s7 }
  0x2a   :  { %p5826_p4 = pnand %p5824_p3, %p5821_p2 }
  0x2c   :  { %5829 = shalt.err (!%p5826_p4)
}
  0x2d   :  { %s5830_s4 = scalar_lea.vmem %s89_s22, 8192  ;;  %p5835_p6 = scmp.lt.s32.totalorder %s89_s22, %s89_s22 }
  0x2e   :  { %p5831_p5 = scmp.ne.s32.totalorder %s89_s22, %s5830_s4  ;;  %p5836_p7 = scmp.lt.s32.totalorder %s5830_s4, %s5830_s4 }
  0x30   :  { %p5837_p8 = por %p5836_p7, %p5835_p6 }
  0x32   :  { %p5838_p9 = pnand %p5837_p8, %p5831_p5 }
  0x34   :  { %5841 = shalt.err (!%p5838_p9)
}
  0x35   :  { %s5946_s16 = smov 512   ;;  %s5947_s15 = smov 32  }
  0x36   :  { %94 = dma.hbm_to_vmem [thread:$0]  %s6975_s7, 8192, %s89_s22, [#allocation13], %s5946_s16, %s5946_s16, %s5947_s15  }
  0x37   :  { %s5842_s19 = scalar_lea.hbm %s6968_s0, 256 }
  0x38   :  { %p5843_p10 = scmp.ne.s32.totalorder %s6968_s0, %s5842_s19  ;;  %p5846_p11 = scmp.lt.u32.totalorder %s5842_s19, %s6968_s0 }
  0x3a   :  { %p5848_p12 = pnand %p5846_p11, %p5843_p10 }
  0x3c   :  { %5851 = shalt.err (!%p5848_p12)
}
  0x3d   :  { %s5852_s28 = scalar_lea.vmem %s6041_s24, 256  ;;  %p5857_p0 = scmp.lt.s32.totalorder %s6041_s24, %s6041_s24 }
  0x3e   :  { %p5853_p13 = scmp.ne.s32.totalorder %s6041_s24, %s5852_s28  ;;  %p5858_p1 = scmp.lt.s32.totalorder %s5852_s28, %s5852_s28 }
  0x40   :  { %p5859_p2 = por %p5858_p1, %p5857_p0 }
  0x42   :  { %p5860_p3 = pnand %p5859_p2, %p5853_p13 }
  0x44   :  { %5863 = shalt.err (!%p5860_p3)
}
  0x45   :  { %30 = dma.hbm_to_vmem [thread:$0]  %s6968_s0, 256, %s6041_s24, [#allocation5], %s5940_s25, %s5940_s25, %s5941_s26  }
  0x46   :  { %s5948_s29 = smov [#allocation8]   ;;  %s5949_s11 = smov [#allocation11]  }
  0x47   :  { %s48_s30 = sshll.u32 %s5948_s29, 4  ;;  %s76_s12 = sshll.u32 %s5949_s11, 4  ;;  %s49_s30 = int_to_ptr.vmem [resolvable:$true] %s48_s30  ;;  %s6078_s12 = int_to_ptr.vmem [resolvable:$true] %s76_s12 }
  0x48   :  { %s5864_s17 = scalar_lea.hbm %s6970_s2, 1024 }
  0x49   :  { %p5865_p4 = scmp.ne.s32.totalorder %s6970_s2, %s5864_s17  ;;  %p5868_p5 = scmp.lt.u32.totalorder %s5864_s17, %s6970_s2 }
  0x4b   :  { %p5870_p6 = pnand %p5868_p5, %p5865_p4 }
  0x4d   :  { %5873 = shalt.err (!%p5870_p6)
}
  0x4e   :  { %s5874_s0 = scalar_lea.vmem %s49_s30, 1024  ;;  %p5879_p8 = scmp.lt.s32.totalorder %s49_s30, %s49_s30 }
  0x4f   :  { %p5875_p7 = scmp.ne.s32.totalorder %s49_s30, %s5874_s0  ;;  %p5880_p9 = scmp.lt.s32.totalorder %s5874_s0, %s5874_s0 }
  0x51   :  { %p5881_p10 = por %p5880_p9, %p5879_p8 }
  0x53   :  { %p5882_p11 = pnand %p5881_p10, %p5875_p7 }
  0x55   :  { %5885 = shalt.err (!%p5882_p11)
}
  0x56   :  { %54 = dma.hbm_to_vmem [thread:$0]  %s6970_s2, 1024, %s49_s30, [#allocation7], %s5940_s25, %s5940_s25, %s5941_s26  }
  0x57   :  { %s5886_s27 = scalar_lea.hbm %s6974_s6, 8192 }
  0x58   :  { %p5887_p12 = scmp.ne.s32.totalorder %s6974_s6, %s5886_s27  ;;  %p5890_p13 = scmp.lt.u32.totalorder %s5886_s27, %s6974_s6 }
  0x5a   :  { %p5892_p0 = pnand %p5890_p13, %p5887_p12 }
  0x5c   :  { %5895 = shalt.err (!%p5892_p0)
}
  0x5d   :  { %s5896_s11 = scalar_lea.vmem %s6078_s12, 8192  ;;  %p5901_p2 = scmp.lt.s32.totalorder %s6078_s12, %s6078_s12 }
  0x5e   :  { %p5897_p1 = scmp.ne.s32.totalorder %s6078_s12, %s5896_s11  ;;  %p5902_p3 = scmp.lt.s32.totalorder %s5896_s11, %s5896_s11 }
  0x60   :  { %p5903_p4 = por %p5902_p3, %p5901_p2 }
  0x62   :  { %p5904_p5 = pnand %p5903_p4, %p5897_p1 }
  0x64   :  { %5907 = shalt.err (!%p5904_p5)
}
  0x65   :  { %82 = dma.hbm_to_vmem [thread:$0]  %s6974_s6, 8192, %s6078_s12, [#allocation10], %s5946_s16, %s5946_s16, %s5947_s15  }
  0x66   :  { %s5950_s13 = smov [#allocation14]   ;;  %s5908_s1 = scalar_lea.hbm %s6976_s8, 4096 }
  0x67   :  { %s100_s4 = sshll.u32 %s5950_s13, 4  ;;  %p5909_p6 = scmp.ne.s32.totalorder %s6976_s8, %s5908_s1  ;;  %s101_s4 = int_to_ptr.vmem [resolvable:$true] %s100_s4 }
  0x68   :  { %p5912_p7 = scmp.lt.u32.totalorder %s5908_s1, %s6976_s8 }
  0x6a   :  { %p5914_p8 = pnand %p5912_p7, %p5909_p6 }
  0x6c   :  { %5917 = shalt.err (!%p5914_p8)
}
  0x6d   :  { %s5918_s20 = scalar_lea.vmem %s101_s4, 4096  ;;  %p5923_p10 = scmp.lt.s32.totalorder %s101_s4, %s101_s4 }
  0x6e   :  { %p5919_p9 = scmp.ne.s32.totalorder %s101_s4, %s5918_s20  ;;  %p5924_p11 = scmp.lt.s32.totalorder %s5918_s20, %s5918_s20 }
  0x70   :  { %p5925_p12 = por %p5924_p11, %p5923_p10 }
  0x72   :  { %p5926_p13 = pnand %p5925_p12, %p5919_p9 }
  0x74   :  { %5929 = shalt.err (!%p5926_p13)
}
  0x75   :  { %106 = dma.hbm_to_vmem [thread:$0]  %s6976_s8, 4096, %s101_s4, [#allocation13], %s5940_s25, %s5940_s25, %s5941_s26  }
  0x76   :  { %5930 = dma.done.wait [#allocation5], 256  }
  0x77   :  { %5931 = vsyncadd [#allocation5], 4294967040 }
  0x78   :  { %5932 = dma.done.wait [#allocation7], 1280  }
  0x79   :  { %5933 = vsyncadd [#allocation7], 4294966016 }
  0x7a   :  { %5934 = dma.done.wait [#allocation10], 40960  }
  0x7b   :  { %5935 = vsyncadd [#allocation10], 4294926336 }
  0x7c   :  { %5936 = dma.done.wait [#allocation13], 12288  }
  0x7d   :  { %5937 = vsyncadd [#allocation13], 4294955008  ;;  %v134_v0 = vld [vmem:[#allocation8] sm:$0xff]  ;;  %v135_v1 = vld [vmem:[#allocation8 + $0x8] sm:$0xff]  ;;  %vm149_vm0 = vcmask 523264  }
  0x7e   :  { %v136_v2 = vld [vmem:[#allocation8 + $0x10] sm:$0xff]  ;;  %v4177_v3 = vpack.c.bf16 %v135_v1, %v134_v0  ;;  %v137_v4 = vld [vmem:[#allocation8 + $0x18] sm:$0xff]  ;;  %v138_v6 = vld [vmem:[#allocation8 + $0x20] sm:$0xff] }
  0x7f   :  { %v4181_v5 = vpack.c.bf16 %v137_v4, %v136_v2  ;;  %v139_v7 = vld [vmem:[#allocation8 + $0x28] sm:$0xff]  ;;  %v132_v8 = vld [vmem:[#allocation4] sm:$0xff]  ;;  %v140_v14 = vld [vmem:[#allocation8 + $0x30] sm:$0xff] }
  0x80   :  { %4178 = vmatprep.subr.bf16.mxu0 %v4177_v3  ;;  %4174 = vmatprep.mubr.msk.f32.mxu0 %vm149_vm0, %v132_v8  ;;  %v236_v9 = vld [vmem:[#allocation9 + $0x8] sm:$0xff]  ;;  %v235_v12 = vld [vmem:[#allocation9] sm:$0xff]  ;;  %v4185_v13 = vpack.c.bf16 %v139_v7, %v138_v6  ;;  %v141_v16 = vld [vmem:[#allocation8 + $0x38] sm:$0xff] }
  0x81   :  { %v244_v10 = vld [vmem:[#allocation9 + $0x48] sm:$0xff]  ;;  %4180 = vmatpush3.bf16.msra.mxu0 %v4177_v3  ;;  %v243_v15 = vld [vmem:[#allocation9 + $0x40] sm:$0xff]  ;;  %v4189_v25 = vpack.c.bf16 %v141_v16, %v140_v14  ;;  %v238_v26 = vld [vmem:[#allocation9 + $0x18] sm:$0xff] }
  0x82   :  { %v4193_v11 = vpack.c.bf16 %v244_v10, %v236_v9  ;;  %4182 = vmatprep.subr.bf16.mxu0 %v4181_v5  ;;  %v4195_v17 = vpack.c.bf16 %v243_v15, %v235_v12  ;;  %v252_v18 = vld [vmem:[#allocation9 + $0x88] sm:$0xff]  ;;  %v251_v21 = vld [vmem:[#allocation9 + $0x80] sm:$0xff]  ;;  %v246_v28 = vld [vmem:[#allocation9 + $0x58] sm:$0xff] }
  0x83   :  { %v260_v19 = vld [vmem:[#allocation9 + $0xc8] sm:$0xff]  ;;  %v259_v22 = vld [vmem:[#allocation9 + $0xc0] sm:$0xff]  ;;  %v237_v34 = vld [vmem:[#allocation9 + $0x10] sm:$0xff]  ;;  %v4257_v37 = vpack.c.bf16 %v246_v28, %v238_v26 }
  0x84   :  { %4194 = vmatprep.subr.bf16.mxu1 %v4193_v11  ;;  %v4197_v20 = vpack.c.bf16 %v260_v19, %v252_v18  ;;  %v4199_v23 = vpack.c.bf16 %v259_v22, %v251_v21  ;;  %v268_v24 = vld [vmem:[#allocation9 + $0x108] sm:$0xff]  ;;  %v267_v30 = vld [vmem:[#allocation9 + $0x100] sm:$0xff]  ;;  %v245_v35 = vld [vmem:[#allocation9 + $0x50] sm:$0xff] }
  0x85   :  { %4184 = vmatpush3.bf16.msra.mxu0 %v4181_v5  ;;  %4196 = vmatpush1.bf16.msra.mxu1 %v4195_v17  ;;  %v276_v27 = vld [vmem:[#allocation9 + $0x148] sm:$0xff]  ;;  %v275_v31 = vld [vmem:[#allocation9 + $0x140] sm:$0xff]  ;;  %v254_v38 = vld [vmem:[#allocation9 + $0x98] sm:$0xff]  ;;  %v4259_v46 = vpack.c.bf16 %v245_v35, %v237_v34 }
  0x86   :  { %4186 = vmatprep.subr.bf16.mxu0 %v4185_v13  ;;  %4198 = vmatprep.subr.bf16.mxu1 %v4197_v20  ;;  %v4201_v29 = vpack.c.bf16 %v276_v27, %v268_v24  ;;  %v284_v32 = vld [vmem:[#allocation9 + $0x188] sm:$0xff]  ;;  %v4203_v36 = vpack.c.bf16 %v275_v31, %v267_v30  ;;  %v283_v40 = vld [vmem:[#allocation9 + $0x180] sm:$0xff]  ;;  %v262_v42 = vld [vmem:[#allocation9 + $0xd8] sm:$0xff] }
  0x87   :  { %v292_v33 = vld [vmem:[#allocation9 + $0x1c8] sm:$0xff]  ;;  %v291_v41 = vld [vmem:[#allocation9 + $0x1c0] sm:$0xff]  ;;  %v253_v47 = vld [vmem:[#allocation9 + $0x90] sm:$0xff]  ;;  %v4261_v50 = vpack.c.bf16 %v262_v42, %v254_v38 }
  0x88   :  { %v4205_v39 = vpack.c.bf16 %v292_v33, %v284_v32  ;;  %v300_v43 = vld [vmem:[#allocation9 + $0x208] sm:$0xff]  ;;  %v261_v48 = vld [vmem:[#allocation9 + $0xd0] sm:$0xff]  ;;  %v4207_v49 = vpack.c.bf16 %v291_v41, %v283_v40  ;;  %v270_v51 = vld [vmem:[#allocation9 + $0x118] sm:$0xff] }
  0x89   :  { %4188 = vmatpush3.bf16.msra.mxu0 %v4185_v13  ;;  %4200 = vmatpush1.bf16.msra.mxu1 %v4199_v23  ;;  %v308_v44 = vld [vmem:[#allocation9 + $0x248] sm:$0xff]  ;;  %v299_v53 = vld [vmem:[#allocation9 + $0x200] sm:$0xff]  ;;  %v278_v55 = vld [vmem:[#allocation9 + $0x158] sm:$0xff]  ;;  %v4263_v58 = vpack.c.bf16 %v261_v48, %v253_v47 }
  0x8a   :  { %4190 = vmatprep.subr.bf16.mxu0 %v4189_v25  ;;  %4202 = vmatprep.subr.bf16.mxu1 %v4201_v29  ;;  %v133_v45 = vld [vmem:[#allocation4 + $0x8] sm:$0xff]  ;;  %v4209_v52 = vpack.c.bf16 %v308_v44, %v300_v43  ;;  %v307_v54 = vld [vmem:[#allocation9 + $0x240] sm:$0xff]  ;;  %v269_v59 = vld [vmem:[#allocation9 + $0x110] sm:$0xff]  ;;  %v4265_v62 = vpack.c.bf16 %v278_v55, %v270_v51 }
  0x8b   :  { %v316_v56 = vld [vmem:[#allocation9 + $0x288] sm:$0xff]  ;;  %v277_v60 = vld [vmem:[#allocation9 + $0x150] sm:$0xff]  ;;  %v4211_v61 = vpack.c.bf16 %v307_v54, %v299_v53  ;;  %v286_v63 = vld [vmem:[#allocation9 + $0x198] sm:$0xff] }
  0x8c   :  { %v324_v57 = vld [vmem:[#allocation9 + $0x2c8] sm:$0xff]  ;;  %v315_v1 = vld [vmem:[#allocation9 + $0x280] sm:$0xff]  ;;  %v294_v3 = vld [vmem:[#allocation9 + $0x1d8] sm:$0xff]  ;;  %v4267_v6 = vpack.c.bf16 %v277_v60, %v269_v59 }
  0x8d   :  { %4192 = vmatpush3.bf16.msra.mxu0 %v4189_v25  ;;  %4204 = vmatpush1.bf16.msra.mxu1 %v4203_v36  ;;  %v4213_v0 = vpack.c.bf16 %v324_v57, %v316_v56  ;;  %v323_v2 = vld [vmem:[#allocation9 + $0x2c0] sm:$0xff]  ;;  %v332_v4 = vld [vmem:[#allocation9 + $0x308] sm:$0xff]  ;;  %v285_v7 = vld [vmem:[#allocation9 + $0x190] sm:$0xff]  ;;  %v4269_v10 = vpack.c.bf16 %v294_v3, %v286_v63 }
  0x8e   :  { %4258 = vmatprep.subr.bf16.mxu0 %v4257_v37  ;;  %4206 = vmatprep.subr.bf16.mxu1 %v4205_v39  ;;  %v340_v5 = vld [vmem:[#allocation9 + $0x348] sm:$0xff]  ;;  %v293_v8 = vld [vmem:[#allocation9 + $0x1d0] sm:$0xff]  ;;  %v4215_v9 = vpack.c.bf16 %v323_v2, %v315_v1  ;;  %v302_v11 = vld [vmem:[#allocation9 + $0x218] sm:$0xff] }
  0x8f   :  { %v4217_v12 = vpack.c.bf16 %v340_v5, %v332_v4  ;;  %v331_v13 = vld [vmem:[#allocation9 + $0x300] sm:$0xff]  ;;  %v310_v15 = vld [vmem:[#allocation9 + $0x258] sm:$0xff]  ;;  %v348_v16 = vld [vmem:[#allocation9 + $0x388] sm:$0xff]  ;;  %v4271_v18 = vpack.c.bf16 %v293_v8, %v285_v7 }
  0x90   :  { %4175 = vmatmul.mubr.msk.f32.vlgmr.msra.gmra.mrb[0].mxu0 %vm149_vm0, %v133_v45  ;;  %v339_v14 = vld [vmem:[#allocation9 + $0x340] sm:$0xff]  ;;  %v356_v17 = vld [vmem:[#allocation9 + $0x3c8] sm:$0xff]  ;;  %v301_v19 = vld [vmem:[#allocation9 + $0x210] sm:$0xff]  ;;  %v4273_v22 = vpack.c.bf16 %v310_v15, %v302_v11 }
  0x91   :  { %4260 = vmatpush1.bf16.msra.mxu0 %v4259_v46  ;;  %4208 = vmatpush1.bf16.msra.mxu1 %v4207_v49  ;;  %v309_v20 = vld [vmem:[#allocation9 + $0x250] sm:$0xff]  ;;  %v4219_v21 = vpack.c.bf16 %v339_v14, %v331_v13  ;;  %v318_v23 = vld [vmem:[#allocation9 + $0x298] sm:$0xff]  ;;  %v4221_v24 = vpack.c.bf16 %v356_v17, %v348_v16  ;;  %v347_v25 = vld [vmem:[#allocation9 + $0x380] sm:$0xff] }
  0x92   :  { %4262 = vmatprep.subr.bf16.mxu0 %v4261_v50  ;;  %4210 = vmatprep.subr.bf16.mxu1 %v4209_v52  ;;  %v355_v26 = vld [vmem:[#allocation9 + $0x3c0] sm:$0xff]  ;;  %v326_v27 = vld [vmem:[#allocation9 + $0x2d8] sm:$0xff]  ;;  %v364_v28 = vld [vmem:[#allocation9 + $0x408] sm:$0xff]  ;;  %v4275_v30 = vpack.c.bf16 %v309_v20, %v301_v19 }
  0x93   :  { %v372_v29 = vld [vmem:[#allocation9 + $0x448] sm:$0xff]  ;;  %v317_v31 = vld [vmem:[#allocation9 + $0x290] sm:$0xff]  ;;  %v4223_v33 = vpack.c.bf16 %v355_v26, %v347_v25  ;;  %v4277_v34 = vpack.c.bf16 %v326_v27, %v318_v23  ;;  %v334_v35 = vld [vmem:[#allocation9 + $0x318] sm:$0xff] }
  0x94   :  { %v325_v32 = vld [vmem:[#allocation9 + $0x2d0] sm:$0xff]  ;;  %v4225_v36 = vpack.c.bf16 %v372_v29, %v364_v28  ;;  %v363_v37 = vld [vmem:[#allocation9 + $0x400] sm:$0xff]  ;;  %v342_v39 = vld [vmem:[#allocation9 + $0x358] sm:$0xff] }
  0x95   :  { %4264 = vmatpush1.bf16.msra.mxu0 %v4263_v58  ;;  %4212 = vmatpush1.bf16.msra.mxu1 %v4211_v61  ;;  %v371_v38 = vld [vmem:[#allocation9 + $0x440] sm:$0xff]  ;;  %v380_v40 = vld [vmem:[#allocation9 + $0x488] sm:$0xff]  ;;  %v4279_v42 = vpack.c.bf16 %v325_v32, %v317_v31  ;;  %v333_v43 = vld [vmem:[#allocation9 + $0x310] sm:$0xff]  ;;  %v4281_v46 = vpack.c.bf16 %v342_v39, %v334_v35 }
  0x96   :  { %4266 = vmatprep.subr.bf16.mxu0 %v4265_v62  ;;  %4214 = vmatprep.subr.bf16.mxu1 %v4213_v0  ;;  %v388_v41 = vld [vmem:[#allocation9 + $0x4c8] sm:$0xff]  ;;  %v341_v44 = vld [vmem:[#allocation9 + $0x350] sm:$0xff]  ;;  %v4227_v45 = vpack.c.bf16 %v371_v38, %v363_v37  ;;  %v350_v47 = vld [vmem:[#allocation9 + $0x398] sm:$0xff] }
  0x97   :  { %v4229_v48 = vpack.c.bf16 %v388_v41, %v380_v40  ;;  %v379_v49 = vld [vmem:[#allocation9 + $0x480] sm:$0xff]  ;;  %v358_v51 = vld [vmem:[#allocation9 + $0x3d8] sm:$0xff]  ;;  %v396_v52 = vld [vmem:[#allocation9 + $0x508] sm:$0xff]  ;;  %v4283_v54 = vpack.c.bf16 %v341_v44, %v333_v43 }
  0x98   :  { %v387_v50 = vld [vmem:[#allocation9 + $0x4c0] sm:$0xff]  ;;  %v404_v53 = vld [vmem:[#allocation9 + $0x548] sm:$0xff]  ;;  %v349_v55 = vld [vmem:[#allocation9 + $0x390] sm:$0xff]  ;;  %v4285_v58 = vpack.c.bf16 %v358_v51, %v350_v47 }
  0x99   :  { %4268 = vmatpush1.bf16.msra.mxu0 %v4267_v6  ;;  %4216 = vmatpush1.bf16.msra.mxu1 %v4215_v9  ;;  %v357_v56 = vld [vmem:[#allocation9 + $0x3d0] sm:$0xff]  ;;  %v4231_v57 = vpack.c.bf16 %v387_v50, %v379_v49  ;;  %v366_v59 = vld [vmem:[#allocation9 + $0x418] sm:$0xff]  ;;  %v4233_v60 = vpack.c.bf16 %v404_v53, %v396_v52  ;;  %v395_v61 = vld [vmem:[#allocation9 + $0x500] sm:$0xff] }
  0x9a   :  { %4270 = vmatprep.subr.bf16.mxu0 %v4269_v10  ;;  %4218 = vmatprep.subr.bf16.mxu1 %v4217_v12  ;;  %v403_v62 = vld [vmem:[#allocation9 + $0x540] sm:$0xff]  ;;  %v374_v63 = vld [vmem:[#allocation9 + $0x458] sm:$0xff]  ;;  %v412_v0 = vld [vmem:[#allocation9 + $0x588] sm:$0xff]  ;;  %v4287_v2 = vpack.c.bf16 %v357_v56, %v349_v55 }
  0x9b   :  { %v420_v1 = vld [vmem:[#allocation9 + $0x5c8] sm:$0xff]  ;;  %v365_v3 = vld [vmem:[#allocation9 + $0x410] sm:$0xff]  ;;  %v4235_v5 = vpack.c.bf16 %v403_v62, %v395_v61  ;;  %v4289_v6 = vpack.c.bf16 %v374_v63, %v366_v59  ;;  %v382_v7 = vld [vmem:[#allocation9 + $0x498] sm:$0xff] }
  0x9c   :  { %v373_v4 = vld [vmem:[#allocation9 + $0x450] sm:$0xff]  ;;  %v4237_v8 = vpack.c.bf16 %v420_v1, %v412_v0  ;;  %v411_v9 = vld [vmem:[#allocation9 + $0x580] sm:$0xff]  ;;  %v390_v11 = vld [vmem:[#allocation9 + $0x4d8] sm:$0xff] }
  0x9d   :  { %4272 = vmatpush1.bf16.msra.mxu0 %v4271_v18  ;;  %4220 = vmatpush1.bf16.msra.mxu1 %v4219_v21  ;;  %v419_v10 = vld [vmem:[#allocation9 + $0x5c0] sm:$0xff]  ;;  %v428_v12 = vld [vmem:[#allocation9 + $0x608] sm:$0xff]  ;;  %v4291_v14 = vpack.c.bf16 %v373_v4, %v365_v3  ;;  %v381_v15 = vld [vmem:[#allocation9 + $0x490] sm:$0xff]  ;;  %v4293_v18 = vpack.c.bf16 %v390_v11, %v382_v7 }
  0x9e   :  { %4274 = vmatprep.subr.bf16.mxu0 %v4273_v22  ;;  %4222 = vmatprep.subr.bf16.mxu1 %v4221_v24  ;;  %v436_v13 = vld [vmem:[#allocation9 + $0x648] sm:$0xff]  ;;  %v389_v16 = vld [vmem:[#allocation9 + $0x4d0] sm:$0xff]  ;;  %v4239_v17 = vpack.c.bf16 %v419_v10, %v411_v9  ;;  %v398_v19 = vld [vmem:[#allocation9 + $0x518] sm:$0xff] }
  0x9f   :  { %v4241_v20 = vpack.c.bf16 %v436_v13, %v428_v12  ;;  %v427_v21 = vld [vmem:[#allocation9 + $0x600] sm:$0xff]  ;;  %v406_v23 = vld [vmem:[#allocation9 + $0x558] sm:$0xff]  ;;  %v444_v24 = vld [vmem:[#allocation9 + $0x688] sm:$0xff]  ;;  %v4295_v26 = vpack.c.bf16 %v389_v16, %v381_v15 }
  0xa0   :  { %v435_v22 = vld [vmem:[#allocation9 + $0x640] sm:$0xff]  ;;  %v452_v25 = vld [vmem:[#allocation9 + $0x6c8] sm:$0xff]  ;;  %v397_v27 = vld [vmem:[#allocation9 + $0x510] sm:$0xff] }
  0xa1   :  { %4276 = vmatpush1.bf16.msra.mxu0 %v4275_v30  ;;  %4224 = vmatpush1.bf16.msra.mxu1 %v4223_v33  ;;  %v405_v28 = vld [vmem:[#allocation9 + $0x550] sm:$0xff]  ;;  %v4243_v29 = vpack.c.bf16 %v435_v22, %v427_v21  ;;  %v4297_v30 = vpack.c.bf16 %v406_v23, %v398_v19  ;;  %v414_v31 = vld [vmem:[#allocation9 + $0x598] sm:$0xff]  ;;  %v4245_v32 = vpack.c.bf16 %v452_v25, %v444_v24  ;;  %v443_v33 = vld [vmem:[#allocation9 + $0x680] sm:$0xff]  ;;  %v5951_v21 = vmov 0.0  }
  0xa2   :  { %4278 = vmatprep.subr.bf16.mxu0 %v4277_v34  ;;  %4226 = vmatprep.subr.bf16.mxu1 %v4225_v36  ;;  %v451_v34 = vld [vmem:[#allocation9 + $0x6c0] sm:$0xff]  ;;  %v422_v35 = vld [vmem:[#allocation9 + $0x5d8] sm:$0xff]  ;;  %v460_v36 = vld [vmem:[#allocation9 + $0x708] sm:$0xff]  ;;  %v4299_v38 = vpack.c.bf16 %v405_v28, %v397_v27  ;;  %857 = vst [vmem:[#allocation3] sm:$0xff] %v5951_v21 }
  0xa3   :  { %v468_v37 = vld [vmem:[#allocation9 + $0x748] sm:$0xff]  ;;  %v4247_v39 = vpack.c.bf16 %v451_v34, %v443_v33  ;;  %v4301_v40 = vpack.c.bf16 %v422_v35, %v414_v31  ;;  %v413_v41 = vld [vmem:[#allocation9 + $0x590] sm:$0xff]  ;;  %v430_v44 = vld [vmem:[#allocation9 + $0x618] sm:$0xff]  ;;  %858 = vst [vmem:[#allocation3 + $0x8] sm:$0xff] %v5951_v21 }
  0xa4   :  { %v4249_v43 = vpack.c.bf16 %v468_v37, %v460_v36  ;;  %v437_v49 = vld [vmem:[#allocation9 + $0x650] sm:$0xff]  ;;  %v446_v50 = vld [vmem:[#allocation9 + $0x698] sm:$0xff]  ;;  %v467_v61 = vld [vmem:[#allocation9 + $0x740] sm:$0xff]  ;;  %859 = vst [vmem:[#allocation3 + $0x10] sm:$0xff] %v5951_v21 }
  0xa5   :  { %4280 = vmatpush1.bf16.msra.mxu0 %v4279_v42  ;;  %4228 = vmatpush1.bf16.msra.mxu1 %v4227_v45  ;;  %v421_v42 = vld [vmem:[#allocation9 + $0x5d0] sm:$0xff]  ;;  %v438_v45 = vld [vmem:[#allocation9 + $0x658] sm:$0xff]  ;;  %v484_v3 = vld [vmem:[#allocation9 + $0x7c8] sm:$0xff]  ;;  %860 = vst [vmem:[#allocation3 + $0x18] sm:$0xff] %v5951_v21 }
  0xa6   :  { %4282 = vmatprep.subr.bf16.mxu0 %v4281_v46  ;;  %4230 = vmatprep.subr.bf16.mxu1 %v4229_v48  ;;  %v4303_v46 = vpack.c.bf16 %v421_v42, %v413_v41  ;;  %v4305_v47 = vpack.c.bf16 %v438_v45, %v430_v44  ;;  %v429_v48 = vld [vmem:[#allocation9 + $0x610] sm:$0xff]  ;;  %v454_v51 = vld [vmem:[#allocation9 + $0x6d8] sm:$0xff]  ;;  %v475_v7 = vld [vmem:[#allocation9 + $0x780] sm:$0xff]  ;;  %861 = vst [vmem:[#allocation3 + $0x20] sm:$0xff] %v5951_v21 }
  0xa7   :  { %v4307_v52 = vpack.c.bf16 %v437_v49, %v429_v48  ;;  %v4309_v53 = vpack.c.bf16 %v454_v51, %v446_v50  ;;  %v453_v55 = vld [vmem:[#allocation9 + $0x6d0] sm:$0xff]  ;;  %v462_v56 = vld [vmem:[#allocation9 + $0x718] sm:$0xff]  ;;  %v483_v9 = vld [vmem:[#allocation9 + $0x7c0] sm:$0xff]  ;;  %862 = vst [vmem:[#allocation3 + $0x28] sm:$0xff] %v5951_v21 }
  0xa8   :  { %v461_v62 = vld [vmem:[#allocation9 + $0x710] sm:$0xff]  ;;  %v4255_v12 = vpack.c.bf16 %v483_v9, %v475_v7  ;;  %v248_v15 = vld [vmem:[#allocation9 + $0x68] sm:$0xff]  ;;  %v242_v16 = vld [vmem:[#allocation9 + $0x38] sm:$0xff]  ;;  %863 = vst [vmem:[#allocation3 + $0x30] sm:$0xff] %v5951_v21 }
  0xa9   :  { %4284 = vmatpush1.bf16.msra.mxu0 %v4283_v54  ;;  %4232 = vmatpush1.bf16.msra.mxu1 %v4231_v57  ;;  %v445_v54 = vld [vmem:[#allocation9 + $0x690] sm:$0xff]  ;;  %v470_v57 = vld [vmem:[#allocation9 + $0x758] sm:$0xff]  ;;  %864 = vst [vmem:[#allocation3 + $0x38] sm:$0xff] %v5951_v21  ;;  %865 = vst [vmem:[#allocation3 + $0x40] sm:$0xff] %v5951_v21 }
  0xaa   :  { %4286 = vmatprep.subr.bf16.mxu0 %v4285_v58  ;;  %4234 = vmatprep.subr.bf16.mxu1 %v4233_v60  ;;  %v4311_v58 = vpack.c.bf16 %v453_v55, %v445_v54  ;;  %v4313_v59 = vpack.c.bf16 %v470_v57, %v462_v56  ;;  %v459_v60 = vld [vmem:[#allocation9 + $0x700] sm:$0xff]  ;;  %v469_v0 = vld [vmem:[#allocation9 + $0x750] sm:$0xff]  ;;  %v250_v19 = vld [vmem:[#allocation9 + $0x78] sm:$0xff]  ;;  %866 = vst [vmem:[#allocation3 + $0x48] sm:$0xff] %v5951_v21 }
  0xab   :  { %v4251_v63 = vpack.c.bf16 %v467_v61, %v459_v60  ;;  %v4315_v1 = vpack.c.bf16 %v469_v0, %v461_v62  ;;  %v477_v10 = vld [vmem:[#allocation9 + $0x790] sm:$0xff]  ;;  %867 = vst [vmem:[#allocation3 + $0x50] sm:$0xff] %v5951_v21  ;;  %868 = vst [vmem:[#allocation3 + $0x58] sm:$0xff] %v5951_v21  ;;  %v4061_v22 = vld [vmem:[%s6971_s3] ss:$0 sm:$0xff] }
  0xac   :  { %v485_v11 = vld [vmem:[#allocation9 + $0x7d0] sm:$0xff]  ;;  %869 = vst [vmem:[#allocation3 + $0x60] sm:$0xff] %v5951_v21  ;;  %870 = vst [vmem:[#allocation3 + $0x68] sm:$0xff] %v5951_v21  ;;  %v239_v25 = vld [vmem:[#allocation9 + $0x20] sm:$0xff] }
  0xad   :  { %4288 = vmatpush1.bf16.msra.mxu0 %v4287_v2  ;;  %4236 = vmatpush1.bf16.msra.mxu1 %v4235_v5  ;;  %v476_v2 = vld [vmem:[#allocation9 + $0x788] sm:$0xff]  ;;  %v478_v5 = vld [vmem:[#allocation9 + $0x798] sm:$0xff]  ;;  %v4319_v13 = vpack.c.bf16 %v485_v11, %v477_v10  ;;  %871 = vst [vmem:[#allocation3 + $0x70] sm:$0xff] %v5951_v21  ;;  %872 = vst [vmem:[#allocation3 + $0x78] sm:$0xff] %v5951_v21 }
  0xae   :  { %4290 = vmatprep.subr.bf16.mxu0 %v4289_v6  ;;  %4238 = vmatprep.subr.bf16.mxu1 %v4237_v8  ;;  %v4253_v4 = vpack.c.bf16 %v484_v3, %v476_v2  ;;  %v486_v6 = vld [vmem:[#allocation9 + $0x7d8] sm:$0xff]  ;;  %873 = vst [vmem:[#allocation3 + $0x80] sm:$0xff] %v5951_v21  ;;  %874 = vst [vmem:[#allocation3 + $0x88] sm:$0xff] %v5951_v21  ;;  %v247_v28 = vld [vmem:[#allocation9 + $0x60] sm:$0xff] }
  0xaf   :  { %v4317_v8 = vpack.c.bf16 %v486_v6, %v478_v5  ;;  %875 = vst [vmem:[#allocation3 + $0x90] sm:$0xff] %v5951_v21  ;;  %876 = vst [vmem:[#allocation3 + $0x98] sm:$0xff] %v5951_v21  ;;  %v256_v31 = vld [vmem:[#allocation9 + $0xa8] sm:$0xff]  ;;  %v258_v34 = vld [vmem:[#allocation9 + $0xb8] sm:$0xff]  ;;  %v4323_v37 = vpack.c.bf16 %v247_v28, %v239_v25 }
  0xb0   :  { %877 = vst [vmem:[#allocation3 + $0xa0] sm:$0xff] %v5951_v21  ;;  %878 = vst [vmem:[#allocation3 + $0xa8] sm:$0xff] %v5951_v21  ;;  %v264_v33 = vld [vmem:[#allocation9 + $0xe8] sm:$0xff]  ;;  %v266_v35 = vld [vmem:[#allocation9 + $0xf8] sm:$0xff] }
  0xb1   :  { %4292 = vmatpush1.bf16.msra.mxu0 %v4291_v14  ;;  %4240 = vmatpush1.bf16.msra.mxu1 %v4239_v17  ;;  %v240_v14 = vld [vmem:[#allocation9 + $0x28] sm:$0xff]  ;;  %v6132_v17 = vld [vmem:[#allocation6] sm:$0xff]  ;;  %879 = vst [vmem:[#allocation3 + $0xb0] sm:$0xff] %v5951_v21  ;;  %880 = vst [vmem:[#allocation3 + $0xb8] sm:$0xff] %v5951_v21 }
  0xb2   :  { %4294 = vmatprep.subr.bf16.mxu0 %v4293_v18  ;;  %4242 = vmatprep.subr.bf16.mxu1 %v4241_v20  ;;  %v4321_v18 = vpack.c.bf16 %v248_v15, %v240_v14  ;;  %v4385_v20 = vpack.c.bf16 %v250_v19, %v242_v16  ;;  %881 = vst [vmem:[#allocation3 + $0xc0] sm:$0xff] %v5951_v21  ;;  %882 = vst [vmem:[#allocation3 + $0xc8] sm:$0xff] %v5951_v21  ;;  %v6203_v36 = vld [vmem:[#allocation6 + $0x8] sm:$0xff]  ;;  %v265_v44 = vld [vmem:[#allocation9 + $0xf0] sm:$0xff] }
  0xb3   :  { %597 = vmatprep.mubr.f32.mxu1 %v6132_v17  ;;  %674 = vmatprep.mubr.f32.mxu0 %v6132_v17  ;;  %883 = vst [vmem:[#allocation3 + $0xd0] sm:$0xff] %v5951_v21  ;;  %884 = vst [vmem:[#allocation3 + $0xd8] sm:$0xff] %v5951_v21  ;;  %v272_v45 = vld [vmem:[#allocation9 + $0x128] sm:$0xff]  ;;  %v274_v49 = vld [vmem:[#allocation9 + $0x138] sm:$0xff] }
  0xb4   :  { %885 = vst [vmem:[#allocation3 + $0xe0] sm:$0xff] %v5951_v21  ;;  %886 = vst [vmem:[#allocation3 + $0xe8] sm:$0xff] %v5951_v21  ;;  %v280_v48 = vld [vmem:[#allocation9 + $0x168] sm:$0xff]  ;;  %v282_v50 = vld [vmem:[#allocation9 + $0x178] sm:$0xff] }
  0xb5   :  { %4296 = vmatpush1.bf16.msra.mxu0 %v4295_v26  ;;  %4244 = vmatpush1.bf16.msra.mxu1 %v4243_v29  ;;  %887 = vst [vmem:[#allocation3 + $0xf0] sm:$0xff] %v5951_v21  ;;  %888 = vst [vmem:[#allocation3 + $0xf8] sm:$0xff] %v5951_v21  ;;  %v241_v29 = vld [vmem:[#allocation9 + $0x30] sm:$0xff]  ;;  %v279_v54 = vld [vmem:[#allocation9 + $0x160] sm:$0xff]  ;;  %v4329_v56 = vpack.c.bf16 %v280_v48, %v272_v45  ;;  %v4393_v57 = vpack.c.bf16 %v282_v50, %v274_v49 }
  0xb6   :  { %4298 = vmatprep.subr.bf16.mxu0 %v4297_v30  ;;  %4246 = vmatprep.subr.bf16.mxu1 %v4245_v32  ;;  %889 = vst [vmem:[#allocation3 + $0x100] sm:$0xff] %v5951_v21  ;;  %890 = vst [vmem:[#allocation3 + $0x108] sm:$0xff] %v5951_v21  ;;  %v249_v30 = vld [vmem:[#allocation9 + $0x70] sm:$0xff]  ;;  %v288_v60 = vld [vmem:[#allocation9 + $0x1a8] sm:$0xff] }
  0xb7   :  { %891 = vst [vmem:[#allocation3 + $0x110] sm:$0xff] %v5951_v21  ;;  %892 = vst [vmem:[#allocation3 + $0x118] sm:$0xff] %v5951_v21  ;;  %v296_v61 = vld [vmem:[#allocation9 + $0x1e8] sm:$0xff]  ;;  %v290_v62 = vld [vmem:[#allocation9 + $0x1b8] sm:$0xff] }
  0xb8   :  { %893 = vst [vmem:[#allocation3 + $0x120] sm:$0xff] %v5951_v21  ;;  %894 = vst [vmem:[#allocation3 + $0x128] sm:$0xff] %v5951_v21  ;;  %v287_v2 = vld [vmem:[#allocation9 + $0x1a0] sm:$0xff]  ;;  %v289_v6 = vld [vmem:[#allocation9 + $0x1b0] sm:$0xff] }
  0xb9   :  { %4300 = vmatpush1.bf16.msra.mxu0 %v4299_v38  ;;  %4248 = vmatpush1.bf16.msra.mxu1 %v4247_v39  ;;  %895 = vst [vmem:[#allocation3 + $0x130] sm:$0xff] %v5951_v21  ;;  %896 = vst [vmem:[#allocation3 + $0x138] sm:$0xff] %v5951_v21  ;;  %v4387_v38 = vpack.c.bf16 %v249_v30, %v241_v29  ;;  %v255_v39 = vld [vmem:[#allocation9 + $0xa0] sm:$0xff]  ;;  %v297_v7 = vld [vmem:[#allocation9 + $0x1f0] sm:$0xff] }
  0xba   :  { %4302 = vmatprep.subr.bf16.mxu0 %v4301_v40  ;;  %4250 = vmatprep.subr.bf16.mxu1 %v4249_v43  ;;  %897 = vst [vmem:[#allocation3 + $0x140] sm:$0xff] %v5951_v21  ;;  %898 = vst [vmem:[#allocation3 + $0x148] sm:$0xff] %v5951_v21  ;;  %v263_v40 = vld [vmem:[#allocation9 + $0xe0] sm:$0xff]  ;;  %v257_v43 = vld [vmem:[#allocation9 + $0xb0] sm:$0xff] }
  0xbb   :  { %899 = vst [vmem:[#allocation3 + $0x150] sm:$0xff] %v5951_v21  ;;  %900 = vst [vmem:[#allocation3 + $0x158] sm:$0xff] %v5951_v21  ;;  %v4327_v51 = vpack.c.bf16 %v263_v40, %v255_v39  ;;  %v295_v3 = vld [vmem:[#allocation9 + $0x1e0] sm:$0xff]  ;;  %v312_v9 = vld [vmem:[#allocation9 + $0x268] sm:$0xff] }
  0xbc   :  { %901 = vst [vmem:[#allocation3 + $0x160] sm:$0xff] %v5951_v21  ;;  %902 = vst [vmem:[#allocation3 + $0x168] sm:$0xff] %v5951_v21  ;;  %v306_v10 = vld [vmem:[#allocation9 + $0x238] sm:$0xff]  ;;  %v303_v14 = vld [vmem:[#allocation9 + $0x220] sm:$0xff] }
  0xbd   :  { %4304 = vmatpush1.bf16.msra.mxu0 %v4303_v46  ;;  %4252 = vmatpush1.bf16.msra.mxu1 %v4251_v63  ;;  %903 = vst [vmem:[#allocation3 + $0x170] sm:$0xff] %v5951_v21  ;;  %904 = vst [vmem:[#allocation3 + $0x178] sm:$0xff] %v5951_v21  ;;  %v4325_v46 = vpack.c.bf16 %v264_v33, %v256_v31  ;;  %v298_v63 = vld [vmem:[#allocation9 + $0x1f8] sm:$0xff]  ;;  %v311_v15 = vld [vmem:[#allocation9 + $0x260] sm:$0xff] }
  0xbe   :  { %4306 = vmatprep.subr.bf16.mxu0 %v4305_v47  ;;  %4254 = vmatprep.subr.bf16.mxu1 %v4253_v4  ;;  %905 = vst [vmem:[#allocation3 + $0x180] sm:$0xff] %v5951_v21  ;;  %906 = vst [vmem:[#allocation3 + $0x188] sm:$0xff] %v5951_v21  ;;  %v4389_v47 = vpack.c.bf16 %v266_v35, %v258_v34  ;;  %v4333_v4 = vpack.c.bf16 %v296_v61, %v288_v60  ;;  %v314_v11 = vld [vmem:[#allocation9 + $0x278] sm:$0xff]  ;;  %v305_v19 = vld [vmem:[#allocation9 + $0x230] sm:$0xff] }
  0xbf   :  { %907 = vst [vmem:[#allocation3 + $0x190] sm:$0xff] %v5951_v21  ;;  %908 = vst [vmem:[#allocation3 + $0x198] sm:$0xff] %v5951_v21  ;;  %v4397_v5 = vpack.c.bf16 %v298_v63, %v290_v62  ;;  %v330_v25 = vld [vmem:[#allocation9 + $0x2f8] sm:$0xff]  ;;  %v327_v28 = vld [vmem:[#allocation9 + $0x2e0] sm:$0xff] }
  0xc0   :  { %909 = vst [vmem:[#allocation3 + $0x1a0] sm:$0xff] %v5951_v21  ;;  %910 = vst [vmem:[#allocation3 + $0x1a8] sm:$0xff] %v5951_v21  ;;  %v321_v31 = vld [vmem:[#allocation9 + $0x2b0] sm:$0xff]  ;;  %v336_v33 = vld [vmem:[#allocation9 + $0x328] sm:$0xff] }
  0xc1   :  { %4308 = vmatpush1.bf16.msra.mxu0 %v4307_v52  ;;  %4256 = vmatpush1.bf16.msra.mxu1 %v4255_v12  ;;  %911 = vst [vmem:[#allocation3 + $0x1b0] sm:$0xff] %v5951_v21  ;;  %912 = vst [vmem:[#allocation3 + $0x1b8] sm:$0xff] %v5951_v21  ;;  %v4391_v52 = vpack.c.bf16 %v265_v44, %v257_v43  ;;  %v4335_v12 = vpack.c.bf16 %v295_v3, %v287_v2  ;;  %v344_v34 = vld [vmem:[#allocation9 + $0x368] sm:$0xff]  ;;  %v338_v35 = vld [vmem:[#allocation9 + $0x338] sm:$0xff] }
  0xc2   :  { %4310 = vmatprep.subr.bf16.mxu0 %v4309_v53  ;;  %4322 = vmatprep.subr.bf16.mxu1 %v4321_v18  ;;  %913 = vst [vmem:[#allocation3 + $0x1c0] sm:$0xff] %v5951_v21  ;;  %914 = vst [vmem:[#allocation3 + $0x1c8] sm:$0xff] %v5951_v21  ;;  %v271_v53 = vld [vmem:[#allocation9 + $0x120] sm:$0xff]  ;;  %v4401_v18 = vpack.c.bf16 %v314_v11, %v306_v10  ;;  %v4345_v43 = vpack.c.bf16 %v344_v34, %v336_v33  ;;  %v337_v45 = vld [vmem:[#allocation9 + $0x330] sm:$0xff] }
  0xc3   :  { %915 = vst [vmem:[#allocation3 + $0x1d0] sm:$0xff] %v5951_v21  ;;  %916 = vst [vmem:[#allocation3 + $0x1d8] sm:$0xff] %v5951_v21  ;;  %v4331_v0 = vpack.c.bf16 %v279_v54, %v271_v53  ;;  %v335_v40 = vld [vmem:[#allocation9 + $0x320] sm:$0xff]  ;;  %v360_v48 = vld [vmem:[#allocation9 + $0x3e8] sm:$0xff] }
  0xc4   :  { %917 = vst [vmem:[#allocation3 + $0x1e0] sm:$0xff] %v5951_v21  ;;  %918 = vst [vmem:[#allocation3 + $0x1e8] sm:$0xff] %v5951_v21  ;;  %v354_v49 = vld [vmem:[#allocation9 + $0x3b8] sm:$0xff]  ;;  %v351_v53 = vld [vmem:[#allocation9 + $0x3a0] sm:$0xff] }
  0xc5   :  { %4312 = vmatpush1.bf16.msra.mxu0 %v4311_v58  ;;  %919 = vst [vmem:[#allocation3 + $0x1f0] sm:$0xff] %v5951_v21  ;;  %920 = vst [vmem:[#allocation3 + $0x1f8] sm:$0xff] %v5951_v21  ;;  %v273_v58 = vld [vmem:[#allocation9 + $0x130] sm:$0xff]  ;;  %v362_v50 = vld [vmem:[#allocation9 + $0x3f8] sm:$0xff] }
  0xc6   :  { %4314 = vmatprep.subr.bf16.mxu0 %v4313_v59  ;;  %v281_v59 = vld [vmem:[#allocation9 + $0x170] sm:$0xff]  ;;  %v359_v54 = vld [vmem:[#allocation9 + $0x3e0] sm:$0xff]  ;;  %v368_v60 = vld [vmem:[#allocation9 + $0x428] sm:$0xff] }
  0xc7   :  { %v376_v61 = vld [vmem:[#allocation9 + $0x468] sm:$0xff]  ;;  %v370_v62 = vld [vmem:[#allocation9 + $0x438] sm:$0xff]  ;;  %v367_v2 = vld [vmem:[#allocation9 + $0x420] sm:$0xff] }
  0xc8   :  { %v378_v63 = vld [vmem:[#allocation9 + $0x478] sm:$0xff]  ;;  %v375_v3 = vld [vmem:[#allocation9 + $0x460] sm:$0xff]  ;;  %v416_v33 = vld [vmem:[#allocation9 + $0x5a8] sm:$0xff] }
  0xc9   :  { %4316 = vmatpush1.bf16.msra.mxu0 %v4315_v1  ;;  %v4395_v1 = vpack.c.bf16 %v281_v59, %v273_v58  ;;  %v353_v58 = vld [vmem:[#allocation9 + $0x3b0] sm:$0xff]  ;;  %v386_v10 = vld [vmem:[#allocation9 + $0x4b8] sm:$0xff]  ;;  %v424_v34 = vld [vmem:[#allocation9 + $0x5e8] sm:$0xff] }
  0xca   :  { %4318 = vmatprep.subr.bf16.mxu0 %v4317_v8  ;;  %v304_v8 = vld [vmem:[#allocation9 + $0x228] sm:$0xff]  ;;  %v361_v59 = vld [vmem:[#allocation9 + $0x3f0] sm:$0xff]  ;;  %v394_v11 = vld [vmem:[#allocation9 + $0x4f8] sm:$0xff] }
  0xcb   :  { %v4337_v16 = vpack.c.bf16 %v312_v9, %v304_v8  ;;  %v384_v8 = vld [vmem:[#allocation9 + $0x4a8] sm:$0xff] }
  0xcc   :  { %v392_v9 = vld [vmem:[#allocation9 + $0x4e8] sm:$0xff] }
  0xcd   :  { %4320 = vmatpush1.bf16.msra.mxu0 %v4319_v13  ;;  %v4399_v13 = vpack.c.bf16 %v297_v7, %v289_v6  ;;  %v369_v6 = vld [vmem:[#allocation9 + $0x430] sm:$0xff] }
  0xce   :  { %4386 = vmatprep.subr.bf16.mxu0 %v4385_v20  ;;  %v313_v20 = vld [vmem:[#allocation9 + $0x270] sm:$0xff] }
  0xcf   :  { %v377_v7 = vld [vmem:[#allocation9 + $0x470] sm:$0xff] }
 0x163   :  { %v4176_v23 = vpop.f32.mrb[0].mxu0 }
 0x164   :  { %v222_v24 = vpop.f32.mrb[1].mxu0  ;;  %v228_v26 = vadd.f32 %v4176_v23, %v4061_v22  ;;  %v328_v23 = vld [vmem:[#allocation9 + $0x2e8] sm:$0xff] }
 0x165   :  { %v223_v27 = vadd.f32 %v4061_v22, %v222_v24  ;;  %v320_v22 = vld [vmem:[#allocation9 + $0x2a8] sm:$0xff]  ;;  %v322_v24 = vld [vmem:[#allocation9 + $0x2b8] sm:$0xff] }
 0x166   :  { %v232_v41 = vmax.f32 %v228_v26, 0.0  ;;  %v4339_v26 = vpack.c.bf16 %v311_v15, %v303_v14  ;;  %v4341_v29 = vpack.c.bf16 %v328_v23, %v320_v22  ;;  %v4405_v30 = vpack.c.bf16 %v330_v25, %v322_v24  ;;  %v383_v14 = vld [vmem:[#allocation9 + $0x4a0] sm:$0xff]  ;;  %v400_v22 = vld [vmem:[#allocation9 + $0x528] sm:$0xff]  ;;  %v402_v24 = vld [vmem:[#allocation9 + $0x538] sm:$0xff] }
 0x167   :  { %v231_v32 = vmax.f32 %v223_v27, 0.0  ;;  %v319_v27 = vld [vmem:[#allocation9 + $0x2a0] sm:$0xff]  ;;  %v408_v23 = vld [vmem:[#allocation9 + $0x568] sm:$0xff]  ;;  %v410_v25 = vld [vmem:[#allocation9 + $0x578] sm:$0xff] }
 0x168   :  { %v6211_v55 = vadd.f32 %v232_v41, %v6203_v36  ;;  %v343_v41 = vld [vmem:[#allocation9 + $0x360] sm:$0xff] }
 0x169   :  { %v6206_v42 = vadd.f32 %v231_v32, %v6132_v17  ;;  %v329_v32 = vld [vmem:[#allocation9 + $0x2f0] sm:$0xff]  ;;  %v391_v15 = vld [vmem:[#allocation9 + $0x4e0] sm:$0xff] }
 0x16a   :  { %v4407_v39 = vpack.c.bf16 %v329_v32, %v321_v31  ;;  %v401_v31 = vld [vmem:[#allocation9 + $0x530] sm:$0xff] }
 0x16b   :  { %598 = vmatmul.mubr.f32.vlgmr.msra.gmra.mrb[0].mxu1 %v6206_v42  ;;  %675 = vmatmul.mubr.f32.vlgmr.msra.gmra.mrb[2].mxu0 %v6206_v42  ;;  %v409_v32 = vld [vmem:[#allocation9 + $0x570] sm:$0xff] }
 0x16c   :  { %4324 = vmatpush1.bf16.msra.mxu1 %v4323_v37  ;;  %4388 = vmatpush1.bf16.msra.mxu0 %v4387_v38  ;;  %v346_v37 = vld [vmem:[#allocation9 + $0x378] sm:$0xff]  ;;  %v4343_v38 = vpack.c.bf16 %v327_v28, %v319_v27  ;;  %v399_v27 = vld [vmem:[#allocation9 + $0x520] sm:$0xff] }
 0x16d   :  { %603 = vmatprep.mubr.f32.mxu1 %v6203_v36  ;;  %680 = vmatprep.mubr.f32.mxu0 %v6203_v36  ;;  %v4409_v44 = vpack.c.bf16 %v346_v37, %v338_v35  ;;  %v407_v28 = vld [vmem:[#allocation9 + $0x560] sm:$0xff]  ;;  %v418_v35 = vld [vmem:[#allocation9 + $0x5b8] sm:$0xff] }
 0x16e   :  { %4326 = vmatprep.subr.bf16.mxu1 %v4325_v46  ;;  %4390 = vmatprep.subr.bf16.mxu0 %v4389_v47  ;;  %v345_v46 = vld [vmem:[#allocation9 + $0x370] sm:$0xff]  ;;  %v352_v47 = vld [vmem:[#allocation9 + $0x3a8] sm:$0xff]  ;;  %v426_v37 = vld [vmem:[#allocation9 + $0x5f8] sm:$0xff] }
 0x16f   :  { %604 = vmatmul.mubr.f32.gmra.mrb[2].mxu1 %v6211_v55  ;;  %681 = vmatmul.mubr.f32.gmra.mrb[4].mxu0 %v6211_v55 }
 0x170   :  { %4328 = vmatpush1.bf16.msra.mxu1 %v4327_v51  ;;  %4392 = vmatpush1.bf16.msra.mxu0 %v4391_v52  ;;  %v4347_v51 = vpack.c.bf16 %v343_v41, %v335_v40  ;;  %v4411_v52 = vpack.c.bf16 %v345_v46, %v337_v45  ;;  %v415_v40 = vld [vmem:[#allocation9 + $0x5a0] sm:$0xff]  ;;  %v417_v45 = vld [vmem:[#allocation9 + $0x5b0] sm:$0xff] }
 0x171   :  { %4330 = vmatprep.subr.bf16.mxu1 %v4329_v56  ;;  %4394 = vmatprep.subr.bf16.mxu0 %v4393_v57  ;;  %v4349_v56 = vpack.c.bf16 %v360_v48, %v352_v47  ;;  %v4413_v57 = vpack.c.bf16 %v362_v50, %v354_v49  ;;  %v423_v41 = vld [vmem:[#allocation9 + $0x5e0] sm:$0xff]  ;;  %v425_v46 = vld [vmem:[#allocation9 + $0x5f0] sm:$0xff]  ;;  %v432_v47 = vld [vmem:[#allocation9 + $0x628] sm:$0xff] }
 0x172   :  { %751 = vmatprep.mubr.f32.mxu1 %v6132_v17  ;;  %828 = vmatprep.mubr.f32.mxu0 %v6132_v17  ;;  %v4403_v17 = vpack.c.bf16 %v313_v20, %v305_v19  ;;  %v385_v19 = vld [vmem:[#allocation9 + $0x4b0] sm:$0xff]  ;;  %v440_v48 = vld [vmem:[#allocation9 + $0x668] sm:$0xff]  ;;  %v434_v49 = vld [vmem:[#allocation9 + $0x638] sm:$0xff] }
 0x173   :  { %v393_v20 = vld [vmem:[#allocation9 + $0x4f0] sm:$0xff]  ;;  %v442_v50 = vld [vmem:[#allocation9 + $0x678] sm:$0xff] }
 0x174   :  { %4332 = vmatpush1.bf16.msra.mxu1 %v4331_v0  ;;  %4396 = vmatpush1.bf16.msra.mxu0 %v4395_v1  ;;  %v4351_v0 = vpack.c.bf16 %v359_v54, %v351_v53  ;;  %v4415_v1 = vpack.c.bf16 %v361_v59, %v353_v58  ;;  %v431_v53 = vld [vmem:[#allocation9 + $0x620] sm:$0xff]  ;;  %v433_v58 = vld [vmem:[#allocation9 + $0x630] sm:$0xff] }
 0x175   :  { %4334 = vmatprep.subr.bf16.mxu1 %v4333_v4  ;;  %4398 = vmatprep.subr.bf16.mxu0 %v4397_v5  ;;  %v4353_v4 = vpack.c.bf16 %v376_v61, %v368_v60  ;;  %v4417_v5 = vpack.c.bf16 %v378_v63, %v370_v62  ;;  %v439_v54 = vld [vmem:[#allocation9 + $0x660] sm:$0xff]  ;;  %v441_v59 = vld [vmem:[#allocation9 + $0x670] sm:$0xff]  ;;  %v448_v60 = vld [vmem:[#allocation9 + $0x6a8] sm:$0xff] }
 0x176   :  { %v456_v61 = vld [vmem:[#allocation9 + $0x6e8] sm:$0xff]  ;;  %v450_v62 = vld [vmem:[#allocation9 + $0x6b8] sm:$0xff] }
 0x177   :  { %v458_v63 = vld [vmem:[#allocation9 + $0x6f8] sm:$0xff] }
 0x178   :  { %4336 = vmatpush1.bf16.msra.mxu1 %v4335_v12  ;;  %4400 = vmatpush1.bf16.msra.mxu0 %v4399_v13  ;;  %v4355_v12 = vpack.c.bf16 %v375_v3, %v367_v2  ;;  %v4419_v13 = vpack.c.bf16 %v377_v7, %v369_v6  ;;  %v447_v2 = vld [vmem:[#allocation9 + $0x6a0] sm:$0xff]  ;;  %v449_v6 = vld [vmem:[#allocation9 + $0x6b0] sm:$0xff] }
 0x179   :  { %4338 = vmatprep.subr.bf16.mxu1 %v4337_v16  ;;  %4402 = vmatprep.subr.bf16.mxu0 %v4401_v18  ;;  %v4357_v16 = vpack.c.bf16 %v392_v9, %v384_v8  ;;  %v4421_v18 = vpack.c.bf16 %v394_v11, %v386_v10  ;;  %v455_v3 = vld [vmem:[#allocation9 + $0x6e0] sm:$0xff]  ;;  %v457_v7 = vld [vmem:[#allocation9 + $0x6f0] sm:$0xff]  ;;  %v464_v8 = vld [vmem:[#allocation9 + $0x728] sm:$0xff] }
 0x17a   :  { %v472_v9 = vld [vmem:[#allocation9 + $0x768] sm:$0xff]  ;;  %v466_v10 = vld [vmem:[#allocation9 + $0x738] sm:$0xff] }
 0x17b   :  { %v474_v11 = vld [vmem:[#allocation9 + $0x778] sm:$0xff] }
 0x17c   :  { %4340 = vmatpush1.bf16.msra.mxu1 %v4339_v26  ;;  %4404 = vmatpush1.bf16.msra.mxu0 %v4403_v17  ;;  %v4359_v26 = vpack.c.bf16 %v391_v15, %v383_v14  ;;  %v4423_v17 = vpack.c.bf16 %v393_v20, %v385_v19  ;;  %v463_v14 = vld [vmem:[#allocation9 + $0x720] sm:$0xff]  ;;  %v465_v19 = vld [vmem:[#allocation9 + $0x730] sm:$0xff] }
 0x17d   :  { %4342 = vmatprep.subr.bf16.mxu1 %v4341_v29  ;;  %4406 = vmatprep.subr.bf16.mxu0 %v4405_v30  ;;  %v4361_v29 = vpack.c.bf16 %v408_v23, %v400_v22  ;;  %v4425_v30 = vpack.c.bf16 %v410_v25, %v402_v24  ;;  %v471_v15 = vld [vmem:[#allocation9 + $0x760] sm:$0xff]  ;;  %v473_v20 = vld [vmem:[#allocation9 + $0x770] sm:$0xff]  ;;  %v480_v22 = vld [vmem:[#allocation9 + $0x7a8] sm:$0xff] }
 0x17e   :  { %v488_v23 = vld [vmem:[#allocation9 + $0x7e8] sm:$0xff]  ;;  %v482_v24 = vld [vmem:[#allocation9 + $0x7b8] sm:$0xff] }
 0x17f   :  { %v490_v25 = vld [vmem:[#allocation9 + $0x7f8] sm:$0xff] }
 0x180   :  { %4344 = vmatpush1.bf16.msra.mxu1 %v4343_v38  ;;  %4408 = vmatpush1.bf16.msra.mxu0 %v4407_v39  ;;  %v4363_v38 = vpack.c.bf16 %v407_v28, %v399_v27  ;;  %v4427_v39 = vpack.c.bf16 %v409_v32, %v401_v31  ;;  %v479_v27 = vld [vmem:[#allocation9 + $0x7a0] sm:$0xff]  ;;  %v481_v31 = vld [vmem:[#allocation9 + $0x7b0] sm:$0xff] }
 0x181   :  { %4346 = vmatprep.subr.bf16.mxu1 %v4345_v43  ;;  %4410 = vmatprep.subr.bf16.mxu0 %v4409_v44  ;;  %v4365_v43 = vpack.c.bf16 %v424_v34, %v416_v33  ;;  %v4429_v44 = vpack.c.bf16 %v426_v37, %v418_v35  ;;  %v487_v28 = vld [vmem:[#allocation9 + $0x7e0] sm:$0xff]  ;;  %v489_v32 = vld [vmem:[#allocation9 + $0x7f0] sm:$0xff]  ;;  %v1032_v33 = vld [vmem:[#allocation11 + $0x8] sm:$0xff] }
 0x182   :  { %v1036_v34 = vld [vmem:[#allocation11 + $0x28] sm:$0xff]  ;;  %v1034_v35 = vld [vmem:[#allocation11 + $0x18] sm:$0xff] }
 0x183   :  { %v1038_v37 = vld [vmem:[#allocation11 + $0x38] sm:$0xff] }
 0x184   :  { %4348 = vmatpush1.bf16.msra.mxu1 %v4347_v51  ;;  %4412 = vmatpush1.bf16.msra.mxu0 %v4411_v52  ;;  %v4367_v51 = vpack.c.bf16 %v423_v41, %v415_v40  ;;  %v4431_v52 = vpack.c.bf16 %v425_v46, %v417_v45  ;;  %v1031_v40 = vld [vmem:[#allocation11] sm:$0xff]  ;;  %v6219_v41 = vpack.c.bf16 %v1036_v34, %v1032_v33  ;;  %v1033_v45 = vld [vmem:[#allocation11 + $0x10] sm:$0xff]  ;;  %v1078_v33 = vld [vmem:[#allocation11 + $0x178] sm:$0xff] }
 0x185   :  { %4350 = vmatprep.subr.bf16.mxu1 %v4349_v56  ;;  %4414 = vmatprep.subr.bf16.mxu0 %v4413_v57  ;;  %v4369_v56 = vpack.c.bf16 %v440_v48, %v432_v47  ;;  %v4433_v57 = vpack.c.bf16 %v442_v50, %v434_v49  ;;  %v1037_v46 = vld [vmem:[#allocation11 + $0x30] sm:$0xff]  ;;  %v1040_v47 = vld [vmem:[#allocation11 + $0x48] sm:$0xff]  ;;  %v1042_v49 = vld [vmem:[#allocation11 + $0x58] sm:$0xff] }
 0x186   :  { %v1044_v48 = vld [vmem:[#allocation11 + $0x68] sm:$0xff]  ;;  %v1046_v50 = vld [vmem:[#allocation11 + $0x78] sm:$0xff] }
 0x188   :  { %4352 = vmatpush1.bf16.msra.mxu1 %v4351_v0  ;;  %4416 = vmatpush1.bf16.msra.mxu0 %v4415_v1  ;;  %v4371_v0 = vpack.c.bf16 %v439_v54, %v431_v53  ;;  %v4435_v1 = vpack.c.bf16 %v441_v59, %v433_v58  ;;  %v1039_v53 = vld [vmem:[#allocation11 + $0x40] sm:$0xff]  ;;  %v1048_v58 = vld [vmem:[#allocation11 + $0x88] sm:$0xff]  ;;  %v6229_v59 = vpack.c.bf16 %v1044_v48, %v1040_v47  ;;  %v1082_v48 = vld [vmem:[#allocation11 + $0x198] sm:$0xff] }
 0x189   :  { %4354 = vmatprep.subr.bf16.mxu1 %v4353_v4  ;;  %4418 = vmatprep.subr.bf16.mxu0 %v4417_v5  ;;  %v4373_v4 = vpack.c.bf16 %v456_v61, %v448_v60  ;;  %v4437_v5 = vpack.c.bf16 %v458_v63, %v450_v62  ;;  %v1043_v54 = vld [vmem:[#allocation11 + $0x60] sm:$0xff]  ;;  %v6231_v60 = vpack.c.bf16 %v1046_v50, %v1042_v49  ;;  %v1052_v61 = vld [vmem:[#allocation11 + $0xa8] sm:$0xff]  ;;  %v1050_v62 = vld [vmem:[#allocation11 + $0x98] sm:$0xff] }
 0x18a   :  { %v1054_v63 = vld [vmem:[#allocation11 + $0xb8] sm:$0xff]  ;;  %v1084_v47 = vld [vmem:[#allocation11 + $0x1a8] sm:$0xff] }
 0x18b   :  { %v1086_v49 = vld [vmem:[#allocation11 + $0x1b8] sm:$0xff] }
 0x18c   :  { %4356 = vmatpush1.bf16.msra.mxu1 %v4355_v12  ;;  %4420 = vmatpush1.bf16.msra.mxu0 %v4419_v13  ;;  %v4375_v12 = vpack.c.bf16 %v455_v3, %v447_v2  ;;  %v4439_v13 = vpack.c.bf16 %v457_v7, %v449_v6  ;;  %v1047_v2 = vld [vmem:[#allocation11 + $0x80] sm:$0xff]  ;;  %v1049_v6 = vld [vmem:[#allocation11 + $0x90] sm:$0xff]  ;;  %v1056_v7 = vld [vmem:[#allocation11 + $0xc8] sm:$0xff] }
 0x18d   :  { %4358 = vmatprep.subr.bf16.mxu1 %v4357_v16  ;;  %4422 = vmatprep.subr.bf16.mxu0 %v4421_v18  ;;  %v4377_v16 = vpack.c.bf16 %v472_v9, %v464_v8  ;;  %v4441_v18 = vpack.c.bf16 %v474_v11, %v466_v10  ;;  %v1051_v3 = vld [vmem:[#allocation11 + $0xa0] sm:$0xff]  ;;  %v1060_v8 = vld [vmem:[#allocation11 + $0xe8] sm:$0xff]  ;;  %v1058_v9 = vld [vmem:[#allocation11 + $0xd8] sm:$0xff] }
 0x18e   :  { %v1062_v10 = vld [vmem:[#allocation11 + $0xf8] sm:$0xff] }
 0x190   :  { %4360 = vmatpush1.bf16.msra.mxu1 %v4359_v26  ;;  %4424 = vmatpush1.bf16.msra.mxu0 %v4423_v17  ;;  %v4379_v26 = vpack.c.bf16 %v471_v15, %v463_v14  ;;  %v4443_v17 = vpack.c.bf16 %v473_v20, %v465_v19  ;;  %v6259_v14 = vpack.c.bf16 %v1060_v8, %v1056_v7  ;;  %v1068_v19 = vld [vmem:[#allocation11 + $0x128] sm:$0xff]  ;;  %v1066_v20 = vld [vmem:[#allocation11 + $0x118] sm:$0xff]  ;;  %v1087_v8 = vld [vmem:[#allocation11 + $0x1c0] sm:$0xff] }
 0x191   :  { %4362 = vmatprep.subr.bf16.mxu1 %v4361_v29  ;;  %4426 = vmatprep.subr.bf16.mxu0 %v4425_v30  ;;  %v4381_v29 = vpack.c.bf16 %v488_v23, %v480_v22  ;;  %v4445_v30 = vpack.c.bf16 %v490_v25, %v482_v24  ;;  %v6261_v15 = vpack.c.bf16 %v1062_v10, %v1058_v9  ;;  %v1070_v22 = vld [vmem:[#allocation11 + $0x138] sm:$0xff]  ;;  %v1063_v25 = vld [vmem:[#allocation11 + $0x100] sm:$0xff] }
 0x192   :  { %7045 = vst [vmem:[#allocation19_spill] sm:$0xff] %v6259_v14  ;;  %v1091_v9 = vld [vmem:[#allocation11 + $0x1e0] sm:$0xff] }
 0x193   :  { %7046 = vst [vmem:[#allocation20_spill] sm:$0xff] %v6261_v15 }
 0x194   :  { %4364 = vmatpush1.bf16.msra.mxu1 %v4363_v38  ;;  %4428 = vmatpush1.bf16.msra.mxu0 %v4427_v39  ;;  %v4383_v38 = vpack.c.bf16 %v487_v28, %v479_v27  ;;  %v4447_v39 = vpack.c.bf16 %v489_v32, %v481_v31  ;;  %v6275_v27 = vpack.c.bf16 %v1070_v22, %v1066_v20  ;;  %v1065_v28 = vld [vmem:[#allocation11 + $0x110] sm:$0xff]  ;;  %v1076_v31 = vld [vmem:[#allocation11 + $0x168] sm:$0xff]  ;;  %v1074_v32 = vld [vmem:[#allocation11 + $0x158] sm:$0xff] }
 0x195   :  { %4366 = vmatprep.subr.bf16.mxu1 %v4365_v43  ;;  %4430 = vmatprep.subr.bf16.mxu0 %v4429_v44  ;;  %v6221_v43 = vpack.c.bf16 %v1038_v37, %v1034_v35  ;;  %v1035_v44 = vld [vmem:[#allocation11 + $0x20] sm:$0xff]  ;;  %v1102_v20 = vld [vmem:[#allocation12 + $0x38] sm:$0xff]  ;;  %v6315_v22 = vpack.c.bf16 %v1091_v9, %v1087_v8 }
 0x196   :  { %7050 = vst [vmem:[#allocation24_spill] sm:$0xff] %v6275_v27  ;;  %v1071_v37 = vld [vmem:[#allocation11 + $0x140] sm:$0xff] }
 0x197   :  { %7063 = vst [vmem:[#allocation37_spill] sm:$0xff] %v6315_v22  ;;  %v1111_v9 = vld [vmem:[#allocation12 + $0x80] sm:$0xff] }
 0x198   :  { %4368 = vmatpush1.bf16.msra.mxu1 %v4367_v51  ;;  %4432 = vmatpush1.bf16.msra.mxu0 %v4431_v52  ;;  %v6223_v51 = vpack.c.bf16 %v1035_v44, %v1031_v40  ;;  %v6225_v52 = vpack.c.bf16 %v1037_v46, %v1033_v45  ;;  %v6287_v40 = vpack.c.bf16 %v1078_v33, %v1074_v32  ;;  %v1073_v44 = vld [vmem:[#allocation11 + $0x150] sm:$0xff]  ;;  %v1080_v46 = vld [vmem:[#allocation11 + $0x188] sm:$0xff] }
 0x199   :  { %4370 = vmatprep.subr.bf16.mxu1 %v4369_v56  ;;  %4434 = vmatprep.subr.bf16.mxu0 %v4433_v57  ;;  %v1041_v56 = vld [vmem:[#allocation11 + $0x50] sm:$0xff]  ;;  %v1104_v33 = vld [vmem:[#allocation12 + $0x48] sm:$0xff] }
 0x19a   :  { %v1045_v57 = vld [vmem:[#allocation11 + $0x70] sm:$0xff]  ;;  %7054 = vst [vmem:[#allocation28_spill] sm:$0xff] %v6287_v40 }
 0x19b   :  { %v1077_v45 = vld [vmem:[#allocation11 + $0x170] sm:$0xff] }
 0x19c   :  { %4372 = vmatpush1.bf16.msra.mxu1 %v4371_v0  ;;  %4436 = vmatpush1.bf16.msra.mxu0 %v4435_v1  ;;  %v6237_v0 = vpack.c.bf16 %v1043_v54, %v1039_v53  ;;  %v6239_v1 = vpack.c.bf16 %v1045_v57, %v1041_v56  ;;  %v6293_v53 = vpack.c.bf16 %v1077_v45, %v1073_v44  ;;  %v1079_v54 = vld [vmem:[#allocation11 + $0x180] sm:$0xff]  ;;  %v1101_v32 = vld [vmem:[#allocation12 + $0x30] sm:$0xff]  ;;  %v1110_v44 = vld [vmem:[#allocation12 + $0x78] sm:$0xff] }
 0x19d   :  { %4374 = vmatprep.subr.bf16.mxu1 %v4373_v4  ;;  %4438 = vmatprep.subr.bf16.mxu0 %v4437_v5  ;;  %v6243_v4 = vpack.c.bf16 %v1052_v61, %v1048_v58  ;;  %v6245_v5 = vpack.c.bf16 %v1054_v63, %v1050_v62  ;;  %v1083_v56 = vld [vmem:[#allocation11 + $0x1a0] sm:$0xff]  ;;  %v6297_v57 = vpack.c.bf16 %v1084_v47, %v1080_v46  ;;  %v1081_v61 = vld [vmem:[#allocation11 + $0x190] sm:$0xff]  ;;  %v1088_v63 = vld [vmem:[#allocation11 + $0x1c8] sm:$0xff] }
 0x19e   :  { %7056 = vst [vmem:[#allocation30_spill] sm:$0xff] %v6293_v53  ;;  %v6299_v58 = vpack.c.bf16 %v1086_v49, %v1082_v48  ;;  %v1085_v62 = vld [vmem:[#allocation11 + $0x1b0] sm:$0xff]  ;;  %v1103_v47 = vld [vmem:[#allocation12 + $0x40] sm:$0xff] }
 0x19f   :  { %7057 = vst [vmem:[#allocation31_spill] sm:$0xff] %v6297_v57  ;;  %v6305_v7 = vpack.c.bf16 %v1085_v62, %v1081_v61  ;;  %v1107_v48 = vld [vmem:[#allocation12 + $0x60] sm:$0xff]  ;;  %v1109_v61 = vld [vmem:[#allocation12 + $0x70] sm:$0xff]  ;;  %v1112_v62 = vld [vmem:[#allocation12 + $0x88] sm:$0xff] }
 0x1a0   :  { %4376 = vmatpush1.bf16.msra.mxu1 %v4375_v12  ;;  %4440 = vmatpush1.bf16.msra.mxu0 %v4439_v13  ;;  %v1055_v12 = vld [vmem:[#allocation11 + $0xc0] sm:$0xff]  ;;  %7058 = vst [vmem:[#allocation32_spill] sm:$0xff] %v6299_v58 }
 0x1a1   :  { %4378 = vmatprep.subr.bf16.mxu1 %v4377_v16  ;;  %4442 = vmatprep.subr.bf16.mxu0 %v4441_v18  ;;  %v1059_v13 = vld [vmem:[#allocation11 + $0xe0] sm:$0xff]  ;;  %v1057_v16 = vld [vmem:[#allocation11 + $0xd0] sm:$0xff]  ;;  %v1064_v18 = vld [vmem:[#allocation11 + $0x108] sm:$0xff]  ;;  %7060 = vst [vmem:[#allocation34_spill] sm:$0xff] %v6305_v7 }
 0x1a2   :  { %v6267_v23 = vpack.c.bf16 %v1059_v13, %v1055_v12  ;;  %v1089_v13 = vld [vmem:[#allocation11 + $0x1d0] sm:$0xff] }
 0x1a4   :  { %4380 = vmatpush1.bf16.msra.mxu1 %v4379_v26  ;;  %4444 = vmatpush1.bf16.msra.mxu0 %v4443_v17  ;;  %7047 = vst [vmem:[#allocation21_spill] sm:$0xff] %v6267_v23  ;;  %v1067_v26 = vld [vmem:[#allocation11 + $0x120] sm:$0xff]  ;;  %v6273_v17 = vpack.c.bf16 %v1068_v19, %v1064_v18  ;;  %v1100_v18 = vld [vmem:[#allocation12 + $0x28] sm:$0xff]  ;;  %v1098_v19 = vld [vmem:[#allocation12 + $0x18] sm:$0xff] }
 0x1a5   :  { %4382 = vmatprep.subr.bf16.mxu1 %v4381_v29  ;;  %4446 = vmatprep.subr.bf16.mxu0 %v4445_v30  ;;  %v1069_v29 = vld [vmem:[#allocation11 + $0x130] sm:$0xff]  ;;  %v1072_v30 = vld [vmem:[#allocation11 + $0x148] sm:$0xff]  ;;  %v6279_v34 = vpack.c.bf16 %v1067_v26, %v1063_v25  ;;  %v1095_v26 = vld [vmem:[#allocation12] sm:$0xff] }
 0x1a6   :  { %7049 = vst [vmem:[#allocation23_spill] sm:$0xff] %v6273_v17  ;;  %v6281_v35 = vpack.c.bf16 %v1069_v29, %v1065_v28  ;;  %v1099_v28 = vld [vmem:[#allocation12 + $0x20] sm:$0xff] }
 0x1a7   :  { %7051 = vst [vmem:[#allocation25_spill] sm:$0xff] %v6279_v34  ;;  %v6327_v45 = vpack.c.bf16 %v1099_v28, %v1095_v26  ;;  %v1122_v26 = vld [vmem:[#allocation12 + $0xd8] sm:$0xff] }
 0x1a8   :  { %4384 = vmatpush1.bf16.msra.mxu1 %v4383_v38  ;;  %4448 = vmatpush1.bf16.msra.mxu0 %v4447_v39  ;;  %7052 = vst [vmem:[#allocation26_spill] sm:$0xff] %v6281_v35  ;;  %v1075_v38 = vld [vmem:[#allocation11 + $0x160] sm:$0xff]  ;;  %v6285_v39 = vpack.c.bf16 %v1076_v31, %v1072_v30  ;;  %v6323_v30 = vpack.c.bf16 %v1102_v20, %v1098_v19  ;;  %v1097_v31 = vld [vmem:[#allocation12 + $0x10] sm:$0xff]  ;;  %v1120_v19 = vld [vmem:[#allocation12 + $0xc8] sm:$0xff] }
 0x1a9   :  { %4450 = vmatprep.subr.bf16.mxu1 %v6219_v41  ;;  %4482 = vmatprep.subr.bf16.mxu0 %v6221_v43  ;;  %v6291_v50 = vpack.c.bf16 %v1075_v38, %v1071_v37  ;;  %v1108_v37 = vld [vmem:[#allocation12 + $0x68] sm:$0xff]  ;;  %v1106_v38 = vld [vmem:[#allocation12 + $0x58] sm:$0xff]  ;;  %v6329_v46 = vpack.c.bf16 %v1101_v32, %v1097_v31  ;;  %v6351_v31 = vld [vmem:[#allocation3] sm:$0xff] }
 0x1aa   :  { %7053 = vst [vmem:[#allocation27_spill] sm:$0xff] %v6285_v39  ;;  %7066 = vst [vmem:[#allocation40_spill] sm:$0xff] %v6323_v30  ;;  %v6333_v49 = vpack.c.bf16 %v1108_v37, %v1104_v33  ;;  %v1124_v20 = vld [vmem:[#allocation12 + $0xe8] sm:$0xff]  ;;  %v1126_v28 = vld [vmem:[#allocation12 + $0xf8] sm:$0xff] }
 0x1ab   :  { %752 = vmatmul.mubr.f32.vlgmr.msra.gmra.mrb[4].mxu1 %v6206_v42  ;;  %829 = vmatmul.mubr.f32.vlgmr.msra.gmra.mrb[6].mxu0 %v6206_v42  ;;  %v1053_v42 = vld [vmem:[#allocation11 + $0xb0] sm:$0xff]  ;;  %7055 = vst [vmem:[#allocation29_spill] sm:$0xff] %v6291_v50  ;;  %v1119_v37 = vld [vmem:[#allocation12 + $0xc0] sm:$0xff] }
 0x1ac   :  { %4452 = vmatpush1.bf16.msra.mxu1 %v6223_v51  ;;  %4484 = vmatpush1.bf16.msra.mxu0 %v6225_v52  ;;  %v6255_v11 = vpack.c.bf16 %v1053_v42, %v1049_v6  ;;  %v1094_v6 = vld [vmem:[#allocation11 + $0x1f8] sm:$0xff]  ;;  %v6303_v42 = vpack.c.bf16 %v1083_v56, %v1079_v54  ;;  %v6335_v54 = vpack.c.bf16 %v1110_v44, %v1106_v38  ;;  %v1105_v56 = vld [vmem:[#allocation12 + $0x50] sm:$0xff]  ;;  %v1123_v38 = vld [vmem:[#allocation12 + $0xe0] sm:$0xff] }
 0x1ad   :  { %757 = vmatprep.mubr.f32.mxu1 %v6203_v36  ;;  %834 = vmatprep.mubr.f32.mxu0 %v6203_v36  ;;  %v6253_v36 = vpack.c.bf16 %v1051_v3, %v1047_v2  ;;  %v1092_v2 = vld [vmem:[#allocation11 + $0x1e8] sm:$0xff]  ;;  %v1090_v3 = vld [vmem:[#allocation11 + $0x1d8] sm:$0xff]  ;;  %v6343_v8 = vpack.c.bf16 %v1109_v61, %v1105_v56  ;;  %v6363_v44 = vpack.c.bf16 %v1124_v20, %v1120_v19  ;;  %v1125_v56 = vld [vmem:[#allocation12 + $0xf0] sm:$0xff] }
 0x1ae   :  { %4454 = vmatprep.subr.bf16.mxu1 %v6229_v59  ;;  %4486 = vmatprep.subr.bf16.mxu0 %v6231_v60  ;;  %7059 = vst [vmem:[#allocation33_spill] sm:$0xff] %v6303_v42  ;;  %v6309_v10 = vpack.c.bf16 %v1092_v2, %v1088_v63  ;;  %v6311_v12 = vpack.c.bf16 %v1094_v6, %v1090_v3  ;;  %v1116_v63 = vld [vmem:[#allocation12 + $0xa8] sm:$0xff]  ;;  %v1114_v2 = vld [vmem:[#allocation12 + $0x98] sm:$0xff]  ;;  %v1129_v20 = vld [vmem:[#allocation12 + $0x110] sm:$0xff] }
 0x1af   :  { %758 = vmatmul.mubr.f32.gmra.mrb[6].mxu1 %v6211_v55  ;;  %835 = vmatmul.mubr.f32.gmra.mrb[8].mxu0 %v6211_v55  ;;  %v1061_v55 = vld [vmem:[#allocation11 + $0xf0] sm:$0xff]  ;;  %v1118_v3 = vld [vmem:[#allocation12 + $0xb8] sm:$0xff]  ;;  %v6341_v6 = vpack.c.bf16 %v1107_v48, %v1103_v47  ;;  %7070 = vst [vmem:[#allocation44_spill] sm:$0xff] %v6363_v44  ;;  %v6365_v47 = vpack.c.bf16 %v1126_v28, %v1122_v26  ;;  %v1128_v61 = vld [vmem:[#allocation12 + $0x108] sm:$0xff] }
 0x1b0   :  { %4456 = vmatpush1.bf16.msra.mxu1 %v6237_v0  ;;  %4488 = vmatpush1.bf16.msra.mxu0 %v6239_v1  ;;  %v6269_v24 = vpack.c.bf16 %v1061_v55, %v1057_v16  ;;  %7061 = vst [vmem:[#allocation35_spill] sm:$0xff] %v6309_v10  ;;  %7062 = vst [vmem:[#allocation36_spill] sm:$0xff] %v6311_v12  ;;  %v1093_v16 = vld [vmem:[#allocation11 + $0x1f0] sm:$0xff]  ;;  %v1096_v55 = vld [vmem:[#allocation12 + $0x8] sm:$0xff] }
 0x1b1   :  { %4458 = vmatprep.subr.bf16.mxu1 %v6243_v4  ;;  %4490 = vmatprep.subr.bf16.mxu0 %v6245_v5  ;;  %v6317_v25 = vpack.c.bf16 %v1093_v16, %v1089_v13  ;;  %v6321_v29 = vpack.c.bf16 %v1100_v18, %v1096_v55  ;;  %v1115_v13 = vld [vmem:[#allocation12 + $0xa0] sm:$0xff]  ;;  %v6347_v16 = vpack.c.bf16 %v1116_v63, %v1112_v62  ;;  %v1113_v18 = vld [vmem:[#allocation12 + $0x90] sm:$0xff]  ;;  %v1132_v62 = vld [vmem:[#allocation12 + $0x128] sm:$0xff] }
 0x1b2   :  { %1231 = vmatprep.mubr.f32.mxu1 %v5951_v21  ;;  %1302 = vmatprep.mubr.f32.mxu0 %v5951_v21  ;;  %7048 = vst [vmem:[#allocation22_spill] sm:$0xff] %v6269_v24  ;;  %v6349_v55 = vpack.c.bf16 %v1118_v3, %v1114_v2  ;;  %v6357_v32 = vpack.c.bf16 %v1115_v13, %v1111_v9  ;;  %7071 = vst [vmem:[#allocation45_spill] sm:$0xff] %v6365_v47  ;;  %v1121_v48 = vld [vmem:[#allocation12 + $0xd0] sm:$0xff]  ;;  %v1130_v63 = vld [vmem:[#allocation12 + $0x118] sm:$0xff] }
 0x1b3   :  { %7064 = vst [vmem:[#allocation38_spill] sm:$0xff] %v6317_v25  ;;  %7065 = vst [vmem:[#allocation39_spill] sm:$0xff] %v6321_v29  ;;  %v1134_v2 = vld [vmem:[#allocation12 + $0x138] sm:$0xff]  ;;  %v6369_v3 = vpack.c.bf16 %v1123_v38, %v1119_v37  ;;  %v6371_v9 = vpack.c.bf16 %v1125_v56, %v1121_v48  ;;  %v1127_v13 = vld [vmem:[#allocation12 + $0x100] sm:$0xff] }
 0x1b4   :  { %4460 = vmatpush1.bf16.msra.mxu1 %v6253_v36  ;;  %4492 = vmatpush1.bf16.msra.mxu0 %v6255_v11  ;;  %7067 = vst [vmem:[#allocation41_spill] sm:$0xff] %v6349_v55  ;;  %7068 = vst [vmem:[#allocation42_spill] sm:$0xff] %v6357_v32  ;;  %v6377_v19 = vpack.c.bf16 %v1134_v2, %v1130_v63  ;;  %v1133_v26 = vld [vmem:[#allocation12 + $0x130] sm:$0xff]  ;;  %v1136_v28 = vld [vmem:[#allocation12 + $0x148] sm:$0xff] }
 0x1b5   :  { %4462 = vmatprep.subr.bf16.mxu1 %v6259_v14  ;;  %4494 = vmatprep.subr.bf16.mxu0 %v6261_v15  ;;  %7072 = vst [vmem:[#allocation46_spill] sm:$0xff] %v6369_v3  ;;  %7073 = vst [vmem:[#allocation47_spill] sm:$0xff] %v6371_v9  ;;  %v6383_v38 = vpack.c.bf16 %v1133_v26, %v1129_v20  ;;  %v1135_v48 = vld [vmem:[#allocation12 + $0x140] sm:$0xff]  ;;  %v1137_v63 = vld [vmem:[#allocation12 + $0x150] sm:$0xff] }
 0x1b6   :  { %7075 = vst [vmem:[#allocation49_spill] sm:$0xff] %v6377_v19  ;;  %v1139_v56 = vld [vmem:[#allocation12 + $0x160] sm:$0xff]  ;;  %v1141_v2 = vld [vmem:[#allocation12 + $0x170] sm:$0xff] }
 0x1b7   :  { %7077 = vst [vmem:[#allocation51_spill] sm:$0xff] %v6383_v38  ;;  %v1143_v20 = vld [vmem:[#allocation12 + $0x180] sm:$0xff] }
 0x1b8   :  { %4464 = vmatpush1.bf16.msra.mxu1 %v6267_v23  ;;  %4496 = vmatpush1.bf16.msra.mxu0 %v6269_v24  ;;  %v1147_v26 = vld [vmem:[#allocation12 + $0x1a0] sm:$0xff] }
 0x1b9   :  { %4466 = vmatprep.subr.bf16.mxu1 %v6273_v17  ;;  %4498 = vmatprep.subr.bf16.mxu0 %v6275_v27 }
 0x1bc   :  { %4468 = vmatpush1.bf16.msra.mxu1 %v6279_v34  ;;  %4500 = vmatpush1.bf16.msra.mxu0 %v6281_v35 }
 0x1bd   :  { %4470 = vmatprep.subr.bf16.mxu1 %v6285_v39  ;;  %4502 = vmatprep.subr.bf16.mxu0 %v6287_v40 }
 0x1c0   :  { %4472 = vmatpush1.bf16.msra.mxu1 %v6291_v50  ;;  %4504 = vmatpush1.bf16.msra.mxu0 %v6293_v53 }
 0x1c1   :  { %4474 = vmatprep.subr.bf16.mxu1 %v6297_v57  ;;  %4506 = vmatprep.subr.bf16.mxu0 %v6299_v58 }
 0x1c4   :  { %4476 = vmatpush1.bf16.msra.mxu1 %v6303_v42  ;;  %4508 = vmatpush1.bf16.msra.mxu0 %v6305_v7 }
 0x1c5   :  { %4478 = vmatprep.subr.bf16.mxu1 %v6309_v10  ;;  %4510 = vmatprep.subr.bf16.mxu0 %v6311_v12 }
 0x1c8   :  { %4480 = vmatpush1.bf16.msra.mxu1 %v6315_v22  ;;  %4512 = vmatpush1.bf16.msra.mxu0 %v6317_v25 }
 0x1c9   :  { %4514 = vmatprep.subr.bf16.mxu1 %v6321_v29  ;;  %4546 = vmatprep.subr.bf16.mxu0 %v6323_v30 }
 0x1cb   :  { %1232 = vmatmul.mubr.f32.vlgmr.msra.gmra.mrb[8].mxu1 %v5951_v21  ;;  %1303 = vmatmul.mubr.f32.vlgmr.msra.gmra.mrb[10].mxu0 %v5951_v21  ;;  %v1117_v21 = vld [vmem:[#allocation12 + $0xb0] sm:$0xff] }
 0x1cc   :  { %4516 = vmatpush1.bf16.msra.mxu1 %v6327_v45  ;;  %4548 = vmatpush1.bf16.msra.mxu0 %v6329_v46  ;;  %v6359_v33 = vpack.c.bf16 %v1117_v21, %v1113_v18  ;;  %v1131_v18 = vld [vmem:[#allocation12 + $0x120] sm:$0xff]  ;;  %v6375_v21 = vpack.c.bf16 %v1132_v62, %v1128_v61 }
 0x1cd   :  { %4518 = vmatprep.subr.bf16.mxu1 %v6333_v49  ;;  %4550 = vmatprep.subr.bf16.mxu0 %v6335_v54  ;;  %v6381_v37 = vpack.c.bf16 %v1131_v18, %v1127_v13  ;;  %v6393_v13 = vpack.c.bf16 %v1139_v56, %v1135_v48  ;;  %v6395_v18 = vpack.c.bf16 %v1141_v2, %v1137_v63  ;;  %v1151_v63 = vld [vmem:[#allocation12 + $0x1c0] sm:$0xff]  ;;  %v1157_v2 = vld [vmem:[#allocation12 + $0x1f0] sm:$0xff] }
 0x1ce   :  { %1401 = vmatprep.mubr.f32.mxu1 %v6351_v31  ;;  %1472 = vmatprep.mubr.f32.mxu0 %v6351_v31  ;;  %7069 = vst [vmem:[#allocation43_spill] sm:$0xff] %v6359_v33  ;;  %7074 = vst [vmem:[#allocation48_spill] sm:$0xff] %v6375_v21  ;;  %v6405_v48 = vpack.c.bf16 %v1147_v26, %v1143_v20 }
 0x1cf   :  { %7076 = vst [vmem:[#allocation50_spill] sm:$0xff] %v6381_v37 }
 0x1d0   :  { %4520 = vmatpush1.bf16.msra.mxu1 %v6341_v6  ;;  %4552 = vmatpush1.bf16.msra.mxu0 %v6343_v8 }
 0x1d1   :  { %4522 = vmatprep.subr.bf16.mxu1 %v6347_v16  ;;  %4554 = vmatprep.subr.bf16.mxu0 %v6349_v55  ;;  %v1138_v55 = vld [vmem:[#allocation12 + $0x158] sm:$0xff] }
 0x1d4   :  { %4524 = vmatpush1.bf16.msra.mxu1 %v6357_v32  ;;  %4556 = vmatpush1.bf16.msra.mxu0 %v6359_v33  ;;  %v1140_v32 = vld [vmem:[#allocation12 + $0x168] sm:$0xff]  ;;  %v1142_v33 = vld [vmem:[#allocation12 + $0x178] sm:$0xff] }
 0x1d5   :  { %4526 = vmatprep.subr.bf16.mxu1 %v6363_v44  ;;  %4558 = vmatprep.subr.bf16.mxu0 %v6365_v47  ;;  %v6387_v61 = vpack.c.bf16 %v1140_v32, %v1136_v28  ;;  %v6389_v62 = vpack.c.bf16 %v1142_v33, %v1138_v55  ;;  %v1144_v47 = vld [vmem:[#allocation12 + $0x188] sm:$0xff]  ;;  %v1146_v44 = vld [vmem:[#allocation12 + $0x198] sm:$0xff]  ;;  %v1145_v33 = vld [vmem:[#allocation12 + $0x190] sm:$0xff] }
 0x1d6   :  { %v1149_v28 = vld [vmem:[#allocation12 + $0x1b0] sm:$0xff] }
 0x1d7   :  { %v6407_v56 = vpack.c.bf16 %v1149_v28, %v1145_v33  ;;  %v491_v33 = vld [vmem:[%s6973_s5] sm:$0xff] }
 0x1d8   :  { %4528 = vmatpush1.bf16.msra.mxu1 %v6369_v3  ;;  %4560 = vmatpush1.bf16.msra.mxu0 %v6371_v9  ;;  %v1148_v3 = vld [vmem:[#allocation12 + $0x1a8] sm:$0xff]  ;;  %v1150_v9 = vld [vmem:[#allocation12 + $0x1b8] sm:$0xff] }
 0x1d9   :  { %4530 = vmatprep.subr.bf16.mxu1 %v6375_v21  ;;  %4562 = vmatprep.subr.bf16.mxu0 %v6377_v19  ;;  %v6399_v55 = vpack.c.bf16 %v1148_v3, %v1144_v47  ;;  %v6401_v32 = vpack.c.bf16 %v1150_v9, %v1146_v44  ;;  %v1152_v19 = vld [vmem:[#allocation12 + $0x1c8] sm:$0xff]  ;;  %v1154_v21 = vld [vmem:[#allocation12 + $0x1d8] sm:$0xff]  ;;  %v1155_v3 = vld [vmem:[#allocation12 + $0x1e0] sm:$0xff] }
 0x1da   :  { %v1153_v9 = vld [vmem:[#allocation12 + $0x1d0] sm:$0xff]  ;;  %v6417_v20 = vpack.c.bf16 %v1155_v3, %v1151_v63 }
 0x1db   :  { %v6419_v26 = vpack.c.bf16 %v1157_v2, %v1153_v9 }
 0x1dc   :  { %4532 = vmatpush1.bf16.msra.mxu1 %v6381_v37  ;;  %4564 = vmatpush1.bf16.msra.mxu0 %v6383_v38  ;;  %v1156_v37 = vld [vmem:[#allocation12 + $0x1e8] sm:$0xff]  ;;  %v1158_v38 = vld [vmem:[#allocation12 + $0x1f8] sm:$0xff] }
 0x1dd   :  { %4534 = vmatprep.subr.bf16.mxu1 %v6387_v61  ;;  %4566 = vmatprep.subr.bf16.mxu0 %v6389_v62  ;;  %v6411_v44 = vpack.c.bf16 %v1156_v37, %v1152_v19  ;;  %v6413_v47 = vpack.c.bf16 %v1158_v38, %v1154_v21  ;;  %v493_v21 = vlaneseq }
 0x1df   :  { %v494_v19 = vshrl.u32 %v493_v21, 7 }
 0x1e0   :  { %4536 = vmatpush1.bf16.msra.mxu1 %v6393_v13  ;;  %4568 = vmatpush1.bf16.msra.mxu0 %v6395_v18 }
 0x1e1   :  { %4538 = vmatprep.subr.bf16.mxu1 %v6399_v55  ;;  %4570 = vmatprep.subr.bf16.mxu0 %v6401_v32  ;;  %v495_v37 = vsub.s32 0, %v494_v19  ;;  %v503_v38 = vsub.s32 2, %v494_v19  ;;  %v499_v28 = vsub.s32 1, %v494_v19  ;;  %v507_v63 = vsub.s32 3, %v494_v19 }
 0x1e3   :  { %v496_v3 = vrot.slane %v491_v33, %v495_v37  ;;  %v504_v9 = vrot.slane %v491_v33, %v503_v38  ;;  %v500_v2 = vrot.slane %v491_v33, %v499_v28 }
 0x1e4   :  { %4540 = vmatpush1.bf16.msra.mxu1 %v6405_v48  ;;  %4572 = vmatpush1.bf16.msra.mxu0 %v6407_v56 }
 0x1e5   :  { %4542 = vmatprep.subr.bf16.mxu1 %v6411_v44  ;;  %4574 = vmatprep.subr.bf16.mxu0 %v6413_v47 }
 0x1e8   :  { %4544 = vmatpush1.bf16.msra.mxu1 %v6417_v20  ;;  %4576 = vmatpush1.bf16.msra.mxu0 %v6419_v26 }
 0x1e9   :  { %4578 = vmatprep.subr.bf16.mxu1 %v6219_v41  ;;  %4610 = vmatprep.subr.bf16.mxu0 %v6221_v43 }
 0x1eb   :  { %1402 = vmatmul.mubr.f32.vlgmr.msra.gmra.mrb[10].mxu1 %v6351_v31  ;;  %1473 = vmatmul.mubr.f32.vlgmr.msra.gmra.mrb[12].mxu0 %v6351_v31 }
 0x1ec   :  { %4580 = vmatpush1.bf16.msra.mxu1 %v6223_v51  ;;  %4612 = vmatpush1.bf16.msra.mxu0 %v6225_v52 }
 0x1ed   :  { %4582 = vmatprep.subr.bf16.mxu1 %v6229_v59  ;;  %4614 = vmatprep.subr.bf16.mxu0 %v6231_v60 }
 0x1ee   :  { %1579 = vmatprep.mubr.f32.mxu1 %v6351_v31  ;;  %1650 = vmatprep.mubr.f32.mxu0 %v6351_v31 }
 0x1f0   :  { %4584 = vmatpush1.bf16.msra.mxu1 %v6237_v0  ;;  %4616 = vmatpush1.bf16.msra.mxu0 %v6239_v1 }
 0x1f1   :  { %4586 = vmatprep.subr.bf16.mxu1 %v6243_v4  ;;  %4618 = vmatprep.subr.bf16.mxu0 %v6245_v5 }
 0x1f4   :  { %4588 = vmatpush1.bf16.msra.mxu1 %v6253_v36  ;;  %4620 = vmatpush1.bf16.msra.mxu0 %v6255_v11 }
 0x1f5   :  { %4590 = vmatprep.subr.bf16.mxu1 %v6259_v14  ;;  %4622 = vmatprep.subr.bf16.mxu0 %v6261_v15 }
 0x1f8   :  { %4592 = vmatpush1.bf16.msra.mxu1 %v6267_v23  ;;  %4624 = vmatpush1.bf16.msra.mxu0 %v6269_v24 }
 0x1f9   :  { %4594 = vmatprep.subr.bf16.mxu1 %v6273_v17  ;;  %4626 = vmatprep.subr.bf16.mxu0 %v6275_v27 }
 0x1fc   :  { %4596 = vmatpush1.bf16.msra.mxu1 %v6279_v34  ;;  %4628 = vmatpush1.bf16.msra.mxu0 %v6281_v35 }
 0x1fd   :  { %4598 = vmatprep.subr.bf16.mxu1 %v6285_v39  ;;  %4630 = vmatprep.subr.bf16.mxu0 %v6287_v40 }
 0x200   :  { %4600 = vmatpush1.bf16.msra.mxu1 %v6291_v50  ;;  %4632 = vmatpush1.bf16.msra.mxu0 %v6293_v53 }
 0x201   :  { %4602 = vmatprep.subr.bf16.mxu1 %v6297_v57  ;;  %4634 = vmatprep.subr.bf16.mxu0 %v6299_v58 }
 0x204   :  { %4604 = vmatpush1.bf16.msra.mxu1 %v6303_v42  ;;  %4636 = vmatpush1.bf16.msra.mxu0 %v6305_v7 }
 0x205   :  { %4606 = vmatprep.subr.bf16.mxu1 %v6309_v10  ;;  %4638 = vmatprep.subr.bf16.mxu0 %v6311_v12 }
 0x208   :  { %4608 = vmatpush1.bf16.msra.mxu1 %v6315_v22  ;;  %4640 = vmatpush1.bf16.msra.mxu0 %v6317_v25  ;;  %v508_v22 = vrot.slane %v491_v33, %v507_v63 }
 0x209   :  { %4642 = vmatprep.subr.bf16.mxu1 %v6321_v29  ;;  %4674 = vmatprep.subr.bf16.mxu0 %v6323_v30 }
 0x23e   :  { %v599_v12 = vpop.f32.mrb[0].mxu1  ;;  %v676_v25 = vpop.f32.mrb[2].mxu0 }
 0x23f   :  { %v600_v10 = vadd.f32 %v599_v12, %v496_v3  ;;  %v677_v29 = vadd.f32 %v676_v25, %v504_v9  ;;  %v601_v7 = vpop.f32.mrb[1].mxu1  ;;  %v678_v30 = vpop.f32.mrb[3].mxu0  ;;  %v511_v12 = vsub.s32 4, %v494_v19  ;;  %v519_v25 = vsub.s32 6, %v494_v19 }
 0x240   :  { %v602_v42 = vadd.f32 %v601_v7, %v500_v2  ;;  %v679_v21 = vadd.f32 %v678_v30, %v508_v22  ;;  %v515_v7 = vsub.s32 5, %v494_v19  ;;  %v523_v30 = vsub.s32 7, %v494_v19 }
 0x241   :  { %841 = vst [vmem:[#allocation2] sm:$0xff] %v600_v10  ;;  %843 = vst [vmem:[#allocation2 + $0x10] sm:$0xff] %v677_v29  ;;  %v512_v10 = vrot.slane %v491_v33, %v511_v12  ;;  %v520_v29 = vrot.slane %v491_v33, %v519_v25 }
 0x242   :  { %842 = vst [vmem:[#allocation2 + $0x8] sm:$0xff] %v602_v42  ;;  %844 = vst [vmem:[#allocation2 + $0x18] sm:$0xff] %v679_v21  ;;  %v605_v58 = vpop.f32.mrb[2].mxu1  ;;  %v682_v57 = vpop.f32.mrb[4].mxu0  ;;  %v516_v42 = vrot.slane %v491_v33, %v515_v7  ;;  %v524_v21 = vrot.slane %v491_v33, %v523_v30 }
 0x243   :  { %v606_v53 = vadd.f32 %v605_v58, %v496_v3  ;;  %v683_v50 = vadd.f32 %v682_v57, %v504_v9  ;;  %v607_v37 = vpop.f32.mrb[3].mxu1  ;;  %v684_v38 = vpop.f32.mrb[5].mxu0 }
 0x244   :  { %v608_v28 = vadd.f32 %v607_v37, %v500_v2  ;;  %v685_v63 = vadd.f32 %v684_v38, %v508_v22 }
 0x245   :  { %849 = vst [vmem:[#allocation2 + $0x40] sm:$0xff] %v606_v53  ;;  %851 = vst [vmem:[#allocation2 + $0x50] sm:$0xff] %v683_v50 }
 0x246   :  { %850 = vst [vmem:[#allocation2 + $0x48] sm:$0xff] %v608_v28  ;;  %852 = vst [vmem:[#allocation2 + $0x58] sm:$0xff] %v685_v63 }
 0x249   :  { %v934_v12 = vld [vmem:[#allocation2 + $0x2] ss:$8 sm:$0xf]  ;;  %v941_v25 = vld [vmem:[#allocation2 + $0x3] ss:$8 sm:$0xf] }
 0x24a   :  { %v948_v7 = vld [vmem:[#allocation2 + $0x4] ss:$8 sm:$0xf]  ;;  %v955_v30 = vld [vmem:[#allocation2 + $0x5] ss:$8 sm:$0xf] }
 0x27e   :  { %v753_v40 = vpop.f32.mrb[4].mxu1  ;;  %v830_v39 = vpop.f32.mrb[6].mxu0 }
 0x27f   :  { %v754_v58 = vadd.f32 %v753_v40, %v512_v10  ;;  %v831_v57 = vadd.f32 %v830_v39, %v520_v29  ;;  %v755_v3 = vpop.f32.mrb[5].mxu1  ;;  %v832_v9 = vpop.f32.mrb[7].mxu0  ;;  %v921_v39 = vld [vmem:[#allocation2] ss:$8 sm:$0xf] }
 0x280   :  { %v756_v2 = vadd.f32 %v755_v3, %v516_v42  ;;  %v833_v22 = vadd.f32 %v832_v9, %v524_v21  ;;  %v927_v40 = vld [vmem:[#allocation2 + $0x1] ss:$8 sm:$0xf]  ;;  %v962_v3 = vld [vmem:[#allocation2 + $0x6] ss:$8 sm:$0xf] }
 0x281   :  { %845 = vst [vmem:[#allocation2 + $0x20] sm:$0xff] %v754_v58  ;;  %847 = vst [vmem:[#allocation2 + $0x30] sm:$0xff] %v831_v57  ;;  %v969_v9 = vld [vmem:[#allocation2 + $0x7] ss:$8 sm:$0xf] }
 0x282   :  { %846 = vst [vmem:[#allocation2 + $0x28] sm:$0xff] %v756_v2  ;;  %848 = vst [vmem:[#allocation2 + $0x38] sm:$0xff] %v833_v22  ;;  %v759_v50 = vpop.f32.mrb[6].mxu1  ;;  %v836_v53 = vpop.f32.mrb[8].mxu0 }
 0x283   :  { %v760_v37 = vadd.f32 %v759_v50, %v512_v10  ;;  %v837_v19 = vadd.f32 %v836_v53, %v520_v29  ;;  %v761_v38 = vpop.f32.mrb[7].mxu1  ;;  %v838_v28 = vpop.f32.mrb[9].mxu0 }
 0x284   :  { %v762_v63 = vadd.f32 %v761_v38, %v516_v42  ;;  %v839_v33 = vadd.f32 %v838_v28, %v524_v21  ;;  %v976_v42 = vld [vmem:[#allocation2 + $0x40] ss:$8 sm:$0xf]  ;;  %v983_v21 = vld [vmem:[#allocation2 + $0x41] ss:$8 sm:$0xf] }
 0x285   :  { %853 = vst [vmem:[#allocation2 + $0x60] sm:$0xff] %v760_v37  ;;  %855 = vst [vmem:[#allocation2 + $0x70] sm:$0xff] %v837_v19  ;;  %v990_v38 = vld [vmem:[#allocation2 + $0x42] ss:$8 sm:$0xf] }
 0x286   :  { %854 = vst [vmem:[#allocation2 + $0x68] sm:$0xff] %v762_v63  ;;  %856 = vst [vmem:[#allocation2 + $0x78] sm:$0xff] %v839_v33  ;;  %v997_v28 = vld [vmem:[#allocation2 + $0x43] ss:$8 sm:$0xf] }
 0x289   :  { %v922_v58 = vld [vmem:[#allocation2] ss:$8 sm:$0xf0]  ;;  %v928_v57 = vld [vmem:[#allocation2 + $0x1] ss:$8 sm:$0xf0] }
 0x28a   :  { %v923_v10 = vor.u32 %v922_v58, %v921_v39  ;;  %v929_v29 = vor.u32 %v928_v57, %v927_v40  ;;  %v935_v2 = vld [vmem:[#allocation2 + $0x2] ss:$8 sm:$0xf0]  ;;  %v942_v22 = vld [vmem:[#allocation2 + $0x3] ss:$8 sm:$0xf0] }
 0x28b   :  { %v936_v50 = vor.u32 %v935_v2, %v934_v12  ;;  %v943_v53 = vor.u32 %v942_v22, %v941_v25  ;;  %v949_v37 = vld [vmem:[#allocation2 + $0x4] ss:$8 sm:$0xf0]  ;;  %v956_v19 = vld [vmem:[#allocation2 + $0x5] ss:$8 sm:$0xf0] }
 0x28c   :  { %v950_v63 = vor.u32 %v949_v37, %v948_v7  ;;  %v957_v33 = vor.u32 %v956_v19, %v955_v30  ;;  %v963_v35 = vld [vmem:[#allocation2 + $0x6] ss:$8 sm:$0xf0]  ;;  %v970_v34 = vld [vmem:[#allocation2 + $0x7] ss:$8 sm:$0xf0] }
 0x28d   :  { %924 = vst [vmem:[#allocation3] ss:$8 sm:$0xf] %v923_v10  ;;  %925 = vst [vmem:[#allocation3] ss:$8 sm:$0xf0] %v923_v10  ;;  %v964_v58 = vor.u32 %v963_v35, %v962_v3  ;;  %v971_v57 = vor.u32 %v970_v34, %v969_v9 }
 0x28e   :  { %931 = vst [vmem:[#allocation3 + $0x40] ss:$8 sm:$0xf] %v929_v29  ;;  %932 = vst [vmem:[#allocation3 + $0x40] ss:$8 sm:$0xf0] %v929_v29 }
 0x28f   :  { %v1004_v39 = vld [vmem:[#allocation2 + $0x44] ss:$8 sm:$0xf]  ;;  %v1011_v40 = vld [vmem:[#allocation2 + $0x45] ss:$8 sm:$0xf] }
 0x290   :  { %938 = vst [vmem:[#allocation3 + $0x80] ss:$8 sm:$0xf] %v936_v50  ;;  %939 = vst [vmem:[#allocation3 + $0x80] ss:$8 sm:$0xf0] %v936_v50 }
 0x291   :  { %945 = vst [vmem:[#allocation3 + $0xc0] ss:$8 sm:$0xf] %v943_v53  ;;  %946 = vst [vmem:[#allocation3 + $0xc0] ss:$8 sm:$0xf0] %v943_v53 }
 0x292   :  { %v977_v12 = vld [vmem:[#allocation2 + $0x40] ss:$8 sm:$0xf0]  ;;  %v984_v25 = vld [vmem:[#allocation2 + $0x41] ss:$8 sm:$0xf0] }
 0x293   :  { %v1018_v2 = vld [vmem:[#allocation2 + $0x46] ss:$8 sm:$0xf]  ;;  %v1025_v22 = vld [vmem:[#allocation2 + $0x47] ss:$8 sm:$0xf]  ;;  %v978_v7 = vor.u32 %v977_v12, %v976_v42  ;;  %v985_v30 = vor.u32 %v984_v25, %v983_v21 }
 0x294   :  { %952 = vst [vmem:[#allocation3 + $0x100] ss:$8 sm:$0xf] %v950_v63  ;;  %953 = vst [vmem:[#allocation3 + $0x100] ss:$8 sm:$0xf0] %v950_v63 }
 0x295   :  { %959 = vst [vmem:[#allocation3 + $0x140] ss:$8 sm:$0xf] %v957_v33  ;;  %960 = vst [vmem:[#allocation3 + $0x140] ss:$8 sm:$0xf0] %v957_v33 }
 0x296   :  { %v991_v10 = vld [vmem:[#allocation2 + $0x42] ss:$8 sm:$0xf0]  ;;  %v998_v29 = vld [vmem:[#allocation2 + $0x43] ss:$8 sm:$0xf0] }
 0x297   :  { %966 = vst [vmem:[#allocation3 + $0x180] ss:$8 sm:$0xf] %v964_v58  ;;  %967 = vst [vmem:[#allocation3 + $0x180] ss:$8 sm:$0xf0] %v964_v58  ;;  %v992_v34 = vor.u32 %v991_v10, %v990_v38  ;;  %v999_v35 = vor.u32 %v998_v29, %v997_v28 }
 0x298   :  { %973 = vst [vmem:[#allocation3 + $0x1c0] ss:$8 sm:$0xf] %v971_v57  ;;  %974 = vst [vmem:[#allocation3 + $0x1c0] ss:$8 sm:$0xf0] %v971_v57 }
 0x299   :  { %v1005_v3 = vld [vmem:[#allocation2 + $0x44] ss:$8 sm:$0xf0]  ;;  %v1012_v9 = vld [vmem:[#allocation2 + $0x45] ss:$8 sm:$0xf0] }
 0x29a   :  { %v1006_v50 = vor.u32 %v1005_v3, %v1004_v39  ;;  %v1013_v53 = vor.u32 %v1012_v9, %v1011_v40  ;;  %v1019_v37 = vld [vmem:[#allocation2 + $0x46] ss:$8 sm:$0xf0]  ;;  %v1026_v19 = vld [vmem:[#allocation2 + $0x47] ss:$8 sm:$0xf0] }
 0x29b   :  { %980 = vst [vmem:[#allocation3 + $0x1] ss:$8 sm:$0xf] %v978_v7  ;;  %981 = vst [vmem:[#allocation3 + $0x1] ss:$8 sm:$0xf0] %v978_v7  ;;  %v1020_v42 = vor.u32 %v1019_v37, %v1018_v2  ;;  %v1027_v21 = vor.u32 %v1026_v19, %v1025_v22 }
 0x29c   :  { %987 = vst [vmem:[#allocation3 + $0x41] ss:$8 sm:$0xf] %v985_v30  ;;  %988 = vst [vmem:[#allocation3 + $0x41] ss:$8 sm:$0xf0] %v985_v30 }
 0x29d   :  { %994 = vst [vmem:[#allocation3 + $0x81] ss:$8 sm:$0xf] %v992_v34  ;;  %995 = vst [vmem:[#allocation3 + $0x81] ss:$8 sm:$0xf0] %v992_v34 }
 0x29e   :  { %1001 = vst [vmem:[#allocation3 + $0xc1] ss:$8 sm:$0xf] %v999_v35  ;;  %1002 = vst [vmem:[#allocation3 + $0xc1] ss:$8 sm:$0xf0] %v999_v35 }
 0x29f   :  { %1008 = vst [vmem:[#allocation3 + $0x101] ss:$8 sm:$0xf] %v1006_v50  ;;  %1009 = vst [vmem:[#allocation3 + $0x101] ss:$8 sm:$0xf0] %v1006_v50 }
 0x2a0   :  { %1015 = vst [vmem:[#allocation3 + $0x141] ss:$8 sm:$0xf] %v1013_v53  ;;  %1016 = vst [vmem:[#allocation3 + $0x141] ss:$8 sm:$0xf0] %v1013_v53 }
 0x2a1   :  { %1022 = vst [vmem:[#allocation3 + $0x181] ss:$8 sm:$0xf] %v1020_v42  ;;  %1023 = vst [vmem:[#allocation3 + $0x181] ss:$8 sm:$0xf0] %v1020_v42 }
 0x2a2   :  { %1029 = vst [vmem:[#allocation3 + $0x1c1] ss:$8 sm:$0xf] %v1027_v21  ;;  %1030 = vst [vmem:[#allocation3 + $0x1c1] ss:$8 sm:$0xf0] %v1027_v21 }
 0x2a3   :  { %v1159_v38 = vld [vmem:[#allocation3] sm:$0xff]  ;;  %v1233_v28 = vpop.f32.mrb[8].mxu1  ;;  %v1304_v63 = vpop.f32.mrb[10].mxu0  ;;  %v1160_v39 = vld [vmem:[#allocation3 + $0x8] sm:$0xff]  ;;  %v1162_v2 = vld [vmem:[#allocation3 + $0x18] sm:$0xff] }
 0x2a4   :  { %v1309_v33 = vadd.f32 %v1233_v28, %v1159_v38  ;;  %v1235_v40 = vpop.f32.mrb[9].mxu1  ;;  %v1306_v58 = vpop.f32.mrb[11].mxu0  ;;  %v1161_v7 = vld [vmem:[#allocation3 + $0x10] sm:$0xff] }
 0x2a5   :  { %v1310_v57 = vadd.f32 %v1235_v40, %v1160_v39  ;;  %v1312_v22 = vadd.f32 %v1306_v58, %v1162_v2  ;;  %v1311_v10 = vadd.f32 %v1304_v63, %v1161_v7 }
 0x2a6   :  { %v4064_v12 = vmul.f32 -1.442695, %v1309_v33 }
 0x2a7   :  { %v4065_v25 = vmul.f32 -1.442695, %v1310_v57  ;;  %v4066_v30 = vmul.f32 -1.442695, %v1312_v22 }
 0x2a8   :  { %5519 = vpow2.f32 %v4064_v12 }
 0x2a9   :  { %5521 = vpow2.f32 %v4065_v25  ;;  %v1163_v28 = vld [vmem:[#allocation3 + $0x1e0] sm:$0xff]  ;;  %v1164_v40 = vld [vmem:[#allocation3 + $0x1e8] sm:$0xff]  ;;  %v1166_v22 = vld [vmem:[#allocation3 + $0x1f8] sm:$0xff] }
 0x2aa   :  { %5523 = vpow2.f32 %v4066_v30 }
 0x2ab   :  { %5525 = vtanh.f32 %v1311_v10 }
 0x2b2   :  { %v5520_v29 = vpop.eup %5519 }
 0x2b3   :  { %v5522_v34 = vpop.eup %5521  ;;  %v1316_v35 = vadd.f32 1.0, %v5520_v29  ;;  %v1165_v29 = vld [vmem:[#allocation3 + $0x1f0] sm:$0xff] }
 0x2b4   :  { %v1322_v3 = vadd.f32 1.0, %v5522_v34  ;;  %v5524_v9 = vpop.eup %5523 }
 0x2b5   :  { %5527 = vrcp.f32 %v1316_v35  ;;  %v5526_v50 = vpop.eup %5525  ;;  %v1329_v42 = vadd.f32 1.0, %v5524_v9 }
 0x2b6   :  { %5529 = vrcp.f32 %v1322_v3 }
 0x2b7   :  { %5531 = vrcp.f32 %v1329_v42  ;;  %v7079_v42 = vld [vmem:[#allocation42_spill] sm:$0xff] }
 0x2be   :  { %v1403_v33 = vpop.f32.mrb[10].mxu1  ;;  %v1474_v63 = vpop.f32.mrb[12].mxu0 }
 0x2bf   :  { %v5528_v53 = vpop.eup %5527  ;;  %v1479_v39 = vadd.f32 %v1403_v33, %v1163_v28  ;;  %v1405_v58 = vpop.f32.mrb[11].mxu1  ;;  %v1481_v35 = vadd.f32 %v1474_v63, %v1165_v29  ;;  %v7081_v28 = vld [vmem:[#allocation44_spill] sm:$0xff]  ;;  %v7082_v33 = vld [vmem:[#allocation45_spill] sm:$0xff]  ;;  %v7087_v29 = vld [vmem:[#allocation50_spill] sm:$0xff] }
 0x2c0   :  { %v5530_v37 = vpop.eup %5529  ;;  %v1333_v19 = vmul.f32 %v5528_v53, %v5526_v50  ;;  %v1476_v57 = vpop.f32.mrb[13].mxu0  ;;  %v1480_v12 = vadd.f32 %v1405_v58, %v1164_v40  ;;  %v7083_v58 = vld [vmem:[#allocation46_spill] sm:$0xff] }
 0x2c1   :  { %v1332_v21 = vmul.f32 0.0, %v5530_v37  ;;  %v4067_v25 = vmul.f32 -1.442695, %v1479_v39  ;;  %v1482_v7 = vadd.f32 %v1476_v57, %v1166_v22  ;;  %v5532_v30 = vpop.eup %5531  ;;  %v7084_v57 = vld [vmem:[#allocation47_spill] sm:$0xff]  ;;  %v7085_v22 = vld [vmem:[#allocation48_spill] sm:$0xff] }
 0x2c2   :  { %v4068_v2 = vmul.f32 -1.442695, %v1480_v12 }
 0x2c3   :  { %v6466_v38 = vadd.f32 %v1333_v19, %v1332_v21  ;;  %v4069_v34 = vmul.f32 -1.442695, %v1482_v7  ;;  %v7078_v19 = vld [vmem:[#allocation41_spill] sm:$0xff]  ;;  %v7080_v21 = vld [vmem:[#allocation43_spill] sm:$0xff] }
 0x2c4   :  { %v7086_v7 = vld [vmem:[#allocation49_spill] sm:$0xff] }
 0x2c5   :  { %5533 = vtanh.f32 %v6466_v38 }
 0x2c6   :  { %5535 = vpow2.f32 %v4067_v25 }
 0x2c7   :  { %5537 = vpow2.f32 %v4068_v2 }
 0x2c8   :  { %5539 = vpow2.f32 %v4069_v34  ;;  %v7088_v34 = vld [vmem:[#allocation51_spill] sm:$0xff] }
 0x2c9   :  { %5541 = vtanh.f32 %v1481_v35 }
 0x2cf   :  { %v5534_v10 = vpop.eup %5533 }
 0x2d0   :  { %v1336_v3 = vmul.f32 %v5534_v10, %v5532_v30  ;;  %v5536_v9 = vpop.eup %5535 }
 0x2d1   :  { %v5538_v50 = vpop.eup %5537  ;;  %v1486_v53 = vadd.f32 1.0, %v5536_v9 }
 0x2d2   :  { %1580 = vmatmul.mubr.f32.vlgmr.msra.gmra.mrb[12].mxu1 %v1336_v3  ;;  %1651 = vmatmul.mubr.f32.vlgmr.msra.gmra.mrb[14].mxu0 %v1336_v3  ;;  %v1492_v37 = vadd.f32 1.0, %v5538_v50  ;;  %v5540_v63 = vpop.eup %5539  ;;  %v7089_v50 = vld [vmem:[#allocation25_spill] sm:$0xff] }
 0x2d3   :  { %4644 = vmatpush1.bf16.msra.mxu1 %v6327_v45  ;;  %4676 = vmatpush1.bf16.msra.mxu0 %v6329_v46  ;;  %5543 = vrcp.f32 %v1486_v53  ;;  %v5542_v39 = vpop.eup %5541  ;;  %v1499_v2 = vadd.f32 1.0, %v5540_v63  ;;  %v7090_v53 = vld [vmem:[#allocation26_spill] sm:$0xff]  ;;  %v7092_v63 = vld [vmem:[#allocation28_spill] sm:$0xff] }
 0x2d4   :  { %4646 = vmatprep.subr.bf16.mxu1 %v6333_v49  ;;  %4678 = vmatprep.subr.bf16.mxu0 %v6335_v54  ;;  %5545 = vrcp.f32 %v1492_v37  ;;  %v7091_v37 = vld [vmem:[#allocation27_spill] sm:$0xff] }
 0x2d5   :  { %1749 = vmatprep.mubr.f32.mxu1 %v6351_v31  ;;  %1820 = vmatprep.mubr.f32.mxu0 %v6351_v31  ;;  %5547 = vrcp.f32 %v1499_v2  ;;  %v7097_v2 = vld [vmem:[#allocation33_spill] sm:$0xff] }
 0x2d7   :  { %4648 = vmatpush1.bf16.msra.mxu1 %v6341_v6  ;;  %4680 = vmatpush1.bf16.msra.mxu0 %v6343_v8 }
 0x2d8   :  { %4650 = vmatprep.subr.bf16.mxu1 %v6347_v16  ;;  %4682 = vmatprep.subr.bf16.mxu0 %v7078_v19 }
 0x2db   :  { %4652 = vmatpush1.bf16.msra.mxu1 %v7079_v42  ;;  %4684 = vmatpush1.bf16.msra.mxu0 %v7080_v21 }
 0x2dc   :  { %4654 = vmatprep.subr.bf16.mxu1 %v7081_v28  ;;  %4686 = vmatprep.subr.bf16.mxu0 %v7082_v33 }
 0x2dd   :  { %v5544_v40 = vpop.eup %5543 }
 0x2de   :  { %v5546_v12 = vpop.eup %5545  ;;  %v1503_v25 = vmul.f32 %v5544_v40, %v5542_v39  ;;  %v7093_v39 = vld [vmem:[#allocation29_spill] sm:$0xff]  ;;  %v7094_v40 = vld [vmem:[#allocation30_spill] sm:$0xff] }
 0x2df   :  { %4656 = vmatpush1.bf16.msra.mxu1 %v7083_v58  ;;  %4688 = vmatpush1.bf16.msra.mxu0 %v7084_v57  ;;  %v1502_v30 = vmul.f32 0.0, %v5546_v12  ;;  %v5548_v35 = vpop.eup %5547  ;;  %v7095_v12 = vld [vmem:[#allocation31_spill] sm:$0xff] }
 0x2e0   :  { %4658 = vmatprep.subr.bf16.mxu1 %v7085_v22  ;;  %4690 = vmatprep.subr.bf16.mxu0 %v7086_v7 }
 0x2e1   :  { %v6487_v10 = vadd.f32 %v1503_v25, %v1502_v30  ;;  %v7096_v25 = vld [vmem:[#allocation32_spill] sm:$0xff]  ;;  %v7098_v30 = vld [vmem:[#allocation34_spill] sm:$0xff] }
 0x2e3   :  { %4660 = vmatpush1.bf16.msra.mxu1 %v7087_v29  ;;  %4692 = vmatpush1.bf16.msra.mxu0 %v7088_v34  ;;  %5549 = vtanh.f32 %v6487_v10 }
 0x2e4   :  { %4662 = vmatprep.subr.bf16.mxu1 %v6387_v61  ;;  %4694 = vmatprep.subr.bf16.mxu0 %v6389_v62 }
 0x2e7   :  { %4664 = vmatpush1.bf16.msra.mxu1 %v6393_v13  ;;  %4696 = vmatpush1.bf16.msra.mxu0 %v6395_v18 }
 0x2e8   :  { %4666 = vmatprep.subr.bf16.mxu1 %v6399_v55  ;;  %4698 = vmatprep.subr.bf16.mxu0 %v6401_v32 }
 0x2eb   :  { %4668 = vmatpush1.bf16.msra.mxu1 %v6405_v48  ;;  %4700 = vmatpush1.bf16.msra.mxu0 %v6407_v56 }
 0x2ec   :  { %4670 = vmatprep.subr.bf16.mxu1 %v6411_v44  ;;  %4702 = vmatprep.subr.bf16.mxu0 %v6413_v47 }
 0x2ed   :  { %v5550_v3 = vpop.eup %5549 }
 0x2ee   :  { %v1506_v9 = vmul.f32 %v5550_v3, %v5548_v35  ;;  %v7099_v35 = vld [vmem:[#allocation35_spill] sm:$0xff]  ;;  %v7100_v3 = vld [vmem:[#allocation36_spill] sm:$0xff] }
 0x2ef   :  { %4672 = vmatpush1.bf16.msra.mxu1 %v6417_v20  ;;  %4704 = vmatpush1.bf16.msra.mxu0 %v6419_v26 }
 0x2f0   :  { %4706 = vmatprep.subr.bf16.mxu1 %v6219_v41  ;;  %4738 = vmatprep.subr.bf16.mxu0 %v6221_v43 }
 0x2f2   :  { %1750 = vmatmul.mubr.f32.vlgmr.msra.gmra.mrb[14].mxu1 %v1506_v9  ;;  %1821 = vmatmul.mubr.f32.vlgmr.msra.gmra.mrb[16].mxu0 %v1506_v9  ;;  %v7101_v9 = vld [vmem:[#allocation37_spill] sm:$0xff] }
 0x2f3   :  { %4708 = vmatpush1.bf16.msra.mxu1 %v6223_v51  ;;  %4740 = vmatpush1.bf16.msra.mxu0 %v6225_v52 }
 0x2f4   :  { %4710 = vmatprep.subr.bf16.mxu1 %v6229_v59  ;;  %4742 = vmatprep.subr.bf16.mxu0 %v6231_v60 }
 0x2f5   :  { %1927 = vmatprep.mubr.f32.mxu1 %v6351_v31  ;;  %1998 = vmatprep.mubr.f32.mxu0 %v6351_v31 }
 0x2f7   :  { %4712 = vmatpush1.bf16.msra.mxu1 %v6237_v0  ;;  %4744 = vmatpush1.bf16.msra.mxu0 %v6239_v1 }
 0x2f8   :  { %4714 = vmatprep.subr.bf16.mxu1 %v6243_v4  ;;  %4746 = vmatprep.subr.bf16.mxu0 %v6245_v5 }
 0x2fb   :  { %4716 = vmatpush1.bf16.msra.mxu1 %v6253_v36  ;;  %4748 = vmatpush1.bf16.msra.mxu0 %v6255_v11 }
 0x2fc   :  { %4718 = vmatprep.subr.bf16.mxu1 %v6259_v14  ;;  %4750 = vmatprep.subr.bf16.mxu0 %v6261_v15 }
 0x2ff   :  { %4720 = vmatpush1.bf16.msra.mxu1 %v6267_v23  ;;  %4752 = vmatpush1.bf16.msra.mxu0 %v6269_v24  ;;  %v1509_v24 = vld [vmem:[#allocation3 + $0x50] sm:$0xff] }
 0x300   :  { %4722 = vmatprep.subr.bf16.mxu1 %v6273_v17  ;;  %4754 = vmatprep.subr.bf16.mxu0 %v6275_v27 }
 0x303   :  { %4724 = vmatpush1.bf16.msra.mxu1 %v7089_v50  ;;  %4756 = vmatpush1.bf16.msra.mxu0 %v7090_v53  ;;  %v1508_v50 = vld [vmem:[#allocation3 + $0x48] sm:$0xff] }
 0x304   :  { %4726 = vmatprep.subr.bf16.mxu1 %v7091_v37  ;;  %4758 = vmatprep.subr.bf16.mxu0 %v7092_v63  ;;  %v7102_v37 = vld [vmem:[#allocation38_spill] sm:$0xff]  ;;  %v7103_v63 = vld [vmem:[#allocation39_spill] sm:$0xff] }
 0x307   :  { %4728 = vmatpush1.bf16.msra.mxu1 %v7093_v39  ;;  %4760 = vmatpush1.bf16.msra.mxu0 %v7094_v40  ;;  %v7104_v39 = vld [vmem:[#allocation40_spill] sm:$0xff]  ;;  %v1507_v40 = vld [vmem:[#allocation3 + $0x40] sm:$0xff] }
 0x308   :  { %4730 = vmatprep.subr.bf16.mxu1 %v7095_v12  ;;  %4762 = vmatprep.subr.bf16.mxu0 %v7096_v25 }
 0x30b   :  { %4732 = vmatpush1.bf16.msra.mxu1 %v7097_v2  ;;  %4764 = vmatpush1.bf16.msra.mxu0 %v7098_v30 }
 0x30c   :  { %4734 = vmatprep.subr.bf16.mxu1 %v7099_v35  ;;  %4766 = vmatprep.subr.bf16.mxu0 %v7100_v3  ;;  %v1510_v3 = vld [vmem:[#allocation3 + $0x58] sm:$0xff] }
 0x30f   :  { %4736 = vmatpush1.bf16.msra.mxu1 %v7101_v9  ;;  %4768 = vmatpush1.bf16.msra.mxu0 %v7102_v37 }
 0x310   :  { %4770 = vmatprep.subr.bf16.mxu1 %v7103_v63  ;;  %4802 = vmatprep.subr.bf16.mxu0 %v7104_v39 }
 0x3a5   :  { %v1581_v12 = vpop.f32.mrb[12].mxu1  ;;  %v1652_v53 = vpop.f32.mrb[14].mxu0 }
 0x3a6   :  { %v1657_v25 = vadd.f32 %v1581_v12, %v1507_v40  ;;  %v1583_v2 = vpop.f32.mrb[13].mxu1  ;;  %v1654_v27 = vpop.f32.mrb[15].mxu0  ;;  %v1659_v23 = vadd.f32 %v1652_v53, %v1509_v24 }
 0x3a7   :  { %v1658_v30 = vadd.f32 %v1583_v2, %v1508_v50  ;;  %v1660_v9 = vadd.f32 %v1654_v27, %v1510_v3 }
 0x3a8   :  { %v4070_v17 = vmul.f32 -1.442695, %v1657_v25 }
 0x3a9   :  { %v4071_v35 = vmul.f32 -1.442695, %v1658_v30  ;;  %v4072_v37 = vmul.f32 -1.442695, %v1660_v9  ;;  %v1514_v9 = vld [vmem:[#allocation3 + $0x1b8] sm:$0xff] }
 0x3aa   :  { %5551 = vpow2.f32 %v4070_v17 }
 0x3ab   :  { %5553 = vpow2.f32 %v4071_v35  ;;  %v1511_v35 = vld [vmem:[#allocation3 + $0x1a0] sm:$0xff] }
 0x3ac   :  { %5555 = vpow2.f32 %v4072_v37  ;;  %v1512_v37 = vld [vmem:[#allocation3 + $0x1a8] sm:$0xff] }
 0x3ad   :  { %5557 = vtanh.f32 %v1659_v23 }
 0x3b4   :  { %v5552_v63 = vpop.eup %5551 }
 0x3b5   :  { %v5554_v15 = vpop.eup %5553  ;;  %v1664_v39 = vadd.f32 1.0, %v5552_v63 }
 0x3b6   :  { %v1670_v14 = vadd.f32 1.0, %v5554_v15  ;;  %v5556_v40 = vpop.eup %5555 }
 0x3b7   :  { %5559 = vrcp.f32 %v1664_v39  ;;  %v5558_v12 = vpop.eup %5557  ;;  %v1677_v17 = vadd.f32 1.0, %v5556_v40 }
 0x3b8   :  { %5561 = vrcp.f32 %v1670_v14 }
 0x3b9   :  { %5563 = vrcp.f32 %v1677_v17 }
 0x3c1   :  { %v5560_v50 = vpop.eup %5559 }
 0x3c2   :  { %v5562_v25 = vpop.eup %5561  ;;  %v1681_v2 = vmul.f32 %v5560_v50, %v5558_v12  ;;  %v1513_v50 = vld [vmem:[#allocation3 + $0x1b0] sm:$0xff] }
 0x3c3   :  { %v1680_v30 = vmul.f32 %v5562_v25, %v6466_v38  ;;  %v5564_v38 = vpop.eup %5563 }
 0x3c5   :  { %v6541_v27 = vadd.f32 %v1681_v2, %v1680_v30  ;;  %v1751_v24 = vpop.f32.mrb[14].mxu1  ;;  %v1822_v53 = vpop.f32.mrb[16].mxu0 }
 0x3c6   :  { %v1827_v63 = vadd.f32 %v1751_v24, %v1511_v35  ;;  %v1753_v23 = vpop.f32.mrb[15].mxu1  ;;  %v1824_v15 = vpop.f32.mrb[17].mxu0  ;;  %v1829_v2 = vadd.f32 %v1822_v53, %v1513_v50  ;;  %v7106_v50 = vld [vmem:[#allocation20_spill] sm:$0xff] }
 0x3c7   :  { %v1828_v39 = vadd.f32 %v1753_v23, %v1512_v37  ;;  %5565 = vtanh.f32 %v6541_v27  ;;  %v1830_v40 = vadd.f32 %v1824_v15, %v1514_v9 }
 0x3c8   :  { %v4073_v14 = vmul.f32 -1.442695, %v1827_v63 }
 0x3c9   :  { %v4074_v3 = vmul.f32 -1.442695, %v1828_v39  ;;  %v4075_v25 = vmul.f32 -1.442695, %v1830_v40 }
 0x3ca   :  { %5567 = vpow2.f32 %v4073_v14 }
 0x3cb   :  { %5569 = vpow2.f32 %v4074_v3 }
 0x3cc   :  { %5571 = vpow2.f32 %v4075_v25  ;;  %v7107_v25 = vld [vmem:[#allocation21_spill] sm:$0xff] }
 0x3cd   :  { %5573 = vtanh.f32 %v1829_v2  ;;  %v7108_v2 = vld [vmem:[#allocation22_spill] sm:$0xff] }
 0x3d1   :  { %v5566_v12 = vpop.eup %5565 }
 0x3d2   :  { %v1684_v30 = vmul.f32 %v5566_v12, %v5564_v38  ;;  %v7105_v12 = vld [vmem:[#allocation19_spill] sm:$0xff] }
 0x3d4   :  { %v5568_v17 = vpop.eup %5567  ;;  %1928 = vmatmul.mubr.f32.vlgmr.msra.gmra.mrb[16].mxu1 %v1684_v30  ;;  %1999 = vmatmul.mubr.f32.vlgmr.msra.gmra.mrb[18].mxu0 %v1684_v30  ;;  %v7109_v30 = vld [vmem:[#allocation23_spill] sm:$0xff] }
 0x3d5   :  { %v5570_v35 = vpop.eup %5569  ;;  %v1834_v24 = vadd.f32 1.0, %v5568_v17  ;;  %4772 = vmatpush1.bf16.msra.mxu1 %v6327_v45  ;;  %4804 = vmatpush1.bf16.msra.mxu0 %v6329_v46  ;;  %v7110_v17 = vld [vmem:[#allocation24_spill] sm:$0xff] }
 0x3d6   :  { %v1840_v63 = vadd.f32 1.0, %v5570_v35  ;;  %4774 = vmatprep.subr.bf16.mxu1 %v6333_v49  ;;  %4806 = vmatprep.subr.bf16.mxu0 %v6335_v54  ;;  %v5572_v53 = vpop.eup %5571  ;;  %v7111_v35 = vld [vmem:[#allocation25_spill] sm:$0xff] }
 0x3d7   :  { %5575 = vrcp.f32 %v1834_v24  ;;  %2097 = vmatprep.mubr.f32.mxu1 %v6351_v31  ;;  %2168 = vmatprep.mubr.f32.mxu0 %v6351_v31  ;;  %v5574_v37 = vpop.eup %5573  ;;  %v1847_v14 = vadd.f32 1.0, %v5572_v53  ;;  %v7112_v24 = vld [vmem:[#allocation26_spill] sm:$0xff]  ;;  %v7114_v53 = vld [vmem:[#allocation28_spill] sm:$0xff] }
 0x3d8   :  { %5577 = vrcp.f32 %v1840_v63  ;;  %v7113_v63 = vld [vmem:[#allocation27_spill] sm:$0xff] }
 0x3d9   :  { %4776 = vmatpush1.bf16.msra.mxu1 %v6341_v6  ;;  %4808 = vmatpush1.bf16.msra.mxu0 %v6343_v8  ;;  %5579 = vrcp.f32 %v1847_v14  ;;  %v7119_v14 = vld [vmem:[#allocation33_spill] sm:$0xff] }
 0x3da   :  { %4778 = vmatprep.subr.bf16.mxu1 %v6347_v16  ;;  %4810 = vmatprep.subr.bf16.mxu0 %v7078_v19 }
 0x3dd   :  { %4780 = vmatpush1.bf16.msra.mxu1 %v7079_v42  ;;  %4812 = vmatpush1.bf16.msra.mxu0 %v7080_v21 }
 0x3de   :  { %4782 = vmatprep.subr.bf16.mxu1 %v7081_v28  ;;  %4814 = vmatprep.subr.bf16.mxu0 %v7082_v33 }
 0x3e1   :  { %v5576_v23 = vpop.eup %5575  ;;  %4784 = vmatpush1.bf16.msra.mxu1 %v7083_v58  ;;  %4816 = vmatpush1.bf16.msra.mxu0 %v7084_v57 }
 0x3e2   :  { %v5578_v15 = vpop.eup %5577  ;;  %v1851_v39 = vmul.f32 %v5576_v23, %v5574_v37  ;;  %4786 = vmatprep.subr.bf16.mxu1 %v7085_v22  ;;  %4818 = vmatprep.subr.bf16.mxu0 %v7086_v7  ;;  %v7115_v37 = vld [vmem:[#allocation29_spill] sm:$0xff]  ;;  %v7116_v23 = vld [vmem:[#allocation30_spill] sm:$0xff] }
 0x3e3   :  { %v1850_v3 = vmul.f32 %v5578_v15, %v6487_v10  ;;  %v5580_v10 = vpop.eup %5579  ;;  %v7117_v15 = vld [vmem:[#allocation31_spill] sm:$0xff] }
 0x3e5   :  { %v6563_v9 = vadd.f32 %v1851_v39, %v1850_v3  ;;  %4788 = vmatpush1.bf16.msra.mxu1 %v7087_v29  ;;  %4820 = vmatpush1.bf16.msra.mxu0 %v7088_v34  ;;  %v7118_v39 = vld [vmem:[#allocation32_spill] sm:$0xff]  ;;  %v7120_v3 = vld [vmem:[#allocation34_spill] sm:$0xff] }
 0x3e6   :  { %4790 = vmatprep.subr.bf16.mxu1 %v6387_v61  ;;  %4822 = vmatprep.subr.bf16.mxu0 %v6389_v62 }
 0x3e7   :  { %5581 = vtanh.f32 %v6563_v9 }
 0x3e9   :  { %4792 = vmatpush1.bf16.msra.mxu1 %v6393_v13  ;;  %4824 = vmatpush1.bf16.msra.mxu0 %v6395_v18 }
 0x3ea   :  { %4794 = vmatprep.subr.bf16.mxu1 %v6399_v55  ;;  %4826 = vmatprep.subr.bf16.mxu0 %v6401_v32 }
 0x3ed   :  { %4796 = vmatpush1.bf16.msra.mxu1 %v6405_v48  ;;  %4828 = vmatpush1.bf16.msra.mxu0 %v6407_v56 }
 0x3ee   :  { %4798 = vmatprep.subr.bf16.mxu1 %v6411_v44  ;;  %4830 = vmatprep.subr.bf16.mxu0 %v6413_v47 }
 0x3f1   :  { %v5582_v40 = vpop.eup %5581  ;;  %4800 = vmatpush1.bf16.msra.mxu1 %v6417_v20  ;;  %4832 = vmatpush1.bf16.msra.mxu0 %v6419_v26 }
 0x3f2   :  { %v1854_v38 = vmul.f32 %v5582_v40, %v5580_v10  ;;  %4834 = vmatprep.subr.bf16.mxu1 %v6219_v41  ;;  %4866 = vmatprep.subr.bf16.mxu0 %v6221_v43  ;;  %v7121_v10 = vld [vmem:[#allocation35_spill] sm:$0xff]  ;;  %v7122_v40 = vld [vmem:[#allocation36_spill] sm:$0xff] }
 0x3f4   :  { %2098 = vmatmul.mubr.f32.vlgmr.msra.gmra.mrb[18].mxu1 %v1854_v38  ;;  %2169 = vmatmul.mubr.f32.vlgmr.msra.gmra.mrb[20].mxu0 %v1854_v38  ;;  %v7123_v38 = vld [vmem:[#allocation37_spill] sm:$0xff] }
 0x3f5   :  { %4836 = vmatpush1.bf16.msra.mxu1 %v6223_v51  ;;  %4868 = vmatpush1.bf16.msra.mxu0 %v6225_v52 }
 0x3f6   :  { %4838 = vmatprep.subr.bf16.mxu1 %v6229_v59  ;;  %4870 = vmatprep.subr.bf16.mxu0 %v6231_v60 }
 0x3f7   :  { %2275 = vmatprep.mubr.f32.mxu1 %v6351_v31  ;;  %2346 = vmatprep.mubr.f32.mxu0 %v6351_v31 }
 0x3f9   :  { %4840 = vmatpush1.bf16.msra.mxu1 %v6237_v0  ;;  %4872 = vmatpush1.bf16.msra.mxu0 %v6239_v1 }
 0x3fa   :  { %4842 = vmatprep.subr.bf16.mxu1 %v6243_v4  ;;  %4874 = vmatprep.subr.bf16.mxu0 %v6245_v5 }
 0x3fd   :  { %4844 = vmatpush1.bf16.msra.mxu1 %v6253_v36  ;;  %4876 = vmatpush1.bf16.msra.mxu0 %v6255_v11 }
 0x3fe   :  { %4846 = vmatprep.subr.bf16.mxu1 %v7105_v12  ;;  %4878 = vmatprep.subr.bf16.mxu0 %v7106_v50 }
 0x401   :  { %4848 = vmatpush1.bf16.msra.mxu1 %v7107_v25  ;;  %4880 = vmatpush1.bf16.msra.mxu0 %v7108_v2  ;;  %v1857_v2 = vld [vmem:[#allocation3 + $0x90] sm:$0xff] }
 0x402   :  { %4850 = vmatprep.subr.bf16.mxu1 %v7109_v30  ;;  %4882 = vmatprep.subr.bf16.mxu0 %v7110_v17 }
 0x405   :  { %4852 = vmatpush1.bf16.msra.mxu1 %v7111_v35  ;;  %4884 = vmatpush1.bf16.msra.mxu0 %v7112_v24  ;;  %v1856_v35 = vld [vmem:[#allocation3 + $0x88] sm:$0xff] }
 0x406   :  { %4854 = vmatprep.subr.bf16.mxu1 %v7113_v63  ;;  %4886 = vmatprep.subr.bf16.mxu0 %v7114_v53  ;;  %v7124_v63 = vld [vmem:[#allocation38_spill] sm:$0xff]  ;;  %v7125_v53 = vld [vmem:[#allocation39_spill] sm:$0xff] }
 0x409   :  { %4856 = vmatpush1.bf16.msra.mxu1 %v7115_v37  ;;  %4888 = vmatpush1.bf16.msra.mxu0 %v7116_v23  ;;  %v7126_v37 = vld [vmem:[#allocation40_spill] sm:$0xff]  ;;  %v1855_v23 = vld [vmem:[#allocation3 + $0x80] sm:$0xff] }
 0x40a   :  { %4858 = vmatprep.subr.bf16.mxu1 %v7117_v15  ;;  %4890 = vmatprep.subr.bf16.mxu0 %v7118_v39 }
 0x40d   :  { %4860 = vmatpush1.bf16.msra.mxu1 %v7119_v14  ;;  %4892 = vmatpush1.bf16.msra.mxu0 %v7120_v3 }
 0x40e   :  { %4862 = vmatprep.subr.bf16.mxu1 %v7121_v10  ;;  %4894 = vmatprep.subr.bf16.mxu0 %v7122_v40  ;;  %v1858_v40 = vld [vmem:[#allocation3 + $0x98] sm:$0xff] }
 0x411   :  { %4864 = vmatpush1.bf16.msra.mxu1 %v7123_v38  ;;  %4896 = vmatpush1.bf16.msra.mxu0 %v7124_v63 }
 0x412   :  { %4898 = vmatprep.subr.bf16.mxu1 %v7125_v53  ;;  %4930 = vmatprep.subr.bf16.mxu0 %v7126_v37 }
 0x4a7   :  { %v1929_v15 = vpop.f32.mrb[16].mxu1  ;;  %v2000_v24 = vpop.f32.mrb[18].mxu0 }
 0x4a8   :  { %v2005_v39 = vadd.f32 %v1929_v15, %v1855_v23  ;;  %v1931_v14 = vpop.f32.mrb[17].mxu1  ;;  %v2002_v17 = vpop.f32.mrb[19].mxu0  ;;  %v2007_v25 = vadd.f32 %v2000_v24, %v1857_v2 }
 0x4a9   :  { %v2006_v3 = vadd.f32 %v1931_v14, %v1856_v35  ;;  %v2008_v38 = vadd.f32 %v2002_v17, %v1858_v40 }
 0x4aa   :  { %v4076_v30 = vmul.f32 -1.442695, %v2005_v39 }
 0x4ab   :  { %v4077_v10 = vmul.f32 -1.442695, %v2006_v3  ;;  %v4078_v63 = vmul.f32 -1.442695, %v2008_v38  ;;  %v1862_v38 = vld [vmem:[#allocation3 + $0x178] sm:$0xff] }
 0x4ac   :  { %5583 = vpow2.f32 %v4076_v30 }
 0x4ad   :  { %5585 = vpow2.f32 %v4077_v10  ;;  %v1859_v10 = vld [vmem:[#allocation3 + $0x160] sm:$0xff] }
 0x4ae   :  { %5587 = vpow2.f32 %v4078_v63  ;;  %v1860_v63 = vld [vmem:[#allocation3 + $0x168] sm:$0xff] }
 0x4af   :  { %5589 = vtanh.f32 %v2007_v25 }
 0x4b6   :  { %v5584_v53 = vpop.eup %5583 }
 0x4b7   :  { %v5586_v50 = vpop.eup %5585  ;;  %v2012_v37 = vadd.f32 1.0, %v5584_v53 }
 0x4b8   :  { %v2018_v12 = vadd.f32 1.0, %v5586_v50  ;;  %v5588_v23 = vpop.eup %5587 }
 0x4b9   :  { %5591 = vrcp.f32 %v2012_v37  ;;  %v5590_v15 = vpop.eup %5589  ;;  %v2025_v30 = vadd.f32 1.0, %v5588_v23 }
 0x4ba   :  { %5593 = vrcp.f32 %v2018_v12 }
 0x4bb   :  { %5595 = vrcp.f32 %v2025_v30 }
 0x4c3   :  { %v5592_v35 = vpop.eup %5591 }
 0x4c4   :  { %v5594_v39 = vpop.eup %5593  ;;  %v2029_v14 = vmul.f32 %v5592_v35, %v5590_v15  ;;  %v1861_v35 = vld [vmem:[#allocation3 + $0x170] sm:$0xff] }
 0x4c5   :  { %v2028_v3 = vmul.f32 %v5594_v39, %v6541_v27  ;;  %v5596_v27 = vpop.eup %5595 }
 0x4c7   :  { %v6617_v17 = vadd.f32 %v2029_v14, %v2028_v3  ;;  %v2099_v2 = vpop.f32.mrb[18].mxu1  ;;  %v2170_v24 = vpop.f32.mrb[20].mxu0 }
 0x4c8   :  { %v2175_v53 = vadd.f32 %v2099_v2, %v1859_v10  ;;  %v2101_v25 = vpop.f32.mrb[19].mxu1  ;;  %v2172_v50 = vpop.f32.mrb[21].mxu0  ;;  %v2177_v14 = vadd.f32 %v2170_v24, %v1861_v35  ;;  %v7128_v35 = vld [vmem:[#allocation20_spill] sm:$0xff] }
 0x4c9   :  { %v2176_v37 = vadd.f32 %v2101_v25, %v1860_v63  ;;  %5597 = vtanh.f32 %v6617_v17  ;;  %v2178_v23 = vadd.f32 %v2172_v50, %v1862_v38 }
 0x4ca   :  { %v4079_v12 = vmul.f32 -1.442695, %v2175_v53 }
 0x4cb   :  { %v4080_v40 = vmul.f32 -1.442695, %v2176_v37  ;;  %v4081_v39 = vmul.f32 -1.442695, %v2178_v23 }
 0x4cc   :  { %5599 = vpow2.f32 %v4079_v12 }
 0x4cd   :  { %5601 = vpow2.f32 %v4080_v40 }
 0x4ce   :  { %5603 = vpow2.f32 %v4081_v39  ;;  %v7129_v39 = vld [vmem:[#allocation21_spill] sm:$0xff] }
 0x4cf   :  { %5605 = vtanh.f32 %v2177_v14  ;;  %v7130_v14 = vld [vmem:[#allocation22_spill] sm:$0xff] }
 0x4d3   :  { %v5598_v15 = vpop.eup %5597 }
 0x4d4   :  { %v2032_v3 = vmul.f32 %v5598_v15, %v5596_v27  ;;  %v7127_v15 = vld [vmem:[#allocation19_spill] sm:$0xff] }
 0x4d6   :  { %v5600_v30 = vpop.eup %5599  ;;  %2276 = vmatmul.mubr.f32.vlgmr.msra.gmra.mrb[20].mxu1 %v2032_v3  ;;  %2347 = vmatmul.mubr.f32.vlgmr.msra.gmra.mrb[22].mxu0 %v2032_v3  ;;  %v7131_v3 = vld [vmem:[#allocation23_spill] sm:$0xff] }
 0x4d7   :  { %v5602_v10 = vpop.eup %5601  ;;  %v2182_v2 = vadd.f32 1.0, %v5600_v30  ;;  %4900 = vmatpush1.bf16.msra.mxu1 %v6327_v45  ;;  %4932 = vmatpush1.bf16.msra.mxu0 %v6329_v46  ;;  %v7132_v30 = vld [vmem:[#allocation24_spill] sm:$0xff] }
 0x4d8   :  { %v2188_v53 = vadd.f32 1.0, %v5602_v10  ;;  %4902 = vmatprep.subr.bf16.mxu1 %v6333_v49  ;;  %4934 = vmatprep.subr.bf16.mxu0 %v6335_v54  ;;  %v5604_v24 = vpop.eup %5603  ;;  %v7133_v10 = vld [vmem:[#allocation25_spill] sm:$0xff] }
 0x4d9   :  { %5607 = vrcp.f32 %v2182_v2  ;;  %2445 = vmatprep.mubr.f32.mxu1 %v6351_v31  ;;  %2516 = vmatprep.mubr.f32.mxu0 %v6351_v31  ;;  %v5606_v63 = vpop.eup %5605  ;;  %v2195_v12 = vadd.f32 1.0, %v5604_v24  ;;  %v7134_v2 = vld [vmem:[#allocation26_spill] sm:$0xff]  ;;  %v7136_v24 = vld [vmem:[#allocation28_spill] sm:$0xff] }
 0x4da   :  { %5609 = vrcp.f32 %v2188_v53  ;;  %v7135_v53 = vld [vmem:[#allocation27_spill] sm:$0xff] }
 0x4db   :  { %4904 = vmatpush1.bf16.msra.mxu1 %v6341_v6  ;;  %4936 = vmatpush1.bf16.msra.mxu0 %v6343_v8  ;;  %5611 = vrcp.f32 %v2195_v12  ;;  %v7141_v12 = vld [vmem:[#allocation33_spill] sm:$0xff] }
 0x4dc   :  { %4906 = vmatprep.subr.bf16.mxu1 %v6347_v16  ;;  %4938 = vmatprep.subr.bf16.mxu0 %v7078_v19 }
 0x4df   :  { %4908 = vmatpush1.bf16.msra.mxu1 %v7079_v42  ;;  %4940 = vmatpush1.bf16.msra.mxu0 %v7080_v21 }
 0x4e0   :  { %4910 = vmatprep.subr.bf16.mxu1 %v7081_v28  ;;  %4942 = vmatprep.subr.bf16.mxu0 %v7082_v33 }
 0x4e3   :  { %v5608_v25 = vpop.eup %5607  ;;  %4912 = vmatpush1.bf16.msra.mxu1 %v7083_v58  ;;  %4944 = vmatpush1.bf16.msra.mxu0 %v7084_v57 }
 0x4e4   :  { %v5610_v50 = vpop.eup %5609  ;;  %v2199_v37 = vmul.f32 %v5608_v25, %v5606_v63  ;;  %4914 = vmatprep.subr.bf16.mxu1 %v7085_v22  ;;  %4946 = vmatprep.subr.bf16.mxu0 %v7086_v7  ;;  %v7137_v63 = vld [vmem:[#allocation29_spill] sm:$0xff]  ;;  %v7138_v25 = vld [vmem:[#allocation30_spill] sm:$0xff] }
 0x4e5   :  { %v2198_v40 = vmul.f32 %v5610_v50, %v6563_v9  ;;  %v5612_v9 = vpop.eup %5611  ;;  %v7139_v50 = vld [vmem:[#allocation31_spill] sm:$0xff] }
 0x4e7   :  { %v6639_v38 = vadd.f32 %v2199_v37, %v2198_v40  ;;  %4916 = vmatpush1.bf16.msra.mxu1 %v7087_v29  ;;  %4948 = vmatpush1.bf16.msra.mxu0 %v7088_v34  ;;  %v7140_v37 = vld [vmem:[#allocation32_spill] sm:$0xff]  ;;  %v7142_v40 = vld [vmem:[#allocation34_spill] sm:$0xff] }
 0x4e8   :  { %4918 = vmatprep.subr.bf16.mxu1 %v6387_v61  ;;  %4950 = vmatprep.subr.bf16.mxu0 %v6389_v62 }
 0x4e9   :  { %5613 = vtanh.f32 %v6639_v38 }
 0x4eb   :  { %4920 = vmatpush1.bf16.msra.mxu1 %v6393_v13  ;;  %4952 = vmatpush1.bf16.msra.mxu0 %v6395_v18 }
 0x4ec   :  { %4922 = vmatprep.subr.bf16.mxu1 %v6399_v55  ;;  %4954 = vmatprep.subr.bf16.mxu0 %v6401_v32 }
 0x4ef   :  { %4924 = vmatpush1.bf16.msra.mxu1 %v6405_v48  ;;  %4956 = vmatpush1.bf16.msra.mxu0 %v6407_v56 }
 0x4f0   :  { %4926 = vmatprep.subr.bf16.mxu1 %v6411_v44  ;;  %4958 = vmatprep.subr.bf16.mxu0 %v6413_v47 }
 0x4f3   :  { %v5614_v23 = vpop.eup %5613  ;;  %4928 = vmatpush1.bf16.msra.mxu1 %v6417_v20  ;;  %4960 = vmatpush1.bf16.msra.mxu0 %v6419_v26 }
 0x4f4   :  { %v2202_v27 = vmul.f32 %v5614_v23, %v5612_v9  ;;  %4962 = vmatprep.subr.bf16.mxu1 %v6219_v41  ;;  %4994 = vmatprep.subr.bf16.mxu0 %v6221_v43  ;;  %v7143_v9 = vld [vmem:[#allocation35_spill] sm:$0xff]  ;;  %v7144_v23 = vld [vmem:[#allocation36_spill] sm:$0xff] }
 0x4f6   :  { %2446 = vmatmul.mubr.f32.vlgmr.msra.gmra.mrb[22].mxu1 %v2202_v27  ;;  %2517 = vmatmul.mubr.f32.vlgmr.msra.gmra.mrb[24].mxu0 %v2202_v27  ;;  %v7145_v27 = vld [vmem:[#allocation37_spill] sm:$0xff] }
 0x4f7   :  { %4964 = vmatpush1.bf16.msra.mxu1 %v6223_v51  ;;  %4996 = vmatpush1.bf16.msra.mxu0 %v6225_v52 }
 0x4f8   :  { %4966 = vmatprep.subr.bf16.mxu1 %v6229_v59  ;;  %4998 = vmatprep.subr.bf16.mxu0 %v6231_v60 }
 0x4f9   :  { %2623 = vmatprep.mubr.f32.mxu1 %v6351_v31  ;;  %2694 = vmatprep.mubr.f32.mxu0 %v6351_v31 }
 0x4fb   :  { %4968 = vmatpush1.bf16.msra.mxu1 %v6237_v0  ;;  %5000 = vmatpush1.bf16.msra.mxu0 %v6239_v1 }
 0x4fc   :  { %4970 = vmatprep.subr.bf16.mxu1 %v6243_v4  ;;  %5002 = vmatprep.subr.bf16.mxu0 %v6245_v5 }
 0x4ff   :  { %4972 = vmatpush1.bf16.msra.mxu1 %v6253_v36  ;;  %5004 = vmatpush1.bf16.msra.mxu0 %v6255_v11 }
 0x500   :  { %4974 = vmatprep.subr.bf16.mxu1 %v7127_v15  ;;  %5006 = vmatprep.subr.bf16.mxu0 %v7128_v35 }
 0x503   :  { %4976 = vmatpush1.bf16.msra.mxu1 %v7129_v39  ;;  %5008 = vmatpush1.bf16.msra.mxu0 %v7130_v14  ;;  %v2205_v14 = vld [vmem:[#allocation3 + $0xd0] sm:$0xff] }
 0x504   :  { %4978 = vmatprep.subr.bf16.mxu1 %v7131_v3  ;;  %5010 = vmatprep.subr.bf16.mxu0 %v7132_v30 }
 0x507   :  { %4980 = vmatpush1.bf16.msra.mxu1 %v7133_v10  ;;  %5012 = vmatpush1.bf16.msra.mxu0 %v7134_v2  ;;  %v2204_v10 = vld [vmem:[#allocation3 + $0xc8] sm:$0xff] }
 0x508   :  { %4982 = vmatprep.subr.bf16.mxu1 %v7135_v53  ;;  %5014 = vmatprep.subr.bf16.mxu0 %v7136_v24  ;;  %v7146_v53 = vld [vmem:[#allocation38_spill] sm:$0xff]  ;;  %v7147_v24 = vld [vmem:[#allocation39_spill] sm:$0xff] }
 0x50b   :  { %4984 = vmatpush1.bf16.msra.mxu1 %v7137_v63  ;;  %5016 = vmatpush1.bf16.msra.mxu0 %v7138_v25  ;;  %v7148_v63 = vld [vmem:[#allocation40_spill] sm:$0xff]  ;;  %v2203_v25 = vld [vmem:[#allocation3 + $0xc0] sm:$0xff] }
 0x50c   :  { %4986 = vmatprep.subr.bf16.mxu1 %v7139_v50  ;;  %5018 = vmatprep.subr.bf16.mxu0 %v7140_v37 }
 0x50f   :  { %4988 = vmatpush1.bf16.msra.mxu1 %v7141_v12  ;;  %5020 = vmatpush1.bf16.msra.mxu0 %v7142_v40 }
 0x510   :  { %4990 = vmatprep.subr.bf16.mxu1 %v7143_v9  ;;  %5022 = vmatprep.subr.bf16.mxu0 %v7144_v23  ;;  %v2206_v23 = vld [vmem:[#allocation3 + $0xd8] sm:$0xff] }
 0x513   :  { %4992 = vmatpush1.bf16.msra.mxu1 %v7145_v27  ;;  %5024 = vmatpush1.bf16.msra.mxu0 %v7146_v53 }
 0x514   :  { %5026 = vmatprep.subr.bf16.mxu1 %v7147_v24  ;;  %5058 = vmatprep.subr.bf16.mxu0 %v7148_v63 }
 0x5a9   :  { %v2277_v50 = vpop.f32.mrb[20].mxu1  ;;  %v2348_v2 = vpop.f32.mrb[22].mxu0 }
 0x5aa   :  { %v2353_v37 = vadd.f32 %v2277_v50, %v2203_v25  ;;  %v2279_v12 = vpop.f32.mrb[21].mxu1  ;;  %v2350_v30 = vpop.f32.mrb[23].mxu0  ;;  %v2355_v39 = vadd.f32 %v2348_v2, %v2205_v14 }
 0x5ab   :  { %v2354_v40 = vadd.f32 %v2279_v12, %v2204_v10  ;;  %v2356_v27 = vadd.f32 %v2350_v30, %v2206_v23 }
 0x5ac   :  { %v4082_v3 = vmul.f32 -1.442695, %v2353_v37 }
 0x5ad   :  { %v4083_v9 = vmul.f32 -1.442695, %v2354_v40  ;;  %v4084_v53 = vmul.f32 -1.442695, %v2356_v27  ;;  %v2210_v27 = vld [vmem:[#allocation3 + $0x138] sm:$0xff] }
 0x5ae   :  { %5615 = vpow2.f32 %v4082_v3 }
 0x5af   :  { %5617 = vpow2.f32 %v4083_v9  ;;  %v2207_v9 = vld [vmem:[#allocation3 + $0x120] sm:$0xff] }
 0x5b0   :  { %5619 = vpow2.f32 %v4084_v53  ;;  %v2208_v53 = vld [vmem:[#allocation3 + $0x128] sm:$0xff] }
 0x5b1   :  { %5621 = vtanh.f32 %v2355_v39 }
 0x5b8   :  { %v5616_v24 = vpop.eup %5615 }
 0x5b9   :  { %v5618_v35 = vpop.eup %5617  ;;  %v2360_v63 = vadd.f32 1.0, %v5616_v24 }
 0x5ba   :  { %v2366_v15 = vadd.f32 1.0, %v5618_v35  ;;  %v5620_v25 = vpop.eup %5619 }
 0x5bb   :  { %5623 = vrcp.f32 %v2360_v63  ;;  %v5622_v50 = vpop.eup %5621  ;;  %v2373_v3 = vadd.f32 1.0, %v5620_v25 }
 0x5bc   :  { %5625 = vrcp.f32 %v2366_v15 }
 0x5bd   :  { %5627 = vrcp.f32 %v2373_v3 }
 0x5c5   :  { %v5624_v10 = vpop.eup %5623 }
 0x5c6   :  { %v5626_v37 = vpop.eup %5625  ;;  %v2377_v12 = vmul.f32 %v5624_v10, %v5622_v50  ;;  %v2209_v10 = vld [vmem:[#allocation3 + $0x130] sm:$0xff] }
 0x5c7   :  { %v2376_v40 = vmul.f32 %v5626_v37, %v6617_v17  ;;  %v5628_v17 = vpop.eup %5627 }
 0x5c9   :  { %v6693_v30 = vadd.f32 %v2377_v12, %v2376_v40  ;;  %v2447_v14 = vpop.f32.mrb[22].mxu1  ;;  %v2518_v2 = vpop.f32.mrb[24].mxu0 }
 0x5ca   :  { %v2523_v24 = vadd.f32 %v2447_v14, %v2207_v9  ;;  %v2449_v39 = vpop.f32.mrb[23].mxu1  ;;  %v2520_v35 = vpop.f32.mrb[25].mxu0  ;;  %v2525_v12 = vadd.f32 %v2518_v2, %v2209_v10  ;;  %v7150_v10 = vld [vmem:[#allocation20_spill] sm:$0xff] }
 0x5cb   :  { %v2524_v63 = vadd.f32 %v2449_v39, %v2208_v53  ;;  %5629 = vtanh.f32 %v6693_v30  ;;  %v2526_v25 = vadd.f32 %v2520_v35, %v2210_v27 }
 0x5cc   :  { %v4085_v15 = vmul.f32 -1.442695, %v2523_v24 }
 0x5cd   :  { %v4086_v23 = vmul.f32 -1.442695, %v2524_v63  ;;  %v4087_v37 = vmul.f32 -1.442695, %v2526_v25 }
 0x5ce   :  { %5631 = vpow2.f32 %v4085_v15 }
 0x5cf   :  { %5633 = vpow2.f32 %v4086_v23 }
 0x5d0   :  { %5635 = vpow2.f32 %v4087_v37  ;;  %v7151_v37 = vld [vmem:[#allocation21_spill] sm:$0xff] }
 0x5d1   :  { %5637 = vtanh.f32 %v2525_v12  ;;  %v7152_v12 = vld [vmem:[#allocation22_spill] sm:$0xff] }
 0x5d5   :  { %v5630_v50 = vpop.eup %5629 }
 0x5d6   :  { %v2380_v40 = vmul.f32 %v5630_v50, %v5628_v17  ;;  %v7149_v50 = vld [vmem:[#allocation19_spill] sm:$0xff] }
 0x5d8   :  { %v5632_v3 = vpop.eup %5631  ;;  %2624 = vmatmul.mubr.f32.vlgmr.msra.gmra.mrb[24].mxu1 %v2380_v40  ;;  %2695 = vmatmul.mubr.f32.vlgmr.msra.gmra.mrb[26].mxu0 %v2380_v40  ;;  %v7153_v40 = vld [vmem:[#allocation23_spill] sm:$0xff] }
 0x5d9   :  { %v5634_v9 = vpop.eup %5633  ;;  %v2530_v14 = vadd.f32 1.0, %v5632_v3  ;;  %5028 = vmatpush1.bf16.msra.mxu1 %v6327_v45  ;;  %5060 = vmatpush1.bf16.msra.mxu0 %v6329_v46  ;;  %v7154_v3 = vld [vmem:[#allocation24_spill] sm:$0xff] }
 0x5da   :  { %v2536_v24 = vadd.f32 1.0, %v5634_v9  ;;  %5030 = vmatprep.subr.bf16.mxu1 %v6333_v49  ;;  %5062 = vmatprep.subr.bf16.mxu0 %v6335_v54  ;;  %v5636_v2 = vpop.eup %5635  ;;  %v7155_v9 = vld [vmem:[#allocation25_spill] sm:$0xff] }
 0x5db   :  { %5639 = vrcp.f32 %v2530_v14  ;;  %2793 = vmatprep.mubr.f32.mxu1 %v6351_v31  ;;  %2864 = vmatprep.mubr.f32.mxu0 %v6351_v31  ;;  %v5638_v53 = vpop.eup %5637  ;;  %v2543_v15 = vadd.f32 1.0, %v5636_v2  ;;  %v7156_v14 = vld [vmem:[#allocation26_spill] sm:$0xff]  ;;  %v7158_v2 = vld [vmem:[#allocation28_spill] sm:$0xff] }
 0x5dc   :  { %5641 = vrcp.f32 %v2536_v24  ;;  %v7157_v24 = vld [vmem:[#allocation27_spill] sm:$0xff] }
 0x5dd   :  { %5032 = vmatpush1.bf16.msra.mxu1 %v6341_v6  ;;  %5064 = vmatpush1.bf16.msra.mxu0 %v6343_v8  ;;  %5643 = vrcp.f32 %v2543_v15  ;;  %v7163_v15 = vld [vmem:[#allocation33_spill] sm:$0xff] }
 0x5de   :  { %5034 = vmatprep.subr.bf16.mxu1 %v6347_v16  ;;  %5066 = vmatprep.subr.bf16.mxu0 %v7078_v19 }
 0x5e1   :  { %5036 = vmatpush1.bf16.msra.mxu1 %v7079_v42  ;;  %5068 = vmatpush1.bf16.msra.mxu0 %v7080_v21 }
 0x5e2   :  { %5038 = vmatprep.subr.bf16.mxu1 %v7081_v28  ;;  %5070 = vmatprep.subr.bf16.mxu0 %v7082_v33 }
 0x5e5   :  { %v5640_v39 = vpop.eup %5639  ;;  %5040 = vmatpush1.bf16.msra.mxu1 %v7083_v58  ;;  %5072 = vmatpush1.bf16.msra.mxu0 %v7084_v57 }
 0x5e6   :  { %v5642_v35 = vpop.eup %5641  ;;  %v2547_v63 = vmul.f32 %v5640_v39, %v5638_v53  ;;  %5042 = vmatprep.subr.bf16.mxu1 %v7085_v22  ;;  %5074 = vmatprep.subr.bf16.mxu0 %v7086_v7  ;;  %v7159_v53 = vld [vmem:[#allocation29_spill] sm:$0xff]  ;;  %v7160_v39 = vld [vmem:[#allocation30_spill] sm:$0xff] }
 0x5e7   :  { %v2546_v23 = vmul.f32 %v5642_v35, %v6639_v38  ;;  %v5644_v38 = vpop.eup %5643  ;;  %v7161_v35 = vld [vmem:[#allocation31_spill] sm:$0xff] }
 0x5e9   :  { %v6715_v27 = vadd.f32 %v2547_v63, %v2546_v23  ;;  %5044 = vmatpush1.bf16.msra.mxu1 %v7087_v29  ;;  %5076 = vmatpush1.bf16.msra.mxu0 %v7088_v34  ;;  %v7162_v63 = vld [vmem:[#allocation32_spill] sm:$0xff]  ;;  %v7164_v23 = vld [vmem:[#allocation34_spill] sm:$0xff] }
 0x5ea   :  { %5046 = vmatprep.subr.bf16.mxu1 %v6387_v61  ;;  %5078 = vmatprep.subr.bf16.mxu0 %v6389_v62 }
 0x5eb   :  { %5645 = vtanh.f32 %v6715_v27 }
 0x5ed   :  { %5048 = vmatpush1.bf16.msra.mxu1 %v6393_v13  ;;  %5080 = vmatpush1.bf16.msra.mxu0 %v6395_v18 }
 0x5ee   :  { %5050 = vmatprep.subr.bf16.mxu1 %v6399_v55  ;;  %5082 = vmatprep.subr.bf16.mxu0 %v6401_v32 }
 0x5f1   :  { %5052 = vmatpush1.bf16.msra.mxu1 %v6405_v48  ;;  %5084 = vmatpush1.bf16.msra.mxu0 %v6407_v56 }
 0x5f2   :  { %5054 = vmatprep.subr.bf16.mxu1 %v6411_v44  ;;  %5086 = vmatprep.subr.bf16.mxu0 %v6413_v47 }
 0x5f5   :  { %v5646_v25 = vpop.eup %5645  ;;  %5056 = vmatpush1.bf16.msra.mxu1 %v6417_v20  ;;  %5088 = vmatpush1.bf16.msra.mxu0 %v6419_v26 }
 0x5f6   :  { %v2550_v17 = vmul.f32 %v5646_v25, %v5644_v38  ;;  %5090 = vmatprep.subr.bf16.mxu1 %v6219_v41  ;;  %5122 = vmatprep.subr.bf16.mxu0 %v6221_v43  ;;  %v7165_v38 = vld [vmem:[#allocation35_spill] sm:$0xff]  ;;  %v7166_v25 = vld [vmem:[#allocation36_spill] sm:$0xff] }
 0x5f8   :  { %2794 = vmatmul.mubr.f32.vlgmr.msra.gmra.mrb[26].mxu1 %v2550_v17  ;;  %2865 = vmatmul.mubr.f32.vlgmr.msra.gmra.mrb[28].mxu0 %v2550_v17  ;;  %v7167_v17 = vld [vmem:[#allocation37_spill] sm:$0xff] }
 0x5f9   :  { %5092 = vmatpush1.bf16.msra.mxu1 %v6223_v51  ;;  %5124 = vmatpush1.bf16.msra.mxu0 %v6225_v52 }
 0x5fa   :  { %5094 = vmatprep.subr.bf16.mxu1 %v6229_v59  ;;  %5126 = vmatprep.subr.bf16.mxu0 %v6231_v60 }
 0x5fb   :  { %2971 = vmatprep.mubr.f32.mxu1 %v6351_v31  ;;  %3042 = vmatprep.mubr.f32.mxu0 %v6351_v31 }
 0x5fd   :  { %5096 = vmatpush1.bf16.msra.mxu1 %v6237_v0  ;;  %5128 = vmatpush1.bf16.msra.mxu0 %v6239_v1 }
 0x5fe   :  { %5098 = vmatprep.subr.bf16.mxu1 %v6243_v4  ;;  %5130 = vmatprep.subr.bf16.mxu0 %v6245_v5 }
 0x601   :  { %5100 = vmatpush1.bf16.msra.mxu1 %v6253_v36  ;;  %5132 = vmatpush1.bf16.msra.mxu0 %v6255_v11 }
 0x602   :  { %5102 = vmatprep.subr.bf16.mxu1 %v7149_v50  ;;  %5134 = vmatprep.subr.bf16.mxu0 %v7150_v10 }
 0x605   :  { %5104 = vmatpush1.bf16.msra.mxu1 %v7151_v37  ;;  %5136 = vmatpush1.bf16.msra.mxu0 %v7152_v12  ;;  %v2553_v12 = vld [vmem:[#allocation3 + $0x110] sm:$0xff] }
 0x606   :  { %5106 = vmatprep.subr.bf16.mxu1 %v7153_v40  ;;  %5138 = vmatprep.subr.bf16.mxu0 %v7154_v3 }
 0x609   :  { %5108 = vmatpush1.bf16.msra.mxu1 %v7155_v9  ;;  %5140 = vmatpush1.bf16.msra.mxu0 %v7156_v14  ;;  %v2552_v9 = vld [vmem:[#allocation3 + $0x108] sm:$0xff] }
 0x60a   :  { %5110 = vmatprep.subr.bf16.mxu1 %v7157_v24  ;;  %5142 = vmatprep.subr.bf16.mxu0 %v7158_v2  ;;  %v7168_v24 = vld [vmem:[#allocation38_spill] sm:$0xff]  ;;  %v7169_v2 = vld [vmem:[#allocation39_spill] sm:$0xff] }
 0x60d   :  { %5112 = vmatpush1.bf16.msra.mxu1 %v7159_v53  ;;  %5144 = vmatpush1.bf16.msra.mxu0 %v7160_v39  ;;  %v7170_v53 = vld [vmem:[#allocation40_spill] sm:$0xff]  ;;  %v2551_v39 = vld [vmem:[#allocation3 + $0x100] sm:$0xff] }
 0x60e   :  { %5114 = vmatprep.subr.bf16.mxu1 %v7161_v35  ;;  %5146 = vmatprep.subr.bf16.mxu0 %v7162_v63 }
 0x611   :  { %5116 = vmatpush1.bf16.msra.mxu1 %v7163_v15  ;;  %5148 = vmatpush1.bf16.msra.mxu0 %v7164_v23 }
 0x612   :  { %5118 = vmatprep.subr.bf16.mxu1 %v7165_v38  ;;  %5150 = vmatprep.subr.bf16.mxu0 %v7166_v25  ;;  %v2554_v25 = vld [vmem:[#allocation3 + $0x118] sm:$0xff] }
 0x615   :  { %5120 = vmatpush1.bf16.msra.mxu1 %v7167_v17  ;;  %5152 = vmatpush1.bf16.msra.mxu0 %v7168_v24 }
 0x616   :  { %5154 = vmatprep.subr.bf16.mxu1 %v7169_v2  ;;  %5186 = vmatprep.subr.bf16.mxu0 %v7170_v53 }
 0x6ab   :  { %v2625_v35 = vpop.f32.mrb[24].mxu1  ;;  %v2696_v14 = vpop.f32.mrb[26].mxu0 }
 0x6ac   :  { %v2701_v63 = vadd.f32 %v2625_v35, %v2551_v39  ;;  %v2627_v15 = vpop.f32.mrb[25].mxu1  ;;  %v2698_v3 = vpop.f32.mrb[27].mxu0  ;;  %v2703_v37 = vadd.f32 %v2696_v14, %v2553_v12 }
 0x6ad   :  { %v2702_v23 = vadd.f32 %v2627_v15, %v2552_v9  ;;  %v2704_v17 = vadd.f32 %v2698_v3, %v2554_v25 }
 0x6ae   :  { %v4088_v40 = vmul.f32 -1.442695, %v2701_v63 }
 0x6af   :  { %v4089_v38 = vmul.f32 -1.442695, %v2702_v23  ;;  %v4090_v24 = vmul.f32 -1.442695, %v2704_v17  ;;  %v2558_v17 = vld [vmem:[#allocation3 + $0xf8] sm:$0xff] }
 0x6b0   :  { %5647 = vpow2.f32 %v4088_v40 }
 0x6b1   :  { %5649 = vpow2.f32 %v4089_v38  ;;  %v2555_v38 = vld [vmem:[#allocation3 + $0xe0] sm:$0xff] }
 0x6b2   :  { %5651 = vpow2.f32 %v4090_v24  ;;  %v2556_v24 = vld [vmem:[#allocation3 + $0xe8] sm:$0xff] }
 0x6b3   :  { %5653 = vtanh.f32 %v2703_v37 }
 0x6ba   :  { %v5648_v2 = vpop.eup %5647 }
 0x6bb   :  { %v5650_v10 = vpop.eup %5649  ;;  %v2708_v53 = vadd.f32 1.0, %v5648_v2 }
 0x6bc   :  { %v2714_v50 = vadd.f32 1.0, %v5650_v10  ;;  %v5652_v39 = vpop.eup %5651 }
 0x6bd   :  { %5655 = vrcp.f32 %v2708_v53  ;;  %v5654_v35 = vpop.eup %5653  ;;  %v2721_v40 = vadd.f32 1.0, %v5652_v39 }
 0x6be   :  { %5657 = vrcp.f32 %v2714_v50 }
 0x6bf   :  { %5659 = vrcp.f32 %v2721_v40 }
 0x6c7   :  { %v5656_v9 = vpop.eup %5655 }
 0x6c8   :  { %v5658_v63 = vpop.eup %5657  ;;  %v2725_v15 = vmul.f32 %v5656_v9, %v5654_v35  ;;  %v2557_v9 = vld [vmem:[#allocation3 + $0xf0] sm:$0xff] }
 0x6c9   :  { %v2724_v23 = vmul.f32 %v5658_v63, %v6693_v30  ;;  %v5660_v30 = vpop.eup %5659 }
 0x6cb   :  { %v6769_v3 = vadd.f32 %v2725_v15, %v2724_v23  ;;  %v2795_v12 = vpop.f32.mrb[26].mxu1  ;;  %v2866_v14 = vpop.f32.mrb[28].mxu0 }
 0x6cc   :  { %v2871_v2 = vadd.f32 %v2795_v12, %v2555_v38  ;;  %v2797_v37 = vpop.f32.mrb[27].mxu1  ;;  %v2868_v10 = vpop.f32.mrb[29].mxu0  ;;  %v2873_v15 = vadd.f32 %v2866_v14, %v2557_v9  ;;  %v7172_v9 = vld [vmem:[#allocation20_spill] sm:$0xff] }
 0x6cd   :  { %v2872_v53 = vadd.f32 %v2797_v37, %v2556_v24  ;;  %5661 = vtanh.f32 %v6769_v3  ;;  %v2874_v39 = vadd.f32 %v2868_v10, %v2558_v17 }
 0x6ce   :  { %v4091_v50 = vmul.f32 -1.442695, %v2871_v2 }
 0x6cf   :  { %v4092_v25 = vmul.f32 -1.442695, %v2872_v53  ;;  %v4093_v63 = vmul.f32 -1.442695, %v2874_v39 }
 0x6d0   :  { %5663 = vpow2.f32 %v4091_v50 }
 0x6d1   :  { %5665 = vpow2.f32 %v4092_v25 }
 0x6d2   :  { %5667 = vpow2.f32 %v4093_v63  ;;  %v7173_v63 = vld [vmem:[#allocation21_spill] sm:$0xff] }
 0x6d3   :  { %5669 = vtanh.f32 %v2873_v15  ;;  %v7174_v15 = vld [vmem:[#allocation22_spill] sm:$0xff] }
 0x6d7   :  { %v5662_v35 = vpop.eup %5661 }
 0x6d8   :  { %v2728_v23 = vmul.f32 %v5662_v35, %v5660_v30  ;;  %v7171_v35 = vld [vmem:[#allocation19_spill] sm:$0xff] }
 0x6da   :  { %v5664_v40 = vpop.eup %5663  ;;  %2972 = vmatmul.mubr.f32.vlgmr.msra.gmra.mrb[28].mxu1 %v2728_v23  ;;  %3043 = vmatmul.mubr.f32.vlgmr.msra.gmra.mrb[30].mxu0 %v2728_v23  ;;  %v7175_v23 = vld [vmem:[#allocation23_spill] sm:$0xff] }
 0x6db   :  { %v5666_v38 = vpop.eup %5665  ;;  %v2878_v12 = vadd.f32 1.0, %v5664_v40  ;;  %5156 = vmatpush1.bf16.msra.mxu1 %v6327_v45  ;;  %5188 = vmatpush1.bf16.msra.mxu0 %v6329_v46  ;;  %v7176_v40 = vld [vmem:[#allocation24_spill] sm:$0xff] }
 0x6dc   :  { %v2884_v2 = vadd.f32 1.0, %v5666_v38  ;;  %5158 = vmatprep.subr.bf16.mxu1 %v6333_v49  ;;  %5190 = vmatprep.subr.bf16.mxu0 %v6335_v54  ;;  %v5668_v14 = vpop.eup %5667  ;;  %v7177_v38 = vld [vmem:[#allocation25_spill] sm:$0xff] }
 0x6dd   :  { %5671 = vrcp.f32 %v2878_v12  ;;  %3141 = vmatprep.mubr.f32.mxu1 %v6351_v31  ;;  %3212 = vmatprep.mubr.f32.mxu0 %v6351_v31  ;;  %v5670_v24 = vpop.eup %5669  ;;  %v2891_v50 = vadd.f32 1.0, %v5668_v14  ;;  %v7178_v12 = vld [vmem:[#allocation26_spill] sm:$0xff]  ;;  %v7180_v14 = vld [vmem:[#allocation28_spill] sm:$0xff] }
 0x6de   :  { %5673 = vrcp.f32 %v2884_v2  ;;  %v7179_v2 = vld [vmem:[#allocation27_spill] sm:$0xff] }
 0x6df   :  { %5160 = vmatpush1.bf16.msra.mxu1 %v6341_v6  ;;  %5192 = vmatpush1.bf16.msra.mxu0 %v6343_v8  ;;  %5675 = vrcp.f32 %v2891_v50  ;;  %v7185_v50 = vld [vmem:[#allocation33_spill] sm:$0xff] }
 0x6e0   :  { %5162 = vmatprep.subr.bf16.mxu1 %v6347_v16  ;;  %5194 = vmatprep.subr.bf16.mxu0 %v7078_v19 }
 0x6e3   :  { %5164 = vmatpush1.bf16.msra.mxu1 %v7079_v42  ;;  %5196 = vmatpush1.bf16.msra.mxu0 %v7080_v21 }
 0x6e4   :  { %5166 = vmatprep.subr.bf16.mxu1 %v7081_v28  ;;  %5198 = vmatprep.subr.bf16.mxu0 %v7082_v33 }
 0x6e7   :  { %v5672_v37 = vpop.eup %5671  ;;  %5168 = vmatpush1.bf16.msra.mxu1 %v7083_v58  ;;  %5200 = vmatpush1.bf16.msra.mxu0 %v7084_v57 }
 0x6e8   :  { %v5674_v10 = vpop.eup %5673  ;;  %v2895_v53 = vmul.f32 %v5672_v37, %v5670_v24  ;;  %5170 = vmatprep.subr.bf16.mxu1 %v7085_v22  ;;  %5202 = vmatprep.subr.bf16.mxu0 %v7086_v7  ;;  %v7181_v24 = vld [vmem:[#allocation29_spill] sm:$0xff]  ;;  %v7182_v37 = vld [vmem:[#allocation30_spill] sm:$0xff] }
 0x6e9   :  { %v2894_v25 = vmul.f32 %v5674_v10, %v6715_v27  ;;  %v5676_v27 = vpop.eup %5675  ;;  %v7183_v10 = vld [vmem:[#allocation31_spill] sm:$0xff] }
 0x6eb   :  { %v6791_v17 = vadd.f32 %v2895_v53, %v2894_v25  ;;  %5172 = vmatpush1.bf16.msra.mxu1 %v7087_v29  ;;  %5204 = vmatpush1.bf16.msra.mxu0 %v7088_v34  ;;  %v7184_v53 = vld [vmem:[#allocation32_spill] sm:$0xff]  ;;  %v7186_v25 = vld [vmem:[#allocation34_spill] sm:$0xff] }
 0x6ec   :  { %5174 = vmatprep.subr.bf16.mxu1 %v6387_v61  ;;  %5206 = vmatprep.subr.bf16.mxu0 %v6389_v62 }
 0x6ed   :  { %5677 = vtanh.f32 %v6791_v17 }
 0x6ef   :  { %5176 = vmatpush1.bf16.msra.mxu1 %v6393_v13  ;;  %5208 = vmatpush1.bf16.msra.mxu0 %v6395_v18 }
 0x6f0   :  { %5178 = vmatprep.subr.bf16.mxu1 %v6399_v55  ;;  %5210 = vmatprep.subr.bf16.mxu0 %v6401_v32 }
 0x6f3   :  { %5180 = vmatpush1.bf16.msra.mxu1 %v6405_v48  ;;  %5212 = vmatpush1.bf16.msra.mxu0 %v6407_v56 }
 0x6f4   :  { %5182 = vmatprep.subr.bf16.mxu1 %v6411_v44  ;;  %5214 = vmatprep.subr.bf16.mxu0 %v6413_v47 }
 0x6f7   :  { %v5678_v39 = vpop.eup %5677  ;;  %5184 = vmatpush1.bf16.msra.mxu1 %v6417_v20  ;;  %5216 = vmatpush1.bf16.msra.mxu0 %v6419_v26 }
 0x6f8   :  { %v2898_v30 = vmul.f32 %v5678_v39, %v5676_v27  ;;  %5218 = vmatprep.subr.bf16.mxu1 %v6219_v41  ;;  %5250 = vmatprep.subr.bf16.mxu0 %v6221_v43  ;;  %v7187_v27 = vld [vmem:[#allocation35_spill] sm:$0xff]  ;;  %v7188_v39 = vld [vmem:[#allocation36_spill] sm:$0xff] }
 0x6fa   :  { %3142 = vmatmul.mubr.f32.vlgmr.msra.gmra.mrb[30].mxu1 %v2898_v30  ;;  %3213 = vmatmul.mubr.f32.vlgmr.msra.gmra.mrb[32].mxu0 %v2898_v30  ;;  %v7189_v30 = vld [vmem:[#allocation37_spill] sm:$0xff] }
 0x6fb   :  { %5220 = vmatpush1.bf16.msra.mxu1 %v6223_v51  ;;  %5252 = vmatpush1.bf16.msra.mxu0 %v6225_v52 }
 0x6fc   :  { %5222 = vmatprep.subr.bf16.mxu1 %v6229_v59  ;;  %5254 = vmatprep.subr.bf16.mxu0 %v6231_v60 }
 0x6fd   :  { %3319 = vmatprep.mubr.f32.mxu1 %v6351_v31  ;;  %3390 = vmatprep.mubr.f32.mxu0 %v6351_v31 }
 0x6ff   :  { %5224 = vmatpush1.bf16.msra.mxu1 %v6237_v0  ;;  %5256 = vmatpush1.bf16.msra.mxu0 %v6239_v1 }
 0x700   :  { %5226 = vmatprep.subr.bf16.mxu1 %v6243_v4  ;;  %5258 = vmatprep.subr.bf16.mxu0 %v6245_v5 }
 0x703   :  { %5228 = vmatpush1.bf16.msra.mxu1 %v6253_v36  ;;  %5260 = vmatpush1.bf16.msra.mxu0 %v6255_v11 }
 0x704   :  { %5230 = vmatprep.subr.bf16.mxu1 %v7171_v35  ;;  %5262 = vmatprep.subr.bf16.mxu0 %v7172_v9 }
 0x707   :  { %5232 = vmatpush1.bf16.msra.mxu1 %v7173_v63  ;;  %5264 = vmatpush1.bf16.msra.mxu0 %v7174_v15  ;;  %v2901_v15 = vld [vmem:[#allocation3 + $0x150] sm:$0xff] }
 0x708   :  { %5234 = vmatprep.subr.bf16.mxu1 %v7175_v23  ;;  %5266 = vmatprep.subr.bf16.mxu0 %v7176_v40 }
 0x70b   :  { %5236 = vmatpush1.bf16.msra.mxu1 %v7177_v38  ;;  %5268 = vmatpush1.bf16.msra.mxu0 %v7178_v12  ;;  %v2900_v38 = vld [vmem:[#allocation3 + $0x148] sm:$0xff] }
 0x70c   :  { %5238 = vmatprep.subr.bf16.mxu1 %v7179_v2  ;;  %5270 = vmatprep.subr.bf16.mxu0 %v7180_v14  ;;  %v7190_v2 = vld [vmem:[#allocation38_spill] sm:$0xff]  ;;  %v7191_v14 = vld [vmem:[#allocation39_spill] sm:$0xff] }
 0x70f   :  { %5240 = vmatpush1.bf16.msra.mxu1 %v7181_v24  ;;  %5272 = vmatpush1.bf16.msra.mxu0 %v7182_v37  ;;  %v7192_v24 = vld [vmem:[#allocation40_spill] sm:$0xff]  ;;  %v2899_v37 = vld [vmem:[#allocation3 + $0x140] sm:$0xff] }
 0x710   :  { %5242 = vmatprep.subr.bf16.mxu1 %v7183_v10  ;;  %5274 = vmatprep.subr.bf16.mxu0 %v7184_v53 }
 0x713   :  { %5244 = vmatpush1.bf16.msra.mxu1 %v7185_v50  ;;  %5276 = vmatpush1.bf16.msra.mxu0 %v7186_v25 }
 0x714   :  { %5246 = vmatprep.subr.bf16.mxu1 %v7187_v27  ;;  %5278 = vmatprep.subr.bf16.mxu0 %v7188_v39  ;;  %v2902_v39 = vld [vmem:[#allocation3 + $0x158] sm:$0xff] }
 0x717   :  { %5248 = vmatpush1.bf16.msra.mxu1 %v7189_v30  ;;  %5280 = vmatpush1.bf16.msra.mxu0 %v7190_v2 }
 0x718   :  { %5282 = vmatprep.subr.bf16.mxu1 %v7191_v14  ;;  %5314 = vmatprep.subr.bf16.mxu0 %v7192_v24 }
 0x7ad   :  { %v2973_v10 = vpop.f32.mrb[28].mxu1  ;;  %v3044_v12 = vpop.f32.mrb[30].mxu0 }
 0x7ae   :  { %v3049_v53 = vadd.f32 %v2973_v10, %v2899_v37  ;;  %v2975_v50 = vpop.f32.mrb[29].mxu1  ;;  %v3046_v40 = vpop.f32.mrb[31].mxu0  ;;  %v3051_v63 = vadd.f32 %v3044_v12, %v2901_v15 }
 0x7af   :  { %v3050_v25 = vadd.f32 %v2975_v50, %v2900_v38  ;;  %v3052_v30 = vadd.f32 %v3046_v40, %v2902_v39 }
 0x7b0   :  { %v4094_v23 = vmul.f32 -1.442695, %v3049_v53 }
 0x7b1   :  { %v4095_v27 = vmul.f32 -1.442695, %v3050_v25  ;;  %v4096_v2 = vmul.f32 -1.442695, %v3052_v30  ;;  %v2906_v30 = vld [vmem:[#allocation3 + $0xb8] sm:$0xff] }
 0x7b2   :  { %5679 = vpow2.f32 %v4094_v23 }
 0x7b3   :  { %5681 = vpow2.f32 %v4095_v27  ;;  %v2903_v27 = vld [vmem:[#allocation3 + $0xa0] sm:$0xff] }
 0x7b4   :  { %5683 = vpow2.f32 %v4096_v2  ;;  %v2904_v2 = vld [vmem:[#allocation3 + $0xa8] sm:$0xff] }
 0x7b5   :  { %5685 = vtanh.f32 %v3051_v63 }
 0x7bc   :  { %v5680_v14 = vpop.eup %5679 }
 0x7bd   :  { %v5682_v9 = vpop.eup %5681  ;;  %v3056_v24 = vadd.f32 1.0, %v5680_v14 }
 0x7be   :  { %v3062_v35 = vadd.f32 1.0, %v5682_v9  ;;  %v5684_v37 = vpop.eup %5683 }
 0x7bf   :  { %5687 = vrcp.f32 %v3056_v24  ;;  %v5686_v10 = vpop.eup %5685  ;;  %v3069_v23 = vadd.f32 1.0, %v5684_v37 }
 0x7c0   :  { %5689 = vrcp.f32 %v3062_v35 }
 0x7c1   :  { %5691 = vrcp.f32 %v3069_v23 }
 0x7c9   :  { %v5688_v38 = vpop.eup %5687 }
 0x7ca   :  { %v5690_v53 = vpop.eup %5689  ;;  %v3073_v50 = vmul.f32 %v5688_v38, %v5686_v10  ;;  %v2905_v38 = vld [vmem:[#allocation3 + $0xb0] sm:$0xff] }
 0x7cb   :  { %v3072_v25 = vmul.f32 %v5690_v53, %v6769_v3  ;;  %v5692_v3 = vpop.eup %5691 }
 0x7cd   :  { %v6845_v40 = vadd.f32 %v3073_v50, %v3072_v25  ;;  %v3143_v15 = vpop.f32.mrb[30].mxu1  ;;  %v3214_v12 = vpop.f32.mrb[32].mxu0 }
 0x7ce   :  { %v3219_v14 = vadd.f32 %v3143_v15, %v2903_v27  ;;  %v3145_v63 = vpop.f32.mrb[31].mxu1  ;;  %v3216_v9 = vpop.f32.mrb[33].mxu0  ;;  %v3221_v50 = vadd.f32 %v3214_v12, %v2905_v38  ;;  %v7206_v38 = vld [vmem:[#allocation32_spill] sm:$0xff] }
 0x7cf   :  { %v3220_v24 = vadd.f32 %v3145_v63, %v2904_v2  ;;  %5693 = vtanh.f32 %v6845_v40  ;;  %v3222_v37 = vadd.f32 %v3216_v9, %v2906_v30 }
 0x7d0   :  { %v4097_v35 = vmul.f32 -1.442695, %v3219_v14 }
 0x7d1   :  { %v4098_v39 = vmul.f32 -1.442695, %v3220_v24  ;;  %v4099_v53 = vmul.f32 -1.442695, %v3222_v37 }
 0x7d2   :  { %5695 = vpow2.f32 %v4097_v35 }
 0x7d3   :  { %5697 = vpow2.f32 %v4098_v39 }
 0x7d4   :  { %5699 = vpow2.f32 %v4099_v53  ;;  %v7207_v53 = vld [vmem:[#allocation33_spill] sm:$0xff] }
 0x7d5   :  { %5701 = vtanh.f32 %v3221_v50  ;;  %v7208_v50 = vld [vmem:[#allocation34_spill] sm:$0xff] }
 0x7d9   :  { %v5694_v10 = vpop.eup %5693 }
 0x7da   :  { %v3076_v25 = vmul.f32 %v5694_v10, %v5692_v3  ;;  %v7205_v10 = vld [vmem:[#allocation31_spill] sm:$0xff] }
 0x7dc   :  { %v5696_v23 = vpop.eup %5695  ;;  %3320 = vmatmul.mubr.f32.vlgmr.msra.gmra.mrb[32].mxu1 %v3076_v25  ;;  %3391 = vmatmul.mubr.f32.vlgmr.msra.gmra.mrb[34].mxu0 %v3076_v25  ;;  %v7209_v25 = vld [vmem:[#allocation35_spill] sm:$0xff] }
 0x7dd   :  { %v5698_v27 = vpop.eup %5697  ;;  %v3226_v15 = vadd.f32 1.0, %v5696_v23  ;;  %5284 = vmatpush1.bf16.msra.mxu1 %v6327_v45  ;;  %5316 = vmatpush1.bf16.msra.mxu0 %v6329_v46  ;;  %v7210_v23 = vld [vmem:[#allocation36_spill] sm:$0xff] }
 0x7de   :  { %v3232_v14 = vadd.f32 1.0, %v5698_v27  ;;  %5286 = vmatprep.subr.bf16.mxu1 %v6333_v49  ;;  %5318 = vmatprep.subr.bf16.mxu0 %v6335_v54  ;;  %v5700_v12 = vpop.eup %5699  ;;  %v7211_v27 = vld [vmem:[#allocation37_spill] sm:$0xff] }
 0x7df   :  { %5703 = vrcp.f32 %v3226_v15  ;;  %3489 = vmatprep.mubr.f32.mxu1 %v6351_v31  ;;  %3560 = vmatprep.mubr.f32.mxu0 %v6351_v31  ;;  %v5702_v2 = vpop.eup %5701  ;;  %v3239_v35 = vadd.f32 1.0, %v5700_v12  ;;  %v7212_v15 = vld [vmem:[#allocation38_spill] sm:$0xff]  ;;  %v7214_v12 = vld [vmem:[#allocation40_spill] sm:$0xff] }
 0x7e0   :  { %5705 = vrcp.f32 %v3232_v14  ;;  %v7213_v14 = vld [vmem:[#allocation39_spill] sm:$0xff] }
 0x7e1   :  { %5288 = vmatpush1.bf16.msra.mxu1 %v6341_v6  ;;  %5320 = vmatpush1.bf16.msra.mxu0 %v6343_v8  ;;  %5707 = vrcp.f32 %v3239_v35  ;;  %v3248_v35 = vld [vmem:[#allocation3 + $0x188] sm:$0xff] }
 0x7e2   :  { %5290 = vmatprep.subr.bf16.mxu1 %v6347_v16  ;;  %5322 = vmatprep.subr.bf16.mxu0 %v7078_v19 }
 0x7e5   :  { %5292 = vmatpush1.bf16.msra.mxu1 %v7079_v42  ;;  %5324 = vmatpush1.bf16.msra.mxu0 %v7080_v21 }
 0x7e6   :  { %5294 = vmatprep.subr.bf16.mxu1 %v7081_v28  ;;  %5326 = vmatprep.subr.bf16.mxu0 %v7082_v33 }
 0x7e9   :  { %v5704_v63 = vpop.eup %5703  ;;  %5296 = vmatpush1.bf16.msra.mxu1 %v7083_v58  ;;  %5328 = vmatpush1.bf16.msra.mxu0 %v7084_v57 }
 0x7ea   :  { %v5706_v9 = vpop.eup %5705  ;;  %v3243_v24 = vmul.f32 %v5704_v63, %v5702_v2  ;;  %5298 = vmatprep.subr.bf16.mxu1 %v7085_v22  ;;  %5330 = vmatprep.subr.bf16.mxu0 %v7086_v7  ;;  %v3247_v2 = vld [vmem:[#allocation3 + $0x180] sm:$0xff] }
 0x7eb   :  { %v3242_v39 = vmul.f32 %v5706_v9, %v6791_v17  ;;  %v5708_v17 = vpop.eup %5707 }
 0x7ed   :  { %v6867_v30 = vadd.f32 %v3243_v24, %v3242_v39  ;;  %5300 = vmatpush1.bf16.msra.mxu1 %v7087_v29  ;;  %5332 = vmatpush1.bf16.msra.mxu0 %v7088_v34 }
 0x7ee   :  { %5302 = vmatprep.subr.bf16.mxu1 %v6387_v61  ;;  %5334 = vmatprep.subr.bf16.mxu0 %v6389_v62 }
 0x7ef   :  { %5709 = vtanh.f32 %v6867_v30 }
 0x7f1   :  { %5304 = vmatpush1.bf16.msra.mxu1 %v6393_v13  ;;  %5336 = vmatpush1.bf16.msra.mxu0 %v6395_v18 }
 0x7f2   :  { %5306 = vmatprep.subr.bf16.mxu1 %v6399_v55  ;;  %5338 = vmatprep.subr.bf16.mxu0 %v6401_v32 }
 0x7f5   :  { %5308 = vmatpush1.bf16.msra.mxu1 %v6405_v48  ;;  %5340 = vmatpush1.bf16.msra.mxu0 %v6407_v56 }
 0x7f6   :  { %5310 = vmatprep.subr.bf16.mxu1 %v6411_v44  ;;  %5342 = vmatprep.subr.bf16.mxu0 %v6413_v47 }
 0x7f9   :  { %v5710_v37 = vpop.eup %5709  ;;  %5312 = vmatpush1.bf16.msra.mxu1 %v6417_v20  ;;  %5344 = vmatpush1.bf16.msra.mxu0 %v6419_v26 }
 0x7fa   :  { %v3246_v3 = vmul.f32 %v5710_v37, %v5708_v17  ;;  %5346 = vmatprep.subr.bf16.mxu1 %v6219_v41  ;;  %5378 = vmatprep.subr.bf16.mxu0 %v6221_v43  ;;  %v7193_v41 = vld [vmem:[#allocation19_spill] sm:$0xff]  ;;  %v7194_v43 = vld [vmem:[#allocation20_spill] sm:$0xff] }
 0x7fc   :  { %3490 = vmatmul.mubr.f32.vlgmr.msra.gmra.mrb[34].mxu1 %v3246_v3  ;;  %3561 = vmatmul.mubr.f32.vlgmr.msra.gmra.mrb[36].mxu0 %v3246_v3 }
 0x7fd   :  { %5348 = vmatpush1.bf16.msra.mxu1 %v6223_v51  ;;  %5380 = vmatpush1.bf16.msra.mxu0 %v6225_v52  ;;  %v7195_v51 = vld [vmem:[#allocation21_spill] sm:$0xff]  ;;  %v7196_v52 = vld [vmem:[#allocation22_spill] sm:$0xff] }
 0x7fe   :  { %5350 = vmatprep.subr.bf16.mxu1 %v6229_v59  ;;  %5382 = vmatprep.subr.bf16.mxu0 %v6231_v60  ;;  %v7197_v59 = vld [vmem:[#allocation23_spill] sm:$0xff]  ;;  %v7198_v60 = vld [vmem:[#allocation24_spill] sm:$0xff] }
 0x7ff   :  { %3667 = vmatprep.mubr.f32.mxu1 %v6351_v31  ;;  %3738 = vmatprep.mubr.f32.mxu0 %v6351_v31 }
 0x801   :  { %5352 = vmatpush1.bf16.msra.mxu1 %v6237_v0  ;;  %5384 = vmatpush1.bf16.msra.mxu0 %v6239_v1  ;;  %v7199_v0 = vld [vmem:[#allocation25_spill] sm:$0xff]  ;;  %v7200_v1 = vld [vmem:[#allocation26_spill] sm:$0xff] }
 0x802   :  { %5354 = vmatprep.subr.bf16.mxu1 %v6243_v4  ;;  %5386 = vmatprep.subr.bf16.mxu0 %v6245_v5  ;;  %v7201_v4 = vld [vmem:[#allocation27_spill] sm:$0xff]  ;;  %v7202_v5 = vld [vmem:[#allocation28_spill] sm:$0xff] }
 0x805   :  { %5356 = vmatpush1.bf16.msra.mxu1 %v6253_v36  ;;  %5388 = vmatpush1.bf16.msra.mxu0 %v6255_v11  ;;  %v7203_v36 = vld [vmem:[#allocation29_spill] sm:$0xff]  ;;  %v7204_v11 = vld [vmem:[#allocation30_spill] sm:$0xff] }
 0x806   :  { %5358 = vmatprep.subr.bf16.mxu1 %v7193_v41  ;;  %5390 = vmatprep.subr.bf16.mxu0 %v7194_v43  ;;  %v3250_v43 = vld [vmem:[#allocation3 + $0x198] sm:$0xff] }
 0x809   :  { %5360 = vmatpush1.bf16.msra.mxu1 %v7195_v51  ;;  %5392 = vmatpush1.bf16.msra.mxu0 %v7196_v52  ;;  %v3249_v52 = vld [vmem:[#allocation3 + $0x190] sm:$0xff] }
 0x80a   :  { %5362 = vmatprep.subr.bf16.mxu1 %v7197_v59  ;;  %5394 = vmatprep.subr.bf16.mxu0 %v7198_v60 }
 0x80d   :  { %5364 = vmatpush1.bf16.msra.mxu1 %v7199_v0  ;;  %5396 = vmatpush1.bf16.msra.mxu0 %v7200_v1 }
 0x80e   :  { %5366 = vmatprep.subr.bf16.mxu1 %v7201_v4  ;;  %5398 = vmatprep.subr.bf16.mxu0 %v7202_v5 }
 0x811   :  { %5368 = vmatpush1.bf16.msra.mxu1 %v7203_v36  ;;  %5400 = vmatpush1.bf16.msra.mxu0 %v7204_v11 }
 0x812   :  { %5370 = vmatprep.subr.bf16.mxu1 %v7205_v10  ;;  %5402 = vmatprep.subr.bf16.mxu0 %v7206_v38 }
 0x815   :  { %5372 = vmatpush1.bf16.msra.mxu1 %v7207_v53  ;;  %5404 = vmatpush1.bf16.msra.mxu0 %v7208_v50 }
 0x816   :  { %5374 = vmatprep.subr.bf16.mxu1 %v7209_v25  ;;  %5406 = vmatprep.subr.bf16.mxu0 %v7210_v23 }
 0x819   :  { %5376 = vmatpush1.bf16.msra.mxu1 %v7211_v27  ;;  %5408 = vmatpush1.bf16.msra.mxu0 %v7212_v15  ;;  %v3251_v27 = vld [vmem:[#allocation3 + $0x60] sm:$0xff] }
 0x81a   :  { %5410 = vmatprep.subr.bf16.mxu1 %v7213_v14  ;;  %5442 = vmatprep.subr.bf16.mxu0 %v7214_v12 }
 0x8af   :  { %v3321_v63 = vpop.f32.mrb[32].mxu1  ;;  %v3392_v9 = vpop.f32.mrb[34].mxu0 }
 0x8b0   :  { %v3397_v24 = vadd.f32 %v3321_v63, %v3247_v2  ;;  %v3323_v39 = vpop.f32.mrb[33].mxu1  ;;  %v3394_v17 = vpop.f32.mrb[35].mxu0  ;;  %v3399_v60 = vadd.f32 %v3392_v9, %v3249_v52  ;;  %v3252_v2 = vld [vmem:[#allocation3 + $0x68] sm:$0xff] }
 0x8b1   :  { %v3398_v37 = vadd.f32 %v3323_v39, %v3248_v35  ;;  %v3400_v51 = vadd.f32 %v3394_v17, %v3250_v43  ;;  %v3254_v17 = vld [vmem:[#allocation3 + $0x78] sm:$0xff] }
 0x8b2   :  { %v4100_v3 = vmul.f32 -1.442695, %v3397_v24 }
 0x8b3   :  { %v4101_v41 = vmul.f32 -1.442695, %v3398_v37  ;;  %v4102_v59 = vmul.f32 -1.442695, %v3400_v51 }
 0x8b4   :  { %5711 = vpow2.f32 %v4100_v3 }
 0x8b5   :  { %5713 = vpow2.f32 %v4101_v41  ;;  %v3253_v41 = vld [vmem:[#allocation3 + $0x70] sm:$0xff] }
 0x8b6   :  { %5715 = vpow2.f32 %v4102_v59 }
 0x8b7   :  { %5717 = vtanh.f32 %v3399_v60 }
 0x8be   :  { %v5712_v0 = vpop.eup %5711 }
 0x8bf   :  { %v5714_v1 = vpop.eup %5713  ;;  %v3404_v4 = vadd.f32 1.0, %v5712_v0 }
 0x8c0   :  { %v3410_v5 = vadd.f32 1.0, %v5714_v1  ;;  %v5716_v36 = vpop.eup %5715 }
 0x8c1   :  { %5719 = vrcp.f32 %v3404_v4  ;;  %v5718_v11 = vpop.eup %5717  ;;  %v3417_v50 = vadd.f32 1.0, %v5716_v36  ;;  %v3949_v4 = vld [vmem:[#allocation14 + $0x30] sm:$0xff]  ;;  %v3967_v36 = vld [vmem:[#allocation14 + $0xc0] sm:$0xff] }
 0x8c2   :  { %5721 = vrcp.f32 %v3410_v5  ;;  %v3950_v5 = vld [vmem:[#allocation14 + $0x38] sm:$0xff] }
 0x8c3   :  { %5723 = vrcp.f32 %v3417_v50  ;;  %v3952_v50 = vld [vmem:[#allocation14 + $0x48] sm:$0xff] }
 0x8cb   :  { %v5720_v10 = vpop.eup %5719 }
 0x8cc   :  { %v5722_v38 = vpop.eup %5721  ;;  %v3421_v53 = vmul.f32 %v5720_v10, %v5718_v11  ;;  %v3968_v11 = vld [vmem:[#allocation14 + $0xc8] sm:$0xff]  ;;  %v5487_v10 = vpack.c.bf16 %v3950_v5, %v3949_v4 }
 0x8cd   :  { %v3420_v25 = vmul.f32 %v5722_v38, %v6845_v40  ;;  %v5724_v40 = vpop.eup %5723  ;;  %v5489_v38 = vpack.c.bf16 %v3968_v11, %v3967_v36  ;;  %v3602_v36 = vld [vmem:[#allocation3 + $0x38] sm:$0xff] }
 0x8cf   :  { %v6921_v23 = vadd.f32 %v3421_v53, %v3420_v25  ;;  %v3491_v15 = vpop.f32.mrb[34].mxu1  ;;  %v3562_v14 = vpop.f32.mrb[36].mxu0  ;;  %v3951_v53 = vld [vmem:[#allocation14 + $0x40] sm:$0xff]  ;;  %v3969_v25 = vld [vmem:[#allocation14 + $0xd0] sm:$0xff] }
 0x8d0   :  { %v3567_v12 = vadd.f32 %v3491_v15, %v3251_v27  ;;  %v3493_v63 = vpop.f32.mrb[35].mxu1  ;;  %v3564_v9 = vpop.f32.mrb[37].mxu0  ;;  %v3569_v51 = vadd.f32 %v3562_v14, %v3253_v41  ;;  %v3970_v27 = vld [vmem:[#allocation14 + $0xd8] sm:$0xff]  ;;  %v5491_v15 = vpack.c.bf16 %v3952_v50, %v3951_v53 }
 0x8d1   :  { %v3568_v24 = vadd.f32 %v3493_v63, %v3252_v2  ;;  %5725 = vtanh.f32 %v6921_v23  ;;  %v3570_v37 = vadd.f32 %v3564_v9, %v3254_v17  ;;  %v5493_v14 = vpack.c.bf16 %v3970_v27, %v3969_v25  ;;  %v3954_v2 = vld [vmem:[#allocation14 + $0x58] sm:$0xff]  ;;  %v3971_v63 = vld [vmem:[#allocation14 + $0xe0] sm:$0xff]  ;;  %v3972_v9 = vld [vmem:[#allocation14 + $0xe8] sm:$0xff] }
 0x8d2   :  { %v4103_v35 = vmul.f32 -1.442695, %v3567_v12  ;;  %v3953_v12 = vld [vmem:[#allocation14 + $0x50] sm:$0xff]  ;;  %v3956_v17 = vld [vmem:[#allocation14 + $0x68] sm:$0xff] }
 0x8d3   :  { %v4104_v39 = vmul.f32 -1.442695, %v3568_v24  ;;  %v4105_v43 = vmul.f32 -1.442695, %v3570_v37  ;;  %v5495_v24 = vpack.c.bf16 %v3954_v2, %v3953_v12  ;;  %v3973_v37 = vld [vmem:[#allocation14 + $0xf0] sm:$0xff] }
 0x8d4   :  { %5727 = vpow2.f32 %v4103_v35  ;;  %v5497_v35 = vpack.c.bf16 %v3972_v9, %v3971_v63 }
 0x8d5   :  { %5729 = vpow2.f32 %v4104_v39  ;;  %v3955_v39 = vld [vmem:[#allocation14 + $0x60] sm:$0xff] }
 0x8d6   :  { %5731 = vpow2.f32 %v4105_v43  ;;  %v3957_v43 = vld [vmem:[#allocation14 + $0x70] sm:$0xff] }
 0x8d7   :  { %5733 = vtanh.f32 %v3569_v51  ;;  %v3958_v51 = vld [vmem:[#allocation14 + $0x78] sm:$0xff] }
 0x8db   :  { %v5726_v3 = vpop.eup %5725 }
 0x8dc   :  { %v3424_v52 = vmul.f32 %v5726_v3, %v5724_v40  ;;  %v3974_v40 = vld [vmem:[#allocation14 + $0xf8] sm:$0xff]  ;;  %v5499_v3 = vpack.c.bf16 %v3956_v17, %v3955_v39 }
 0x8dd   :  { %v5501_v41 = vpack.c.bf16 %v3974_v40, %v3973_v37 }
 0x8de   :  { %v5728_v59 = vpop.eup %5727  ;;  %3668 = vmatmul.mubr.f32.vlgmr.msra.gmra.mrb[36].mxu1 %v3424_v52  ;;  %3739 = vmatmul.mubr.f32.vlgmr.msra.gmra.mrb[38].mxu0 %v3424_v52  ;;  %v5503_v52 = vpack.c.bf16 %v3958_v51, %v3957_v43  ;;  %v4112_v51 = vld [vmem:[%s6977_s9] ss:$0 sm:$0xff] }
 0x8df   :  { %v5730_v60 = vpop.eup %5729  ;;  %v3574_v0 = vadd.f32 1.0, %v5728_v59  ;;  %5412 = vmatpush1.bf16.msra.mxu1 %v6327_v45  ;;  %5444 = vmatpush1.bf16.msra.mxu0 %v6329_v46  ;;  %v3595_v59 = vld [vmem:[#allocation3 + $0x1c0] sm:$0xff] }
 0x8e0   :  { %v3580_v1 = vadd.f32 1.0, %v5730_v60  ;;  %5414 = vmatprep.subr.bf16.mxu1 %v6333_v49  ;;  %5446 = vmatprep.subr.bf16.mxu0 %v6335_v54  ;;  %v5732_v45 = vpop.eup %5731 }
 0x8e1   :  { %5735 = vrcp.f32 %v3574_v0  ;;  %3837 = vmatprep.mubr.f32.mxu1 %v6351_v31  ;;  %3908 = vmatprep.mubr.f32.mxu0 %v6351_v31  ;;  %v5734_v46 = vpop.eup %5733 }
 0x8e2   :  { %5737 = vrcp.f32 %v3580_v1 }
 0x8e3   :  { %5416 = vmatpush1.bf16.msra.mxu1 %v6341_v6  ;;  %5448 = vmatpush1.bf16.msra.mxu0 %v6343_v8  ;;  %v3587_v8 = vadd.f32 1.0, %v5732_v45  ;;  %v3596_v45 = vld [vmem:[#allocation3 + $0x1c8] sm:$0xff] }
 0x8e4   :  { %5418 = vmatprep.subr.bf16.mxu1 %v6347_v16  ;;  %5450 = vmatprep.subr.bf16.mxu0 %v7078_v19 }
 0x8e5   :  { %5739 = vrcp.f32 %v3587_v8 }
 0x8e7   :  { %5420 = vmatpush1.bf16.msra.mxu1 %v7079_v42  ;;  %5452 = vmatpush1.bf16.msra.mxu0 %v7080_v21  ;;  %v3961_v42 = vld [vmem:[#allocation14 + $0x90] sm:$0xff] }
 0x8e8   :  { %5422 = vmatprep.subr.bf16.mxu1 %v7081_v28  ;;  %5454 = vmatprep.subr.bf16.mxu0 %v7082_v33  ;;  %v3945_v28 = vld [vmem:[#allocation14 + $0x10] sm:$0xff]  ;;  %v3963_v33 = vld [vmem:[#allocation14 + $0xa0] sm:$0xff] }
 0x8eb   :  { %v5736_v49 = vpop.eup %5735  ;;  %5424 = vmatpush1.bf16.msra.mxu1 %v7083_v58  ;;  %5456 = vmatpush1.bf16.msra.mxu0 %v7084_v57  ;;  %v3964_v58 = vld [vmem:[#allocation14 + $0xa8] sm:$0xff]  ;;  %v3947_v57 = vld [vmem:[#allocation14 + $0x20] sm:$0xff] }
 0x8ec   :  { %v5738_v54 = vpop.eup %5737  ;;  %v3591_v6 = vmul.f32 %v5736_v49, %v5734_v46  ;;  %5426 = vmatprep.subr.bf16.mxu1 %v7085_v22  ;;  %5458 = vmatprep.subr.bf16.mxu0 %v7086_v7  ;;  %v3948_v22 = vld [vmem:[#allocation14 + $0x28] sm:$0xff]  ;;  %v3965_v7 = vld [vmem:[#allocation14 + $0xb0] sm:$0xff] }
 0x8ed   :  { %v3590_v16 = vmul.f32 %v5738_v54, %v6867_v30 }
 0x8ef   :  { %v6943_v31 = vadd.f32 %v3591_v6, %v3590_v16  ;;  %5428 = vmatpush1.bf16.msra.mxu1 %v7087_v29  ;;  %5460 = vmatpush1.bf16.msra.mxu0 %v7088_v34  ;;  %v3966_v29 = vld [vmem:[#allocation14 + $0xb8] sm:$0xff]  ;;  %v5483_v34 = vpack.c.bf16 %v3948_v22, %v3947_v57 }
 0x8f0   :  { %5430 = vmatprep.subr.bf16.mxu1 %v6387_v61  ;;  %5462 = vmatprep.subr.bf16.mxu0 %v6389_v62  ;;  %v5740_v61 = vpop.eup %5739  ;;  %v5485_v30 = vpack.c.bf16 %v3966_v29, %v3965_v7  ;;  %v3598_v16 = vld [vmem:[#allocation3 + $0x1d8] sm:$0xff]  ;;  %v3600_v7 = vld [vmem:[#allocation3 + $0x28] sm:$0xff] }
 0x8f1   :  { %5741 = vtanh.f32 %v6943_v31 }
 0x8f3   :  { %5432 = vmatpush1.bf16.msra.mxu1 %v6393_v13  ;;  %5464 = vmatpush1.bf16.msra.mxu0 %v6395_v18  ;;  %v3959_v18 = vld [vmem:[#allocation14 + $0x80] sm:$0xff] }
 0x8f4   :  { %5434 = vmatprep.subr.bf16.mxu1 %v6399_v55  ;;  %5466 = vmatprep.subr.bf16.mxu0 %v6401_v32  ;;  %v3960_v55 = vld [vmem:[#allocation14 + $0x88] sm:$0xff]  ;;  %v3943_v32 = vld [vmem:[#allocation14] sm:$0xff] }
 0x8f5   :  { %v5473_v19 = vpack.c.bf16 %v3960_v55, %v3959_v18 }
 0x8f7   :  { %5436 = vmatpush1.bf16.msra.mxu1 %v6405_v48  ;;  %5468 = vmatpush1.bf16.msra.mxu0 %v6407_v56  ;;  %v3944_v48 = vld [vmem:[#allocation14 + $0x8] sm:$0xff]  ;;  %v3962_v56 = vld [vmem:[#allocation14 + $0x98] sm:$0xff] }
 0x8f8   :  { %5438 = vmatprep.subr.bf16.mxu1 %v6411_v44  ;;  %5470 = vmatprep.subr.bf16.mxu0 %v6413_v47  ;;  %v5475_v21 = vpack.c.bf16 %v3944_v48, %v3943_v32  ;;  %v5477_v44 = vpack.c.bf16 %v3962_v56, %v3961_v42  ;;  %v3946_v47 = vld [vmem:[#allocation14 + $0x18] sm:$0xff] }
 0x8fb   :  { %v5742_v62 = vpop.eup %5741  ;;  %5440 = vmatpush1.bf16.msra.mxu1 %v6417_v20  ;;  %5472 = vmatpush1.bf16.msra.mxu0 %v6419_v26  ;;  %v5479_v20 = vpack.c.bf16 %v3946_v47, %v3945_v28  ;;  %v5481_v26 = vpack.c.bf16 %v3964_v58, %v3963_v33 }
 0x8fc   :  { %v3594_v13 = vmul.f32 %v5742_v62, %v5740_v61  ;;  %5474 = vmatprep.subr.bf16.mxu1 %v5473_v19  ;;  %v3597_v62 = vld [vmem:[#allocation3 + $0x1d0] sm:$0xff] }
 0x8fe   :  { %3838 = vmatmul.mubr.f32.vlgmr.msra.gmra.mrb[38].mxu1 %v3594_v13  ;;  %3909 = vmatmul.mubr.f32.vlgmr.msra.gmra.mrb[40].mxu0 %v3594_v13 }
 0x8ff   :  { %5476 = vmatpush3.bf16.msra.mxu1 %v5475_v21 }
 0x900   :  { %5478 = vmatprep.subr.bf16.mxu1 %v5477_v44 }
 0x903   :  { %5480 = vmatpush3.bf16.msra.mxu1 %v5479_v20  ;;  %v3599_v20 = vld [vmem:[#allocation3 + $0x20] sm:$0xff] }
 0x904   :  { %5482 = vmatprep.subr.bf16.mxu1 %v5481_v26 }
 0x907   :  { %5484 = vmatpush3.bf16.msra.mxu1 %v5483_v34 }
 0x908   :  { %5486 = vmatprep.subr.bf16.mxu1 %v5485_v30 }
 0x90b   :  { %5488 = vmatpush3.bf16.msra.mxu1 %v5487_v10 }
 0x90c   :  { %5490 = vmatprep.subr.bf16.mxu1 %v5489_v38 }
 0x90f   :  { %5492 = vmatpush3.bf16.msra.mxu1 %v5491_v15 }
 0x910   :  { %5494 = vmatprep.subr.bf16.mxu1 %v5493_v14 }
 0x913   :  { %5496 = vmatpush3.bf16.msra.mxu1 %v5495_v24 }
 0x914   :  { %5498 = vmatprep.subr.bf16.mxu1 %v5497_v35 }
 0x917   :  { %5500 = vmatpush3.bf16.msra.mxu1 %v5499_v3 }
 0x918   :  { %5502 = vmatprep.subr.bf16.mxu1 %v5501_v41 }
 0x91b   :  { %5504 = vmatpush3.bf16.msra.mxu1 %v5503_v52 }
 0x9b1   :  { %v3669_v60 = vpop.f32.mrb[36].mxu1  ;;  %v3740_v0 = vpop.f32.mrb[38].mxu0 }
 0x9b2   :  { %v3745_v1 = vadd.f32 %v3669_v60, %v3595_v59  ;;  %v3671_v46 = vpop.f32.mrb[37].mxu1  ;;  %v3742_v49 = vpop.f32.mrb[39].mxu0  ;;  %v3747_v18 = vadd.f32 %v3740_v0, %v3597_v62 }
 0x9b3   :  { %v3746_v54 = vadd.f32 %v3671_v46, %v3596_v45  ;;  %v3748_v61 = vadd.f32 %v3742_v49, %v3598_v16 }
 0x9b4   :  { %v4106_v6 = vmul.f32 -1.442695, %v3745_v1 }
 0x9b5   :  { %v4107_v8 = vmul.f32 -1.442695, %v3746_v54  ;;  %v4108_v13 = vmul.f32 -1.442695, %v3748_v61 }
 0x9b6   :  { %5743 = vpow2.f32 %v4106_v6 }
 0x9b7   :  { %5745 = vpow2.f32 %v4107_v8 }
 0x9b8   :  { %5747 = vpow2.f32 %v4108_v13 }
 0x9b9   :  { %5749 = vtanh.f32 %v3747_v18 }
 0x9c0   :  { %v5744_v55 = vpop.eup %5743 }
 0x9c1   :  { %v5746_v32 = vpop.eup %5745  ;;  %v3752_v19 = vadd.f32 1.0, %v5744_v55 }
 0x9c2   :  { %v3758_v48 = vadd.f32 1.0, %v5746_v32  ;;  %v5748_v42 = vpop.eup %5747 }
 0x9c3   :  { %5751 = vrcp.f32 %v3752_v19  ;;  %v5750_v56 = vpop.eup %5749  ;;  %v3765_v47 = vadd.f32 1.0, %v5748_v42 }
 0x9c4   :  { %5753 = vrcp.f32 %v3758_v48 }
 0x9c5   :  { %5755 = vrcp.f32 %v3765_v47 }
 0x9cd   :  { %v5752_v21 = vpop.eup %5751 }
 0x9ce   :  { %v5754_v44 = vpop.eup %5753  ;;  %v3769_v28 = vmul.f32 %v5752_v21, %v5750_v56 }
 0x9cf   :  { %v3768_v33 = vmul.f32 %v5754_v44, %v6921_v23  ;;  %v5756_v10 = vpop.eup %5755  ;;  %v3601_v23 = vld [vmem:[#allocation3 + $0x30] sm:$0xff] }
 0x9d1   :  { %v3770_v58 = vadd.f32 %v3769_v28, %v3768_v33  ;;  %v3839_v26 = vpop.f32.mrb[38].mxu1  ;;  %v3910_v57 = vpop.f32.mrb[40].mxu0 }
 0x9d2   :  { %v3915_v22 = vadd.f32 %v3839_v26, %v3599_v20  ;;  %v3841_v29 = vpop.f32.mrb[39].mxu1  ;;  %v3912_v34 = vpop.f32.mrb[41].mxu0  ;;  %v3917_v50 = vadd.f32 %v3910_v57, %v3601_v23 }
 0x9d3   :  { %5757 = vtanh.f32 %v3770_v58  ;;  %v3916_v30 = vadd.f32 %v3841_v29, %v3600_v7  ;;  %v3918_v11 = vadd.f32 %v3912_v34, %v3602_v36 }
 0x9d4   :  { %v4109_v4 = vmul.f32 -1.442695, %v3915_v22 }
 0x9d5   :  { %v4110_v5 = vmul.f32 -1.442695, %v3916_v30  ;;  %v4111_v53 = vmul.f32 -1.442695, %v3918_v11 }
 0x9d6   :  { %5759 = vpow2.f32 %v4109_v4 }
 0x9d7   :  { %5761 = vpow2.f32 %v4110_v5 }
 0x9d8   :  { %5763 = vpow2.f32 %v4111_v53 }
 0x9d9   :  { %5765 = vtanh.f32 %v3917_v50 }
 0x9dd   :  { %v5758_v38 = vpop.eup %5757 }
 0x9de   :  { %v3772_v25 = vmul.f32 %v5758_v38, %v5756_v10 }
 0x9e0   :  { %v5760_v27 = vpop.eup %5759 }
 0x9e1   :  { %v5762_v15 = vpop.eup %5761  ;;  %v3922_v14 = vadd.f32 1.0, %v5760_v27 }
 0x9e2   :  { %v3928_v12 = vadd.f32 1.0, %v5762_v15  ;;  %v5764_v2 = vpop.eup %5763 }
 0x9e3   :  { %5767 = vrcp.f32 %v3922_v14  ;;  %v5766_v63 = vpop.eup %5765  ;;  %v3935_v39 = vadd.f32 1.0, %v5764_v2 }
 0x9e4   :  { %5769 = vrcp.f32 %v3928_v12 }
 0x9e5   :  { %5771 = vrcp.f32 %v3935_v39 }
 0x9ed   :  { %v5768_v9 = vpop.eup %5767 }
 0x9ee   :  { %v5770_v24 = vpop.eup %5769  ;;  %v3939_v35 = vmul.f32 %v5768_v9, %v5766_v63 }
 0x9ef   :  { %v3938_v17 = vmul.f32 %v5770_v24, %v6943_v31  ;;  %v5772_v40 = vpop.eup %5771 }
 0x9f1   :  { %v3940_v37 = vadd.f32 %v3939_v35, %v3938_v17 }
 0x9f3   :  { %5773 = vtanh.f32 %v3940_v37 }
 0x9fd   :  { %v5774_v3 = vpop.eup %5773 }
 0x9fe   :  { %v3942_v41 = vmul.f32 %v5774_v3, %v5772_v40 }
 0xa00   :  { %4046 = vmatprep.mubr.f32.mxu1 %v3942_v41 }
 0xa01   :  { %4047 = vmatmul.mubr.f32.vlgmr.msra.gmra.mrb[40].mxu1 %v3772_v25 }
 0xad4   :  { %v4155_v43 = vpop.f32.mrb[40].mxu1 }
 0xad5   :  { %v4156_v52 = vpop.f32.mrb[41].mxu1 }
 0xad6   :  { %v4157_v59 = vadd.f32 %v4156_v52, %v4155_v43 }
 0xad8   :  { %v4049_v60 = vadd.f32 %v4157_v59, %v4112_v51 }
 0xada   :  { %4052 = vst [vmem:[%s6978_s10] sm:$0xff] %v4049_v60 }
 0xadb   :  { %4057 = vsyncpa [#allocation5], 1 }
 0xadc   :  { %4058 = vsyncpa [#allocation7], 1 }
 0xadd   :  { %4059 = vsyncpa [#allocation10], 1 }
 0xade   :  { %4060 = vsyncpa [#allocation13], 1 }

</bundles_post_ra>
